<compile_context>
chip_gen: v7x
topology: tpu7x:2x2x1
jax: 0.10.0
libtpu: 0.0.40
codegen_flags: <defaults>
</compile_context>

<pallas_src>
import math

import jax
import jax.numpy as jnp
from jax.experimental import pallas as pl
from jax.experimental.pallas import tpu as pltpu


NEG_INF = -1e30  # finite mask sentinel (avoids NaN from inf - inf in softmax)

ENC_KEYS = ("wq", "bq", "wk", "bk", "wv", "bv", "wo", "bo",
            "w1", "b1", "w2", "b2",
            "ln1_g", "ln1_b", "ln2_g", "ln2_b")
DEC_KEYS = ("sa_wq", "sa_bq", "sa_wk", "sa_bk", "sa_wv", "sa_bv", "sa_wo", "sa_bo",
            "ca_wq", "ca_bq", "ca_wk", "ca_bk", "ca_wv", "ca_bv", "ca_wo", "ca_bo",
            "w1", "b1", "w2", "b2",
            "ln1_g", "ln1_b", "ln2_g", "ln2_b", "ln3_g", "ln3_b")
TOP_KEYS = ("enc_norm_g", "enc_norm_b", "dec_norm_g", "dec_norm_b", "tok_w", "tok_b")

# Weight matrices that feed the MXU: pass them to the kernel already cast to bf16.
_BF16_KEYS = {"wq", "wk", "wv", "wo", "w1", "w2",
              "sa_wq", "sa_wk", "sa_wv", "sa_wo",
              "ca_wq", "ca_wk", "ca_wv", "ca_wo", "tok_w"}


def _flatten_params(params, tok_w_padded, tok_b_padded):
    def cast(k, a):
        return a.astype(jnp.bfloat16) if k in _BF16_KEYS else a
    flat = [cast(k, params["enc"][k]) for k in ENC_KEYS]
    flat += [cast(k, params["dec"][k]) for k in DEC_KEYS]
    top = dict(params)
    top["tok_w"], top["tok_b"] = tok_w_padded, tok_b_padded
    flat += [cast(k, top[k]) for k in TOP_KEYS]
    return flat


def _const_index_map(ndim):
    zeros = (0,) * ndim
    return lambda b: zeros


# ----------------------------------------------------------------------------
# Per-batch kernel: one full transformer forward for one batch element.
# ----------------------------------------------------------------------------

def _make_kernel(cfg, S, T, Vp):
    E = cfg["d_model"]
    H = cfg["nhead"]
    Dh = E // H
    assert H * Dh == E, "d_model must be divisible by nhead"
    LE = cfg["num_encoder_layers"]
    LD = cfg["num_decoder_layers"]
    scale = 1.0 / math.sqrt(Dh)
    sqrt_d = math.sqrt(E)
    n_enc, n_dec = len(ENC_KEYS), len(DEC_KEYS)

    def matmul(x2, w_bf16):
        # bf16 MXU operands, f32 accumulation.
        return jnp.dot(x2.astype(jnp.bfloat16), w_bf16,
                       preferred_element_type=jnp.float32)

    def linear(x2, w, b, relu=False):
        y = matmul(x2, w) + b                   # b: (1, out), broadcasts over rows
        return jnp.maximum(y, 0.0) if relu else y

    def layernorm(x2, g, b, eps=1e-5):
        mu = jnp.mean(x2, axis=-1, keepdims=True)
        xc = x2 - mu
        var = jnp.mean(xc * xc, axis=-1, keepdims=True)
        return xc * jax.lax.rsqrt(var + eps) * g + b

    def attention(q2, k2, v2, bias):
        # q2: (Lq, E); k2/v2: (Lk, E); bias broadcastable to (Lq, Lk) or None.
        # Cast once, then one reshape per tensor; no per-head lane slices / concat.
        Lq, Lk = q2.shape[0], k2.shape[0]
        qh = q2.astype(jnp.bfloat16).reshape(Lq, H, Dh)
        kh = k2.astype(jnp.bfloat16).reshape(Lk, H, Dh)
        vh = v2.astype(jnp.bfloat16).reshape(Lk, H, Dh)
        s = jnp.einsum("qhd,khd->hqk", qh, kh,
                       preferred_element_type=jnp.float32) * scale   # (H, Lq, Lk)
        if bias is not None:
            s = s + bias
        m = jnp.max(s, axis=-1, keepdims=True)
        p = jnp.exp(s - m)
        p = p * pl.reciprocal(jnp.sum(p, axis=-1, keepdims=True), approx=True)
        o = jnp.einsum("hqk,khd->qhd", p.astype(jnp.bfloat16), vh,
                       preferred_element_type=jnp.float32)            # (Lq, H, Dh)
        return o.reshape(Lq, E)

    def kernel(src_ref, tgt_ref, src_kpm_ref, tgt_kpm_ref, pe_ref, *refs):
        prefs = refs[:-1]
        out_ref = refs[-1]
        enc = dict(zip(ENC_KEYS, prefs[:n_enc]))
        dec = dict(zip(DEC_KEYS, prefs[n_enc:n_enc + n_dec]))
        top = dict(zip(TOP_KEYS, prefs[n_enc + n_dec:]))

        pe = pe_ref[0]                  # (1, E)  — reference's batch-index PE quirk
        src_bias = src_kpm_ref[0]       # (1, S)  additive key-padding bias
        tgt_bias = tgt_kpm_ref[0]       # (1, T)

        # Causal (T, T) additive mask built in-register (no HBM mask).
        row = jax.lax.broadcasted_iota(jnp.int32, (T, T), 0)
        col = jax.lax.broadcasted_iota(jnp.int32, (T, T), 1)
        causal = jnp.where(col > row, NEG_INF, 0.0).astype(jnp.float32)
        dec_self_bias = causal + tgt_bias                         # (T, T)

        # Embedding * sqrt(d_model) + positional encoding.
        x = src_ref[0] * sqrt_d + pe                              # (S, E)
        y = tgt_ref[0] * sqrt_d + pe                              # (T, E)

        # ------------- Encoder (post-norm, ReLU FFN, dropout = identity) -------------
        # Static Python loop is fine at LE/LD = 2; switch to lax.fori_loop with
        # dynamic first-axis indexing of the stacked weight refs if depth grows.
        for i in range(LE):
            q = linear(x, enc["wq"][i], enc["bq"][i])
            k = linear(x, enc["wk"][i], enc["bk"][i])
            v = linear(x, enc["wv"][i], enc["bv"][i])
            att = attention(q, k, v, src_bias)
            att = linear(att, enc["wo"][i], enc["bo"][i])
            x = layernorm(x + att, enc["ln1_g"][i], enc["ln1_b"][i])
            h = linear(x, enc["w1"][i], enc["b1"][i], relu=True)
            h = linear(h, enc["w2"][i], enc["b2"][i])
            x = layernorm(x + h, enc["ln2_g"][i], enc["ln2_b"][i])
        mem = layernorm(x, top["enc_norm_g"][...], top["enc_norm_b"][...])   # (S, E)

        # ------------- Decoder -------------
        # TODO(synk): FiLM (secret-conditioned gamma/beta) modulation omitted — source unavailable.
        for i in range(LD):
            # self-attention (causal + tgt key padding)
            q = linear(y, dec["sa_wq"][i], dec["sa_bq"][i])
            k = linear(y, dec["sa_wk"][i], dec["sa_bk"][i])
            v = linear(y, dec["sa_wv"][i], dec["sa_bv"][i])
            sa = attention(q, k, v, dec_self_bias)
            sa = linear(sa, dec["sa_wo"][i], dec["sa_bo"][i])
            y = layernorm(y + sa, dec["ln1_g"][i], dec["ln1_b"][i])

            # cross-attention (memory_key_padding_mask is None in the reference call path)
            q = linear(y, dec["ca_wq"][i], dec["ca_bq"][i])
            k = linear(mem, dec["ca_wk"][i], dec["ca_bk"][i])
            v = linear(mem, dec["ca_wv"][i], dec["ca_bv"][i])
            ca = attention(q, k, v, None)
            ca = linear(ca, dec["ca_wo"][i], dec["ca_bo"][i])
            y = layernorm(y + ca, dec["ln2_g"][i], dec["ln2_b"][i])

            # feed-forward
            h = linear(y, dec["w1"][i], dec["b1"][i], relu=True)
            h = linear(h, dec["w2"][i], dec["b2"][i])
            y = layernorm(y + h, dec["ln3_g"][i], dec["ln3_b"][i])
        y = layernorm(y, top["dec_norm_g"][...], top["dec_norm_b"][...])

        # Tokenizer projection: lane-dense (T, Vp) logits, ONE full-block store.
        logits = linear(y, top["tok_w"][...], top["tok_b"][...])            # (T, Vp)
        out_ref[0] = logits

    return kernel


# ----------------------------------------------------------------------------
# Wrapper: cheap XLA prep (embedding gather, masks, vocab padding), one pallas_call
# with a parallel batch grid, then the cross-batch softmax / argmax / permutes.
# ----------------------------------------------------------------------------

def film_transformer_forward(params, cfg, src_tokens, secret_tokens, tgt_tokens):
    del secret_tokens  # TODO(synk): FiLM conditioning on the secret is omitted (source unavailable).
    V = cfg["sentence_vocab_len"]
    E = cfg["d_model"]
    N, S = src_tokens.shape
    _, T = tgt_tokens.shape
    Vp = ((V + 127) // 128) * 128                                     # lane-dense output width

    emb = params["emb"]
    src_emb = jnp.take(emb, src_tokens, axis=0)                       # (N, S, E)
    tgt_emb = jnp.take(emb, tgt_tokens, axis=0)                       # (N, T, E)
    # get_padding_mask: 0 / -inf(-1e30) where token == 2, as additive key bias.
    src_kpm = jnp.where(src_tokens == 2, NEG_INF, 0.0).astype(jnp.float32)[:, None, :]  # (N,1,S)
    tgt_kpm = jnp.where(tgt_tokens == 2, NEG_INF, 0.0).astype(jnp.float32)[:, None, :]  # (N,1,T)
    # PositionalEncoding quirk of the reference: the table is indexed by the batch index.
    pe_bias = params["pe"][:N][:, None, :]                            # (N, 1, E); requires N <= 256

    # Zero-pad the tokenizer to 128 lanes so the kernel's output store is unmasked.
    tok_w_p = jnp.pad(params["tok_w"], ((0, 0), (0, Vp - V)))
    tok_b_p = jnp.pad(params["tok_b"], ((0, 0), (0, Vp - V)))
    flat = _flatten_params(params, tok_w_p, tok_b_p)

    kernel = _make_kernel(cfg, S, T, Vp)

    in_specs = [
        pl.BlockSpec((1, S, E), lambda b: (b, 0, 0)),                 # src_emb
        pl.BlockSpec((1, T, E), lambda b: (b, 0, 0)),                 # tgt_emb
        pl.BlockSpec((1, 1, S), lambda b: (b, 0, 0)),                 # src_kpm
        pl.BlockSpec((1, 1, T), lambda b: (b, 0, 0)),                 # tgt_kpm
        pl.BlockSpec((1, 1, E), lambda b: (b, 0, 0)),                 # pe
    ] + [pl.BlockSpec(a.shape, _const_index_map(a.ndim)) for a in flat]  # resident weights

    logits = pl.pallas_call(
        kernel,
        grid=(N,),
        in_specs=in_specs,
        out_specs=pl.BlockSpec((1, T, Vp), lambda b: (b, 0, 0)),
        out_shape=jax.ShapeDtypeStruct((N, T, Vp), jnp.float32),
        compiler_params=pltpu.CompilerParams(
            dimension_semantics=("parallel",),            # 2x on v7x (2 TCs); ~free on v5e/v6e
            vmem_limit_bytes=32 * 1024 * 1024),
    )(src_emb, tgt_emb, src_kpm, tgt_kpm, pe_bias, *flat)

    logits = logits[:, :, :V]                                         # drop vocab lane padding
    # Reference: Softmax(dim=1) on (T, N, V) == softmax over the BATCH axis (the only
    # cross-batch coupling), then (probs.permute(1, 2, 0), argmax(probs, -1).permute(1, 0)).
    probs_ntv = jax.nn.softmax(logits, axis=0)                        # (N, T, V)
    out_probs = jnp.transpose(probs_ntv, (0, 2, 1))                   # (N, V, T)
    out_tokens = jnp.argmax(probs_ntv, axis=-1).astype(jnp.int32)     # (N, T)
    return out_probs, out_tokens


# ----------------------------------------------------------------------------
# Deterministic parameter init (synthetic; mirrors the module's shapes; layers stacked).
# ----------------------------------------------------------------------------

def init_params(key, cfg):
    d = cfg["d_model"]
    dff = cfg["dim_feedforward"]
    V = cfg["sentence_vocab_len"]
    LE = cfg["num_encoder_layers"]
    LD = cfg["num_decoder_layers"]

    keys = iter(jax.random.split(key, 512))

    def xav(shape):
        fan_in, fan_out = shape[-2], shape[-1]
        bound = math.sqrt(6.0 / (fan_in + fan_out))
        return jax.random.uniform(next(keys), shape, jnp.float32, -bound, bound)

    def enc_layer():
        return dict(
            wq=xav((d, d)), bq=jnp.zeros((1, d), jnp.float32),
            wk=xav((d, d)), bk=jnp.zeros((1, d), jnp.float32),
            wv=xav((d, d)), bv=jnp.zeros((1, d), jnp.float32),
            wo=xav((d, d)), bo=jnp.zeros((1, d), jnp.float32),
            w1=xav((d, dff)), b1=jnp.zeros((1, dff), jnp.float32),
            w2=xav((dff, d)), b2=jnp.zeros((1, d), jnp.float32),
            ln1_g=jnp.ones((1, d), jnp.float32), ln1_b=jnp.zeros((1, d), jnp.float32),
            ln2_g=jnp.ones((1, d), jnp.float32), ln2_b=jnp.zeros((1, d), jnp.float32),
        )

    def dec_layer():
        return dict(
            sa_wq=xav((d, d)), sa_bq=jnp.zeros((1, d), jnp.float32),
            sa_wk=xav((d, d)), sa_bk=jnp.zeros((1, d), jnp.float32),
            sa_wv=xav((d, d)), sa_bv=jnp.zeros((1, d), jnp.float32),
            sa_wo=xav((d, d)), sa_bo=jnp.zeros((1, d), jnp.float32),
            ca_wq=xav((d, d)), ca_bq=jnp.zeros((1, d), jnp.float32),
            ca_wk=xav((d, d)), ca_bk=jnp.zeros((1, d), jnp.float32),
            ca_wv=xav((d, d)), ca_bv=jnp.zeros((1, d), jnp.float32),
            ca_wo=xav((d, d)), ca_bo=jnp.zeros((1, d), jnp.float32),
            w1=xav((d, dff)), b1=jnp.zeros((1, dff), jnp.float32),
            w2=xav((dff, d)), b2=jnp.zeros((1, d), jnp.float32),
            ln1_g=jnp.ones((1, d), jnp.float32), ln1_b=jnp.zeros((1, d), jnp.float32),
            ln2_g=jnp.ones((1, d), jnp.float32), ln2_b=jnp.zeros((1, d), jnp.float32),
            ln3_g=jnp.ones((1, d), jnp.float32), ln3_b=jnp.zeros((1, d), jnp.float32),
        )

    def stack_layers(layer_dicts):
        return {k: jnp.stack([ld[k] for ld in layer_dicts], axis=0) for k in layer_dicts[0]}

    # Positional-encoding table (max_len doubled inside the reference module).
    max_len = 2 * 128
    position = jnp.arange(max_len, dtype=jnp.float32)[:, None]
    div_term = jnp.exp(jnp.arange(0, d, 2, dtype=jnp.float32) * (-math.log(10000.0) / d))
    pe = jnp.zeros((max_len, d), jnp.float32)
    pe = pe.at[:, 0::2].set(jnp.sin(position * div_term))
    pe = pe.at[:, 1::2].set(jnp.cos(position * div_term))

    return dict(
        emb=xav((V, d)),
        pe=pe,
        enc=stack_layers([enc_layer() for _ in range(LE)]),
        dec=stack_layers([dec_layer() for _ in range(LD)]),
        enc_norm_g=jnp.ones((1, d), jnp.float32), enc_norm_b=jnp.zeros((1, d), jnp.float32),
        dec_norm_g=jnp.ones((1, d), jnp.float32), dec_norm_b=jnp.zeros((1, d), jnp.float32),
        tok_w=xav((d, V)), tok_b=jnp.zeros((1, V), jnp.float32),
    )


# ----------------------------------------------------------------------------
# Demo
# ----------------------------------------------------------------------------

if __name__ == "__main__":
    cfg = dict(
        sentence_vocab_len=16,
        secret_vocab_len=8,
        d_model=32,
        nhead=4,
        num_encoder_layers=2,
        num_decoder_layers=2,
        dim_feedforward=64,
    )

    root = jax.random.PRNGKey(0)
    k_param, k_src, k_sec, k_tgt = jax.random.split(root, 4)
    params = init_params(k_param, cfg)

    N, S, T, S_sec = 2, 8, 8, 4
    # Tokens in [3, vocab) so no padding token (==2) appears in the demo inputs.
    src = jax.random.randint(k_src, (N, S), 3, cfg["sentence_vocab_len"], dtype=jnp.int32)
    secret = jax.random.randint(k_sec, (N, S_sec), 3, cfg["secret_vocab_len"], dtype=jnp.int32)
    tgt = jax.random.randint(k_tgt, (N, T), 3, cfg["sentence_vocab_len"], dtype=jnp.int32)

    @jax.jit
    def fwd(p, s, sec, t):
        return film_transformer_forward(p, cfg, s, sec, t)

    out_probs, out_tokens = fwd(params, src, secret, tgt)
    jax.block_until_ready((out_probs, out_tokens))

    assert out_probs.shape == (N, cfg["sentence_vocab_len"], T)
    assert out_tokens.shape == (N, T)
    assert bool(jnp.all(jnp.isfinite(out_probs)))
    # Softmax is over the batch axis, so probabilities sum to 1 across batch.
    assert bool(jnp.allclose(out_probs.sum(axis=0), 1.0, atol=1e-3))
    print("KERNEL_OK")
</pallas_src>

<mosaic_0001>
module attributes {stable_mosaic.version = 11 : i64} {
  func.func @kernel(%arg0: i32, %arg1: memref<1x8x32xf32, #tpu.memory_space<vmem>>, %arg2: memref<1x8x32xf32, #tpu.memory_space<vmem>>, %arg3: memref<1x1x8xf32, #tpu.memory_space<vmem>>, %arg4: memref<1x1x8xf32, #tpu.memory_space<vmem>>, %arg5: memref<1x1x32xf32, #tpu.memory_space<vmem>>, %arg6: memref<2x32x32xbf16, #tpu.memory_space<vmem>>, %arg7: memref<2x1x32xf32, #tpu.memory_space<vmem>>, %arg8: memref<2x32x32xbf16, #tpu.memory_space<vmem>>, %arg9: memref<2x1x32xf32, #tpu.memory_space<vmem>>, %arg10: memref<2x32x32xbf16, #tpu.memory_space<vmem>>, %arg11: memref<2x1x32xf32, #tpu.memory_space<vmem>>, %arg12: memref<2x32x32xbf16, #tpu.memory_space<vmem>>, %arg13: memref<2x1x32xf32, #tpu.memory_space<vmem>>, %arg14: memref<2x32x64xbf16, #tpu.memory_space<vmem>>, %arg15: memref<2x1x64xf32, #tpu.memory_space<vmem>>, %arg16: memref<2x64x32xbf16, #tpu.memory_space<vmem>>, %arg17: memref<2x1x32xf32, #tpu.memory_space<vmem>>, %arg18: memref<2x1x32xf32, #tpu.memory_space<vmem>>, %arg19: memref<2x1x32xf32, #tpu.memory_space<vmem>>, %arg20: memref<2x1x32xf32, #tpu.memory_space<vmem>>, %arg21: memref<2x1x32xf32, #tpu.memory_space<vmem>>, %arg22: memref<2x32x32xbf16, #tpu.memory_space<vmem>>, %arg23: memref<2x1x32xf32, #tpu.memory_space<vmem>>, %arg24: memref<2x32x32xbf16, #tpu.memory_space<vmem>>, %arg25: memref<2x1x32xf32, #tpu.memory_space<vmem>>, %arg26: memref<2x32x32xbf16, #tpu.memory_space<vmem>>, %arg27: memref<2x1x32xf32, #tpu.memory_space<vmem>>, %arg28: memref<2x32x32xbf16, #tpu.memory_space<vmem>>, %arg29: memref<2x1x32xf32, #tpu.memory_space<vmem>>, %arg30: memref<2x32x32xbf16, #tpu.memory_space<vmem>>, %arg31: memref<2x1x32xf32, #tpu.memory_space<vmem>>, %arg32: memref<2x32x32xbf16, #tpu.memory_space<vmem>>, %arg33: memref<2x1x32xf32, #tpu.memory_space<vmem>>, %arg34: memref<2x32x32xbf16, #tpu.memory_space<vmem>>, %arg35: memref<2x1x32xf32, #tpu.memory_space<vmem>>, %arg36: memref<2x32x32xbf16, #tpu.memory_space<vmem>>, %arg37: memref<2x1x32xf32, #tpu.memory_space<vmem>>, %arg38: memref<2x32x64xbf16, #tpu.memory_space<vmem>>, %arg39: memref<2x1x64xf32, #tpu.memory_space<vmem>>, %arg40: memref<2x64x32xbf16, #tpu.memory_space<vmem>>, %arg41: memref<2x1x32xf32, #tpu.memory_space<vmem>>, %arg42: memref<2x1x32xf32, #tpu.memory_space<vmem>>, %arg43: memref<2x1x32xf32, #tpu.memory_space<vmem>>, %arg44: memref<2x1x32xf32, #tpu.memory_space<vmem>>, %arg45: memref<2x1x32xf32, #tpu.memory_space<vmem>>, %arg46: memref<2x1x32xf32, #tpu.memory_space<vmem>>, %arg47: memref<2x1x32xf32, #tpu.memory_space<vmem>>, %arg48: memref<1x32xf32, #tpu.memory_space<vmem>>, %arg49: memref<1x32xf32, #tpu.memory_space<vmem>>, %arg50: memref<1x32xf32, #tpu.memory_space<vmem>>, %arg51: memref<1x32xf32, #tpu.memory_space<vmem>>, %arg52: memref<32x128xbf16, #tpu.memory_space<vmem>>, %arg53: memref<1x128xf32, #tpu.memory_space<vmem>>, %arg54: memref<1x8x128xf32, #tpu.memory_space<vmem>>) attributes {dimension_semantics = [#tpu.dimension_semantics<parallel>], iteration_bounds = array<i64: 2>, scalar_prefetch = 0 : i64, scratch_operands = 0 : i64, tpu.core_type = #tpu.core_type<tc>, window_params = [{transform_indices = @transform_0, window_bounds = array<i64: 1, 8, 32>}, {transform_indices = @transform_1, window_bounds = array<i64: 1, 8, 32>}, {transform_indices = @transform_2, window_bounds = array<i64: 1, 1, 8>}, {transform_indices = @transform_3, window_bounds = array<i64: 1, 1, 8>}, {transform_indices = @transform_4, window_bounds = array<i64: 1, 1, 32>}, {pipeline_mode = #tpu.pipeline_mode<synchronous>, transform_indices = @transform_5, window_bounds = array<i64: 2, 32, 32>}, {pipeline_mode = #tpu.pipeline_mode<synchronous>, transform_indices = @transform_6, window_bounds = array<i64: 2, 1, 32>}, {pipeline_mode = #tpu.pipeline_mode<synchronous>, transform_indices = @transform_7, window_bounds = array<i64: 2, 32, 32>}, {pipeline_mode = #tpu.pipeline_mode<synchronous>, transform_indices = @transform_8, window_bounds = array<i64: 2, 1, 32>}, {pipeline_mode = #tpu.pipeline_mode<synchronous>, transform_indices = @transform_9, window_bounds = array<i64: 2, 32, 32>}, {pipeline_mode = #tpu.pipeline_mode<synchronous>, transform_indices = @transform_10, window_bounds = array<i64: 2, 1, 32>}, {pipeline_mode = #tpu.pipeline_mode<synchronous>, transform_indices = @transform_11, window_bounds = array<i64: 2, 32, 32>}, {pipeline_mode = #tpu.pipeline_mode<synchronous>, transform_indices = @transform_12, window_bounds = array<i64: 2, 1, 32>}, {pipeline_mode = #tpu.pipeline_mode<synchronous>, transform_indices = @transform_13, window_bounds = array<i64: 2, 32, 64>}, {pipeline_mode = #tpu.pipeline_mode<synchronous>, transform_indices = @transform_14, window_bounds = array<i64: 2, 1, 64>}, {pipeline_mode = #tpu.pipeline_mode<synchronous>, transform_indices = @transform_15, window_bounds = array<i64: 2, 64, 32>}, {pipeline_mode = #tpu.pipeline_mode<synchronous>, transform_indices = @transform_16, window_bounds = array<i64: 2, 1, 32>}, {pipeline_mode = #tpu.pipeline_mode<synchronous>, transform_indices = @transform_17, window_bounds = array<i64: 2, 1, 32>}, {pipeline_mode = #tpu.pipeline_mode<synchronous>, transform_indices = @transform_18, window_bounds = array<i64: 2, 1, 32>}, {pipeline_mode = #tpu.pipeline_mode<synchronous>, transform_indices = @transform_19, window_bounds = array<i64: 2, 1, 32>}, {pipeline_mode = #tpu.pipeline_mode<synchronous>, transform_indices = @transform_20, window_bounds = array<i64: 2, 1, 32>}, {pipeline_mode = #tpu.pipeline_mode<synchronous>, transform_indices = @transform_21, window_bounds = array<i64: 2, 32, 32>}, {pipeline_mode = #tpu.pipeline_mode<synchronous>, transform_indices = @transform_22, window_bounds = array<i64: 2, 1, 32>}, {pipeline_mode = #tpu.pipeline_mode<synchronous>, transform_indices = @transform_23, window_bounds = array<i64: 2, 32, 32>}, {pipeline_mode = #tpu.pipeline_mode<synchronous>, transform_indices = @transform_24, window_bounds = array<i64: 2, 1, 32>}, {pipeline_mode = #tpu.pipeline_mode<synchronous>, transform_indices = @transform_25, window_bounds = array<i64: 2, 32, 32>}, {pipeline_mode = #tpu.pipeline_mode<synchronous>, transform_indices = @transform_26, window_bounds = array<i64: 2, 1, 32>}, {pipeline_mode = #tpu.pipeline_mode<synchronous>, transform_indices = @transform_27, window_bounds = array<i64: 2, 32, 32>}, {pipeline_mode = #tpu.pipeline_mode<synchronous>, transform_indices = @transform_28, window_bounds = array<i64: 2, 1, 32>}, {pipeline_mode = #tpu.pipeline_mode<synchronous>, transform_indices = @transform_29, window_bounds = array<i64: 2, 32, 32>}, {pipeline_mode = #tpu.pipeline_mode<synchronous>, transform_indices = @transform_30, window_bounds = array<i64: 2, 1, 32>}, {pipeline_mode = #tpu.pipeline_mode<synchronous>, transform_indices = @transform_31, window_bounds = array<i64: 2, 32, 32>}, {pipeline_mode = #tpu.pipeline_mode<synchronous>, transform_indices = @transform_32, window_bounds = array<i64: 2, 1, 32>}, {pipeline_mode = #tpu.pipeline_mode<synchronous>, transform_indices = @transform_33, window_bounds = array<i64: 2, 32, 32>}, {pipeline_mode = #tpu.pipeline_mode<synchronous>, transform_indices = @transform_34, window_bounds = array<i64: 2, 1, 32>}, {pipeline_mode = #tpu.pipeline_mode<synchronous>, transform_indices = @transform_35, window_bounds = array<i64: 2, 32, 32>}, {pipeline_mode = #tpu.pipeline_mode<synchronous>, transform_indices = @transform_36, window_bounds = array<i64: 2, 1, 32>}, {pipeline_mode = #tpu.pipeline_mode<synchronous>, transform_indices = @transform_37, window_bounds = array<i64: 2, 32, 64>}, {pipeline_mode = #tpu.pipeline_mode<synchronous>, transform_indices = @transform_38, window_bounds = array<i64: 2, 1, 64>}, {pipeline_mode = #tpu.pipeline_mode<synchronous>, transform_indices = @transform_39, window_bounds = array<i64: 2, 64, 32>}, {pipeline_mode = #tpu.pipeline_mode<synchronous>, transform_indices = @transform_40, window_bounds = array<i64: 2, 1, 32>}, {pipeline_mode = #tpu.pipeline_mode<synchronous>, transform_indices = @transform_41, window_bounds = array<i64: 2, 1, 32>}, {pipeline_mode = #tpu.pipeline_mode<synchronous>, transform_indices = @transform_42, window_bounds = array<i64: 2, 1, 32>}, {pipeline_mode = #tpu.pipeline_mode<synchronous>, transform_indices = @transform_43, window_bounds = array<i64: 2, 1, 32>}, {pipeline_mode = #tpu.pipeline_mode<synchronous>, transform_indices = @transform_44, window_bounds = array<i64: 2, 1, 32>}, {pipeline_mode = #tpu.pipeline_mode<synchronous>, transform_indices = @transform_45, window_bounds = array<i64: 2, 1, 32>}, {pipeline_mode = #tpu.pipeline_mode<synchronous>, transform_indices = @transform_46, window_bounds = array<i64: 2, 1, 32>}, {pipeline_mode = #tpu.pipeline_mode<synchronous>, transform_indices = @transform_47, window_bounds = array<i64: 1, 32>}, {pipeline_mode = #tpu.pipeline_mode<synchronous>, transform_indices = @transform_48, window_bounds = array<i64: 1, 32>}, {pipeline_mode = #tpu.pipeline_mode<synchronous>, transform_indices = @transform_49, window_bounds = array<i64: 1, 32>}, {pipeline_mode = #tpu.pipeline_mode<synchronous>, transform_indices = @transform_50, window_bounds = array<i64: 1, 32>}, {pipeline_mode = #tpu.pipeline_mode<synchronous>, transform_indices = @transform_51, window_bounds = array<i64: 32, 128>}, {pipeline_mode = #tpu.pipeline_mode<synchronous>, transform_indices = @transform_52, window_bounds = array<i64: 1, 128>}, {transform_indices = @transform_53, window_bounds = array<i64: 1, 8, 128>}]} {
    %c0 = arith.constant 0 : index
    %c0_0 = arith.constant 0 : index
    %c0_1 = arith.constant 0 : index
    %0 = vector.load %arg5[%c0, %c0_0, %c0_1] : memref<1x1x32xf32, #tpu.memory_space<vmem>>, vector<1x1x32xf32>
    %1 = vector.shape_cast %0 : vector<1x1x32xf32> to vector<1x32xf32>
    %c0_2 = arith.constant 0 : index
    %c0_3 = arith.constant 0 : index
    %c0_4 = arith.constant 0 : index
    %2 = vector.load %arg3[%c0_2, %c0_3, %c0_4] : memref<1x1x8xf32, #tpu.memory_space<vmem>>, vector<1x1x8xf32>
    %3 = vector.shape_cast %2 : vector<1x1x8xf32> to vector<1x8xf32>
    %c0_5 = arith.constant 0 : index
    %c0_6 = arith.constant 0 : index
    %c0_7 = arith.constant 0 : index
    %4 = vector.load %arg4[%c0_5, %c0_6, %c0_7] : memref<1x1x8xf32, #tpu.memory_space<vmem>>, vector<1x1x8xf32>
    %5 = vector.shape_cast %4 : vector<1x1x8xf32> to vector<1x8xf32>
    %6 = tpu.iota {dimensions = array<i32: 0>} : vector<8x8xi32>
    %7 = tpu.iota {dimensions = array<i32: 1>} : vector<8x8xi32>
    %8 = arith.cmpi sgt, %7, %6 : vector<8x8xi32>
    %cst = arith.constant -1.000000e+30 : f32
    %cst_8 = arith.constant 0.000000e+00 : f32
    %9 = vector.broadcast %cst : f32 to vector<8x8xf32>
    %10 = vector.broadcast %cst_8 : f32 to vector<8x8xf32>
    %11 = arith.select %8, %9, %10 : vector<8x8xi1>, vector<8x8xf32>
    %12 = vector.broadcast %5 : vector<1x8xf32> to vector<8x8xf32>
    %13 = arith.addf %11, %12 : vector<8x8xf32>
    %c0_9 = arith.constant 0 : index
    %c0_10 = arith.constant 0 : index
    %c0_11 = arith.constant 0 : index
    %14 = vector.load %arg1[%c0_9, %c0_10, %c0_11] : memref<1x8x32xf32, #tpu.memory_space<vmem>>, vector<1x8x32xf32>
    %15 = vector.shape_cast %14 : vector<1x8x32xf32> to vector<8x32xf32>
    %cst_12 = arith.constant 5.65685415 : f32
    %16 = vector.broadcast %cst_12 : f32 to vector<8x32xf32>
    %17 = arith.mulf %15, %16 : vector<8x32xf32>
    %18 = vector.broadcast %1 : vector<1x32xf32> to vector<8x32xf32>
    %19 = arith.addf %17, %18 : vector<8x32xf32>
    %c0_13 = arith.constant 0 : index
    %c0_14 = arith.constant 0 : index
    %c0_15 = arith.constant 0 : index
    %20 = vector.load %arg2[%c0_13, %c0_14, %c0_15] : memref<1x8x32xf32, #tpu.memory_space<vmem>>, vector<1x8x32xf32>
    %21 = vector.shape_cast %20 : vector<1x8x32xf32> to vector<8x32xf32>
    %cst_16 = arith.constant 5.65685415 : f32
    %22 = vector.broadcast %cst_16 : f32 to vector<8x32xf32>
    %23 = arith.mulf %21, %22 : vector<8x32xf32>
    %24 = vector.broadcast %1 : vector<1x32xf32> to vector<8x32xf32>
    %25 = arith.addf %23, %24 : vector<8x32xf32>
    %c0_17 = arith.constant 0 : index
    %c0_18 = arith.constant 0 : index
    %c0_19 = arith.constant 0 : index
    %26 = vector.load %arg6[%c0_17, %c0_18, %c0_19] : memref<2x32x32xbf16, #tpu.memory_space<vmem>>, vector<1x32x32xbf16>
    %27 = vector.shape_cast %26 : vector<1x32x32xbf16> to vector<32x32xbf16>
    %c0_20 = arith.constant 0 : index
    %c0_21 = arith.constant 0 : index
    %c0_22 = arith.constant 0 : index
    %28 = vector.load %arg7[%c0_20, %c0_21, %c0_22] : memref<2x1x32xf32, #tpu.memory_space<vmem>>, vector<1x1x32xf32>
    %29 = vector.shape_cast %28 : vector<1x1x32xf32> to vector<1x32xf32>
    %30 = arith.truncf %19 : vector<8x32xf32> to vector<8x32xbf16>
    %cst_23 = arith.constant dense<0.000000e+00> : vector<8x32xf32>
    %31 = tpu.matmul %30, %27, %cst_23 {dimension_numbers = #tpu.dot_dimension_numbers<[1], [0], [0], [1], [0, 0, 1, 1], [], []>} : vector<8x32xbf16>, vector<32x32xbf16>, vector<8x32xf32> -> vector<8x32xf32>
    %32 = vector.broadcast %29 : vector<1x32xf32> to vector<8x32xf32>
    %33 = arith.addf %31, %32 : vector<8x32xf32>
    %c0_24 = arith.constant 0 : index
    %c0_25 = arith.constant 0 : index
    %c0_26 = arith.constant 0 : index
    %34 = vector.load %arg8[%c0_24, %c0_25, %c0_26] : memref<2x32x32xbf16, #tpu.memory_space<vmem>>, vector<1x32x32xbf16>
    %35 = vector.shape_cast %34 : vector<1x32x32xbf16> to vector<32x32xbf16>
    %c0_27 = arith.constant 0 : index
    %c0_28 = arith.constant 0 : index
    %c0_29 = arith.constant 0 : index
    %36 = vector.load %arg9[%c0_27, %c0_28, %c0_29] : memref<2x1x32xf32, #tpu.memory_space<vmem>>, vector<1x1x32xf32>
    %37 = vector.shape_cast %36 : vector<1x1x32xf32> to vector<1x32xf32>
    %38 = arith.truncf %19 : vector<8x32xf32> to vector<8x32xbf16>
    %cst_30 = arith.constant dense<0.000000e+00> : vector<8x32xf32>
    %39 = tpu.matmul %38, %35, %cst_30 {dimension_numbers = #tpu.dot_dimension_numbers<[1], [0], [0], [1], [0, 0, 1, 1], [], []>} : vector<8x32xbf16>, vector<32x32xbf16>, vector<8x32xf32> -> vector<8x32xf32>
    %40 = vector.broadcast %37 : vector<1x32xf32> to vector<8x32xf32>
    %41 = arith.addf %39, %40 : vector<8x32xf32>
    %c0_31 = arith.constant 0 : index
    %c0_32 = arith.constant 0 : index
    %c0_33 = arith.constant 0 : index
    %42 = vector.load %arg10[%c0_31, %c0_32, %c0_33] : memref<2x32x32xbf16, #tpu.memory_space<vmem>>, vector<1x32x32xbf16>
    %43 = vector.shape_cast %42 : vector<1x32x32xbf16> to vector<32x32xbf16>
    %c0_34 = arith.constant 0 : index
    %c0_35 = arith.constant 0 : index
    %c0_36 = arith.constant 0 : index
    %44 = vector.load %arg11[%c0_34, %c0_35, %c0_36] : memref<2x1x32xf32, #tpu.memory_space<vmem>>, vector<1x1x32xf32>
    %45 = vector.shape_cast %44 : vector<1x1x32xf32> to vector<1x32xf32>
    %46 = arith.truncf %19 : vector<8x32xf32> to vector<8x32xbf16>
    %cst_37 = arith.constant dense<0.000000e+00> : vector<8x32xf32>
    %47 = tpu.matmul %46, %43, %cst_37 {dimension_numbers = #tpu.dot_dimension_numbers<[1], [0], [0], [1], [0, 0, 1, 1], [], []>} : vector<8x32xbf16>, vector<32x32xbf16>, vector<8x32xf32> -> vector<8x32xf32>
    %48 = vector.broadcast %45 : vector<1x32xf32> to vector<8x32xf32>
    %49 = arith.addf %47, %48 : vector<8x32xf32>
    %50 = arith.truncf %33 : vector<8x32xf32> to vector<8x32xbf16>
    %51 = vector.shape_cast %50 : vector<8x32xbf16> to vector<8x4x8xbf16>
    %52 = arith.truncf %41 : vector<8x32xf32> to vector<8x32xbf16>
    %53 = vector.shape_cast %52 : vector<8x32xbf16> to vector<8x4x8xbf16>
    %54 = arith.truncf %49 : vector<8x32xf32> to vector<8x32xbf16>
    %55 = vector.shape_cast %54 : vector<8x32xbf16> to vector<8x4x8xbf16>
    "tpu.trace_start"() <{level = 10 : i32, message = "qhd,khd->hqk"}> : () -> ()
    %cst_38 = arith.constant dense<0.000000e+00> : vector<4x8x8xf32>
    %56 = tpu.matmul %51, %53, %cst_38 {dimension_numbers = #tpu.dot_dimension_numbers<[2], [2], [0], [0], [0, 1, 0, 0, 1, 0], [1], [1]>} : vector<8x4x8xbf16>, vector<8x4x8xbf16>, vector<4x8x8xf32> -> vector<4x8x8xf32>
    "tpu.trace_stop"() : () -> ()
    %cst_39 = arith.constant 0.353553385 : f32
    %57 = vector.broadcast %cst_39 : f32 to vector<4x8x8xf32>
    %58 = arith.mulf %56, %57 : vector<4x8x8xf32>
    %59 = vector.shape_cast %3 : vector<1x8xf32> to vector<1x1x8xf32>
    %60 = vector.broadcast %59 : vector<1x1x8xf32> to vector<4x8x8xf32>
    %61 = arith.addf %58, %60 : vector<4x8x8xf32>
    %cst_40 = arith.constant dense<0xFF800000> : vector<4x8xf32>
    %62 = vector.multi_reduction <maximumf>, %61, %cst_40 [2] : vector<4x8x8xf32> to vector<4x8xf32>
    %63 = vector.shape_cast %62 : vector<4x8xf32> to vector<4x8x1xf32>
    %64 = vector.broadcast %63 : vector<4x8x1xf32> to vector<4x8x8xf32>
    %65 = arith.subf %61, %64 : vector<4x8x8xf32>
    %66 = math.exp %65 : vector<4x8x8xf32>
    %cst_41 = arith.constant dense<0.000000e+00> : vector<4x8xf32>
    %67 = vector.multi_reduction <add>, %66, %cst_41 [2] : vector<4x8x8xf32> to vector<4x8xf32>
    %68 = vector.shape_cast %67 : vector<4x8xf32> to vector<4x8x1xf32>
    %69 = tpu.reciprocal %68 {approx = true} : vector<4x8x1xf32> -> vector<4x8x1xf32>
    %70 = vector.broadcast %69 : vector<4x8x1xf32> to vector<4x8x8xf32>
    %71 = arith.mulf %66, %70 : vector<4x8x8xf32>
    %72 = arith.truncf %71 : vector<4x8x8xf32> to vector<4x8x8xbf16>
    "tpu.trace_start"() <{level = 10 : i32, message = "hqk,khd->qhd"}> : () -> ()
    %cst_42 = arith.constant dense<0.000000e+00> : vector<4x8x8xf32>
    %73 = tpu.matmul %55, %72, %cst_42 {dimension_numbers = #tpu.dot_dimension_numbers<[0], [2], [2], [1], [0, 1, 0, 2, 1, 1], [1], [0]>} : vector<8x4x8xbf16>, vector<4x8x8xbf16>, vector<4x8x8xf32> -> vector<4x8x8xf32>
    %74 = tpu.transpose %73, [2, 0, 1] : vector<4x8x8xf32> -> vector<8x4x8xf32>
    "tpu.trace_stop"() : () -> ()
    %75 = vector.shape_cast %74 : vector<8x4x8xf32> to vector<8x32xf32>
    %c0_43 = arith.constant 0 : index
    %c0_44 = arith.constant 0 : index
    %c0_45 = arith.constant 0 : index
    %76 = vector.load %arg12[%c0_43, %c0_44, %c0_45] : memref<2x32x32xbf16, #tpu.memory_space<vmem>>, vector<1x32x32xbf16>
    %77 = vector.shape_cast %76 : vector<1x32x32xbf16> to vector<32x32xbf16>
    %c0_46 = arith.constant 0 : index
    %c0_47 = arith.constant 0 : index
    %c0_48 = arith.constant 0 : index
    %78 = vector.load %arg13[%c0_46, %c0_47, %c0_48] : memref<2x1x32xf32, #tpu.memory_space<vmem>>, vector<1x1x32xf32>
    %79 = vector.shape_cast %78 : vector<1x1x32xf32> to vector<1x32xf32>
    %80 = arith.truncf %75 : vector<8x32xf32> to vector<8x32xbf16>
    %cst_49 = arith.constant dense<0.000000e+00> : vector<8x32xf32>
    %81 = tpu.matmul %80, %77, %cst_49 {dimension_numbers = #tpu.dot_dimension_numbers<[1], [0], [0], [1], [0, 0, 1, 1], [], []>} : vector<8x32xbf16>, vector<32x32xbf16>, vector<8x32xf32> -> vector<8x32xf32>
    %82 = vector.broadcast %79 : vector<1x32xf32> to vector<8x32xf32>
    %83 = arith.addf %81, %82 : vector<8x32xf32>
    %84 = arith.addf %19, %83 : vector<8x32xf32>
    %c0_50 = arith.constant 0 : index
    %c0_51 = arith.constant 0 : index
    %c0_52 = arith.constant 0 : index
    %85 = vector.load %arg18[%c0_50, %c0_51, %c0_52] : memref<2x1x32xf32, #tpu.memory_space<vmem>>, vector<1x1x32xf32>
    %86 = vector.shape_cast %85 : vector<1x1x32xf32> to vector<1x32xf32>
    %c0_53 = arith.constant 0 : index
    %c0_54 = arith.constant 0 : index
    %c0_55 = arith.constant 0 : index
    %87 = vector.load %arg19[%c0_53, %c0_54, %c0_55] : memref<2x1x32xf32, #tpu.memory_space<vmem>>, vector<1x1x32xf32>
    %88 = vector.shape_cast %87 : vector<1x1x32xf32> to vector<1x32xf32>
    %cst_56 = arith.constant dense<0.000000e+00> : vector<8xf32>
    %89 = vector.multi_reduction <add>, %84, %cst_56 [1] : vector<8x32xf32> to vector<8xf32>
    %90 = vector.shape_cast %89 : vector<8xf32> to vector<8x1xf32>
    %cst_57 = arith.constant 3.200000e+01 : f32
    %91 = vector.broadcast %cst_57 : f32 to vector<8x1xf32>
    %92 = arith.divf %90, %91 : vector<8x1xf32>
    %93 = vector.broadcast %92 : vector<8x1xf32> to vector<8x32xf32>
    %94 = arith.subf %84, %93 : vector<8x32xf32>
    %95 = arith.mulf %94, %94 : vector<8x32xf32>
    %cst_58 = arith.constant dense<0.000000e+00> : vector<8xf32>
    %96 = vector.multi_reduction <add>, %95, %cst_58 [1] : vector<8x32xf32> to vector<8xf32>
    %97 = vector.shape_cast %96 : vector<8xf32> to vector<8x1xf32>
    %cst_59 = arith.constant 3.200000e+01 : f32
    %98 = vector.broadcast %cst_59 : f32 to vector<8x1xf32>
    %99 = arith.divf %97, %98 : vector<8x1xf32>
    %cst_60 = arith.constant 9.99999974E-6 : f32
    %100 = vector.broadcast %cst_60 : f32 to vector<8x1xf32>
    %101 = arith.addf %99, %100 : vector<8x1xf32>
    %102 = math.rsqrt %101 : vector<8x1xf32>
    %103 = vector.broadcast %102 : vector<8x1xf32> to vector<8x32xf32>
    %104 = arith.mulf %94, %103 : vector<8x32xf32>
    %105 = vector.broadcast %86 : vector<1x32xf32> to vector<8x32xf32>
    %106 = arith.mulf %104, %105 : vector<8x32xf32>
    %107 = vector.broadcast %88 : vector<1x32xf32> to vector<8x32xf32>
    %108 = arith.addf %106, %107 : vector<8x32xf32>
    %c0_61 = arith.constant 0 : index
    %c0_62 = arith.constant 0 : index
    %c0_63 = arith.constant 0 : index
    %109 = vector.load %arg14[%c0_61, %c0_62, %c0_63] : memref<2x32x64xbf16, #tpu.memory_space<vmem>>, vector<1x32x64xbf16>
    %110 = vector.shape_cast %109 : vector<1x32x64xbf16> to vector<32x64xbf16>
    %c0_64 = arith.constant 0 : index
    %c0_65 = arith.constant 0 : index
    %c0_66 = arith.constant 0 : index
    %111 = vector.load %arg15[%c0_64, %c0_65, %c0_66] : memref<2x1x64xf32, #tpu.memory_space<vmem>>, vector<1x1x64xf32>
    %112 = vector.shape_cast %111 : vector<1x1x64xf32> to vector<1x64xf32>
    %113 = arith.truncf %108 : vector<8x32xf32> to vector<8x32xbf16>
    %cst_67 = arith.constant dense<0.000000e+00> : vector<8x64xf32>
    %114 = tpu.matmul %113, %110, %cst_67 {dimension_numbers = #tpu.dot_dimension_numbers<[1], [0], [0], [1], [0, 0, 1, 1], [], []>} : vector<8x32xbf16>, vector<32x64xbf16>, vector<8x64xf32> -> vector<8x64xf32>
    %115 = vector.broadcast %112 : vector<1x64xf32> to vector<8x64xf32>
    %116 = arith.addf %114, %115 : vector<8x64xf32>
    %cst_68 = arith.constant 0.000000e+00 : f32
    %117 = vector.broadcast %cst_68 : f32 to vector<8x64xf32>
    %118 = arith.maximumf %116, %117 : vector<8x64xf32>
    %c0_69 = arith.constant 0 : index
    %c0_70 = arith.constant 0 : index
    %c0_71 = arith.constant 0 : index
    %119 = vector.load %arg16[%c0_69, %c0_70, %c0_71] : memref<2x64x32xbf16, #tpu.memory_space<vmem>>, vector<1x64x32xbf16>
    %120 = vector.shape_cast %119 : vector<1x64x32xbf16> to vector<64x32xbf16>
    %c0_72 = arith.constant 0 : index
    %c0_73 = arith.constant 0 : index
    %c0_74 = arith.constant 0 : index
    %121 = vector.load %arg17[%c0_72, %c0_73, %c0_74] : memref<2x1x32xf32, #tpu.memory_space<vmem>>, vector<1x1x32xf32>
    %122 = vector.shape_cast %121 : vector<1x1x32xf32> to vector<1x32xf32>
    %123 = arith.truncf %118 : vector<8x64xf32> to vector<8x64xbf16>
    %cst_75 = arith.constant dense<0.000000e+00> : vector<8x32xf32>
    %124 = tpu.matmul %123, %120, %cst_75 {dimension_numbers = #tpu.dot_dimension_numbers<[1], [0], [0], [1], [0, 0, 1, 1], [], []>} : vector<8x64xbf16>, vector<64x32xbf16>, vector<8x32xf32> -> vector<8x32xf32>
    %125 = vector.broadcast %122 : vector<1x32xf32> to vector<8x32xf32>
    %126 = arith.addf %124, %125 : vector<8x32xf32>
    %127 = arith.addf %108, %126 : vector<8x32xf32>
    %c0_76 = arith.constant 0 : index
    %c0_77 = arith.constant 0 : index
    %c0_78 = arith.constant 0 : index
    %128 = vector.load %arg20[%c0_76, %c0_77, %c0_78] : memref<2x1x32xf32, #tpu.memory_space<vmem>>, vector<1x1x32xf32>
    %129 = vector.shape_cast %128 : vector<1x1x32xf32> to vector<1x32xf32>
    %c0_79 = arith.constant 0 : index
    %c0_80 = arith.constant 0 : index
    %c0_81 = arith.constant 0 : index
    %130 = vector.load %arg21[%c0_79, %c0_80, %c0_81] : memref<2x1x32xf32, #tpu.memory_space<vmem>>, vector<1x1x32xf32>
    %131 = vector.shape_cast %130 : vector<1x1x32xf32> to vector<1x32xf32>
    %cst_82 = arith.constant dense<0.000000e+00> : vector<8xf32>
    %132 = vector.multi_reduction <add>, %127, %cst_82 [1] : vector<8x32xf32> to vector<8xf32>
    %133 = vector.shape_cast %132 : vector<8xf32> to vector<8x1xf32>
    %cst_83 = arith.constant 3.200000e+01 : f32
    %134 = vector.broadcast %cst_83 : f32 to vector<8x1xf32>
    %135 = arith.divf %133, %134 : vector<8x1xf32>
    %136 = vector.broadcast %135 : vector<8x1xf32> to vector<8x32xf32>
    %137 = arith.subf %127, %136 : vector<8x32xf32>
    %138 = arith.mulf %137, %137 : vector<8x32xf32>
    %cst_84 = arith.constant dense<0.000000e+00> : vector<8xf32>
    %139 = vector.multi_reduction <add>, %138, %cst_84 [1] : vector<8x32xf32> to vector<8xf32>
    %140 = vector.shape_cast %139 : vector<8xf32> to vector<8x1xf32>
    %cst_85 = arith.constant 3.200000e+01 : f32
    %141 = vector.broadcast %cst_85 : f32 to vector<8x1xf32>
    %142 = arith.divf %140, %141 : vector<8x1xf32>
    %cst_86 = arith.constant 9.99999974E-6 : f32
    %143 = vector.broadcast %cst_86 : f32 to vector<8x1xf32>
    %144 = arith.addf %142, %143 : vector<8x1xf32>
    %145 = math.rsqrt %144 : vector<8x1xf32>
    %146 = vector.broadcast %145 : vector<8x1xf32> to vector<8x32xf32>
    %147 = arith.mulf %137, %146 : vector<8x32xf32>
    %148 = vector.broadcast %129 : vector<1x32xf32> to vector<8x32xf32>
    %149 = arith.mulf %147, %148 : vector<8x32xf32>
    %150 = vector.broadcast %131 : vector<1x32xf32> to vector<8x32xf32>
    %151 = arith.addf %149, %150 : vector<8x32xf32>
    %c1 = arith.constant 1 : index
    %c0_87 = arith.constant 0 : index
    %c0_88 = arith.constant 0 : index
    %152 = vector.load %arg6[%c1, %c0_87, %c0_88] : memref<2x32x32xbf16, #tpu.memory_space<vmem>>, vector<1x32x32xbf16>
    %153 = vector.shape_cast %152 : vector<1x32x32xbf16> to vector<32x32xbf16>
    %c1_89 = arith.constant 1 : index
    %c0_90 = arith.constant 0 : index
    %c0_91 = arith.constant 0 : index
    %154 = vector.load %arg7[%c1_89, %c0_90, %c0_91] : memref<2x1x32xf32, #tpu.memory_space<vmem>>, vector<1x1x32xf32>
    %155 = vector.shape_cast %154 : vector<1x1x32xf32> to vector<1x32xf32>
    %156 = arith.truncf %151 : vector<8x32xf32> to vector<8x32xbf16>
    %cst_92 = arith.constant dense<0.000000e+00> : vector<8x32xf32>
    %157 = tpu.matmul %156, %153, %cst_92 {dimension_numbers = #tpu.dot_dimension_numbers<[1], [0], [0], [1], [0, 0, 1, 1], [], []>} : vector<8x32xbf16>, vector<32x32xbf16>, vector<8x32xf32> -> vector<8x32xf32>
    %158 = vector.broadcast %155 : vector<1x32xf32> to vector<8x32xf32>
    %159 = arith.addf %157, %158 : vector<8x32xf32>
    %c1_93 = arith.constant 1 : index
    %c0_94 = arith.constant 0 : index
    %c0_95 = arith.constant 0 : index
    %160 = vector.load %arg8[%c1_93, %c0_94, %c0_95] : memref<2x32x32xbf16, #tpu.memory_space<vmem>>, vector<1x32x32xbf16>
    %161 = vector.shape_cast %160 : vector<1x32x32xbf16> to vector<32x32xbf16>
    %c1_96 = arith.constant 1 : index
    %c0_97 = arith.constant 0 : index
    %c0_98 = arith.constant 0 : index
    %162 = vector.load %arg9[%c1_96, %c0_97, %c0_98] : memref<2x1x32xf32, #tpu.memory_space<vmem>>, vector<1x1x32xf32>
    %163 = vector.shape_cast %162 : vector<1x1x32xf32> to vector<1x32xf32>
    %164 = arith.truncf %151 : vector<8x32xf32> to vector<8x32xbf16>
    %cst_99 = arith.constant dense<0.000000e+00> : vector<8x32xf32>
    %165 = tpu.matmul %164, %161, %cst_99 {dimension_numbers = #tpu.dot_dimension_numbers<[1], [0], [0], [1], [0, 0, 1, 1], [], []>} : vector<8x32xbf16>, vector<32x32xbf16>, vector<8x32xf32> -> vector<8x32xf32>
    %166 = vector.broadcast %163 : vector<1x32xf32> to vector<8x32xf32>
    %167 = arith.addf %165, %166 : vector<8x32xf32>
    %c1_100 = arith.constant 1 : index
    %c0_101 = arith.constant 0 : index
    %c0_102 = arith.constant 0 : index
    %168 = vector.load %arg10[%c1_100, %c0_101, %c0_102] : memref<2x32x32xbf16, #tpu.memory_space<vmem>>, vector<1x32x32xbf16>
    %169 = vector.shape_cast %168 : vector<1x32x32xbf16> to vector<32x32xbf16>
    %c1_103 = arith.constant 1 : index
    %c0_104 = arith.constant 0 : index
    %c0_105 = arith.constant 0 : index
    %170 = vector.load %arg11[%c1_103, %c0_104, %c0_105] : memref<2x1x32xf32, #tpu.memory_space<vmem>>, vector<1x1x32xf32>
    %171 = vector.shape_cast %170 : vector<1x1x32xf32> to vector<1x32xf32>
    %172 = arith.truncf %151 : vector<8x32xf32> to vector<8x32xbf16>
    %cst_106 = arith.constant dense<0.000000e+00> : vector<8x32xf32>
    %173 = tpu.matmul %172, %169, %cst_106 {dimension_numbers = #tpu.dot_dimension_numbers<[1], [0], [0], [1], [0, 0, 1, 1], [], []>} : vector<8x32xbf16>, vector<32x32xbf16>, vector<8x32xf32> -> vector<8x32xf32>
    %174 = vector.broadcast %171 : vector<1x32xf32> to vector<8x32xf32>
    %175 = arith.addf %173, %174 : vector<8x32xf32>
    %176 = arith.truncf %159 : vector<8x32xf32> to vector<8x32xbf16>
    %177 = vector.shape_cast %176 : vector<8x32xbf16> to vector<8x4x8xbf16>
    %178 = arith.truncf %167 : vector<8x32xf32> to vector<8x32xbf16>
    %179 = vector.shape_cast %178 : vector<8x32xbf16> to vector<8x4x8xbf16>
    %180 = arith.truncf %175 : vector<8x32xf32> to vector<8x32xbf16>
    %181 = vector.shape_cast %180 : vector<8x32xbf16> to vector<8x4x8xbf16>
    "tpu.trace_start"() <{level = 10 : i32, message = "qhd,khd->hqk"}> : () -> ()
    %cst_107 = arith.constant dense<0.000000e+00> : vector<4x8x8xf32>
    %182 = tpu.matmul %177, %179, %cst_107 {dimension_numbers = #tpu.dot_dimension_numbers<[2], [2], [0], [0], [0, 1, 0, 0, 1, 0], [1], [1]>} : vector<8x4x8xbf16>, vector<8x4x8xbf16>, vector<4x8x8xf32> -> vector<4x8x8xf32>
    "tpu.trace_stop"() : () -> ()
    %cst_108 = arith.constant 0.353553385 : f32
    %183 = vector.broadcast %cst_108 : f32 to vector<4x8x8xf32>
    %184 = arith.mulf %182, %183 : vector<4x8x8xf32>
    %185 = vector.shape_cast %3 : vector<1x8xf32> to vector<1x1x8xf32>
    %186 = vector.broadcast %185 : vector<1x1x8xf32> to vector<4x8x8xf32>
    %187 = arith.addf %184, %186 : vector<4x8x8xf32>
    %cst_109 = arith.constant dense<0xFF800000> : vector<4x8xf32>
    %188 = vector.multi_reduction <maximumf>, %187, %cst_109 [2] : vector<4x8x8xf32> to vector<4x8xf32>
    %189 = vector.shape_cast %188 : vector<4x8xf32> to vector<4x8x1xf32>
    %190 = vector.broadcast %189 : vector<4x8x1xf32> to vector<4x8x8xf32>
    %191 = arith.subf %187, %190 : vector<4x8x8xf32>
    %192 = math.exp %191 : vector<4x8x8xf32>
    %cst_110 = arith.constant dense<0.000000e+00> : vector<4x8xf32>
    %193 = vector.multi_reduction <add>, %192, %cst_110 [2] : vector<4x8x8xf32> to vector<4x8xf32>
    %194 = vector.shape_cast %193 : vector<4x8xf32> to vector<4x8x1xf32>
    %195 = tpu.reciprocal %194 {approx = true} : vector<4x8x1xf32> -> vector<4x8x1xf32>
    %196 = vector.broadcast %195 : vector<4x8x1xf32> to vector<4x8x8xf32>
    %197 = arith.mulf %192, %196 : vector<4x8x8xf32>
    %198 = arith.truncf %197 : vector<4x8x8xf32> to vector<4x8x8xbf16>
    "tpu.trace_start"() <{level = 10 : i32, message = "hqk,khd->qhd"}> : () -> ()
    %cst_111 = arith.constant dense<0.000000e+00> : vector<4x8x8xf32>
    %199 = tpu.matmul %181, %198, %cst_111 {dimension_numbers = #tpu.dot_dimension_numbers<[0], [2], [2], [1], [0, 1, 0, 2, 1, 1], [1], [0]>} : vector<8x4x8xbf16>, vector<4x8x8xbf16>, vector<4x8x8xf32> -> vector<4x8x8xf32>
    %200 = tpu.transpose %199, [2, 0, 1] : vector<4x8x8xf32> -> vector<8x4x8xf32>
    "tpu.trace_stop"() : () -> ()
    %201 = vector.shape_cast %200 : vector<8x4x8xf32> to vector<8x32xf32>
    %c1_112 = arith.constant 1 : index
    %c0_113 = arith.constant 0 : index
    %c0_114 = arith.constant 0 : index
    %202 = vector.load %arg12[%c1_112, %c0_113, %c0_114] : memref<2x32x32xbf16, #tpu.memory_space<vmem>>, vector<1x32x32xbf16>
    %203 = vector.shape_cast %202 : vector<1x32x32xbf16> to vector<32x32xbf16>
    %c1_115 = arith.constant 1 : index
    %c0_116 = arith.constant 0 : index
    %c0_117 = arith.constant 0 : index
    %204 = vector.load %arg13[%c1_115, %c0_116, %c0_117] : memref<2x1x32xf32, #tpu.memory_space<vmem>>, vector<1x1x32xf32>
    %205 = vector.shape_cast %204 : vector<1x1x32xf32> to vector<1x32xf32>
    %206 = arith.truncf %201 : vector<8x32xf32> to vector<8x32xbf16>
    %cst_118 = arith.constant dense<0.000000e+00> : vector<8x32xf32>
    %207 = tpu.matmul %206, %203, %cst_118 {dimension_numbers = #tpu.dot_dimension_numbers<[1], [0], [0], [1], [0, 0, 1, 1], [], []>} : vector<8x32xbf16>, vector<32x32xbf16>, vector<8x32xf32> -> vector<8x32xf32>
    %208 = vector.broadcast %205 : vector<1x32xf32> to vector<8x32xf32>
    %209 = arith.addf %207, %208 : vector<8x32xf32>
    %210 = arith.addf %151, %209 : vector<8x32xf32>
    %c1_119 = arith.constant 1 : index
    %c0_120 = arith.constant 0 : index
    %c0_121 = arith.constant 0 : index
    %211 = vector.load %arg18[%c1_119, %c0_120, %c0_121] : memref<2x1x32xf32, #tpu.memory_space<vmem>>, vector<1x1x32xf32>
    %212 = vector.shape_cast %211 : vector<1x1x32xf32> to vector<1x32xf32>
    %c1_122 = arith.constant 1 : index
    %c0_123 = arith.constant 0 : index
    %c0_124 = arith.constant 0 : index
    %213 = vector.load %arg19[%c1_122, %c0_123, %c0_124] : memref<2x1x32xf32, #tpu.memory_space<vmem>>, vector<1x1x32xf32>
    %214 = vector.shape_cast %213 : vector<1x1x32xf32> to vector<1x32xf32>
    %cst_125 = arith.constant dense<0.000000e+00> : vector<8xf32>
    %215 = vector.multi_reduction <add>, %210, %cst_125 [1] : vector<8x32xf32> to vector<8xf32>
    %216 = vector.shape_cast %215 : vector<8xf32> to vector<8x1xf32>
    %cst_126 = arith.constant 3.200000e+01 : f32
    %217 = vector.broadcast %cst_126 : f32 to vector<8x1xf32>
    %218 = arith.divf %216, %217 : vector<8x1xf32>
    %219 = vector.broadcast %218 : vector<8x1xf32> to vector<8x32xf32>
    %220 = arith.subf %210, %219 : vector<8x32xf32>
    %221 = arith.mulf %220, %220 : vector<8x32xf32>
    %cst_127 = arith.constant dense<0.000000e+00> : vector<8xf32>
    %222 = vector.multi_reduction <add>, %221, %cst_127 [1] : vector<8x32xf32> to vector<8xf32>
    %223 = vector.shape_cast %222 : vector<8xf32> to vector<8x1xf32>
    %cst_128 = arith.constant 3.200000e+01 : f32
    %224 = vector.broadcast %cst_128 : f32 to vector<8x1xf32>
    %225 = arith.divf %223, %224 : vector<8x1xf32>
    %cst_129 = arith.constant 9.99999974E-6 : f32
    %226 = vector.broadcast %cst_129 : f32 to vector<8x1xf32>
    %227 = arith.addf %225, %226 : vector<8x1xf32>
    %228 = math.rsqrt %227 : vector<8x1xf32>
    %229 = vector.broadcast %228 : vector<8x1xf32> to vector<8x32xf32>
    %230 = arith.mulf %220, %229 : vector<8x32xf32>
    %231 = vector.broadcast %212 : vector<1x32xf32> to vector<8x32xf32>
    %232 = arith.mulf %230, %231 : vector<8x32xf32>
    %233 = vector.broadcast %214 : vector<1x32xf32> to vector<8x32xf32>
    %234 = arith.addf %232, %233 : vector<8x32xf32>
    %c1_130 = arith.constant 1 : index
    %c0_131 = arith.constant 0 : index
    %c0_132 = arith.constant 0 : index
    %235 = vector.load %arg14[%c1_130, %c0_131, %c0_132] : memref<2x32x64xbf16, #tpu.memory_space<vmem>>, vector<1x32x64xbf16>
    %236 = vector.shape_cast %235 : vector<1x32x64xbf16> to vector<32x64xbf16>
    %c1_133 = arith.constant 1 : index
    %c0_134 = arith.constant 0 : index
    %c0_135 = arith.constant 0 : index
    %237 = vector.load %arg15[%c1_133, %c0_134, %c0_135] : memref<2x1x64xf32, #tpu.memory_space<vmem>>, vector<1x1x64xf32>
    %238 = vector.shape_cast %237 : vector<1x1x64xf32> to vector<1x64xf32>
    %239 = arith.truncf %234 : vector<8x32xf32> to vector<8x32xbf16>
    %cst_136 = arith.constant dense<0.000000e+00> : vector<8x64xf32>
    %240 = tpu.matmul %239, %236, %cst_136 {dimension_numbers = #tpu.dot_dimension_numbers<[1], [0], [0], [1], [0, 0, 1, 1], [], []>} : vector<8x32xbf16>, vector<32x64xbf16>, vector<8x64xf32> -> vector<8x64xf32>
    %241 = vector.broadcast %238 : vector<1x64xf32> to vector<8x64xf32>
    %242 = arith.addf %240, %241 : vector<8x64xf32>
    %cst_137 = arith.constant 0.000000e+00 : f32
    %243 = vector.broadcast %cst_137 : f32 to vector<8x64xf32>
    %244 = arith.maximumf %242, %243 : vector<8x64xf32>
    %c1_138 = arith.constant 1 : index
    %c0_139 = arith.constant 0 : index
    %c0_140 = arith.constant 0 : index
    %245 = vector.load %arg16[%c1_138, %c0_139, %c0_140] : memref<2x64x32xbf16, #tpu.memory_space<vmem>>, vector<1x64x32xbf16>
    %246 = vector.shape_cast %245 : vector<1x64x32xbf16> to vector<64x32xbf16>
    %c1_141 = arith.constant 1 : index
    %c0_142 = arith.constant 0 : index
    %c0_143 = arith.constant 0 : index
    %247 = vector.load %arg17[%c1_141, %c0_142, %c0_143] : memref<2x1x32xf32, #tpu.memory_space<vmem>>, vector<1x1x32xf32>
    %248 = vector.shape_cast %247 : vector<1x1x32xf32> to vector<1x32xf32>
    %249 = arith.truncf %244 : vector<8x64xf32> to vector<8x64xbf16>
    %cst_144 = arith.constant dense<0.000000e+00> : vector<8x32xf32>
    %250 = tpu.matmul %249, %246, %cst_144 {dimension_numbers = #tpu.dot_dimension_numbers<[1], [0], [0], [1], [0, 0, 1, 1], [], []>} : vector<8x64xbf16>, vector<64x32xbf16>, vector<8x32xf32> -> vector<8x32xf32>
    %251 = vector.broadcast %248 : vector<1x32xf32> to vector<8x32xf32>
    %252 = arith.addf %250, %251 : vector<8x32xf32>
    %253 = arith.addf %234, %252 : vector<8x32xf32>
    %c1_145 = arith.constant 1 : index
    %c0_146 = arith.constant 0 : index
    %c0_147 = arith.constant 0 : index
    %254 = vector.load %arg20[%c1_145, %c0_146, %c0_147] : memref<2x1x32xf32, #tpu.memory_space<vmem>>, vector<1x1x32xf32>
    %255 = vector.shape_cast %254 : vector<1x1x32xf32> to vector<1x32xf32>
    %c1_148 = arith.constant 1 : index
    %c0_149 = arith.constant 0 : index
    %c0_150 = arith.constant 0 : index
    %256 = vector.load %arg21[%c1_148, %c0_149, %c0_150] : memref<2x1x32xf32, #tpu.memory_space<vmem>>, vector<1x1x32xf32>
    %257 = vector.shape_cast %256 : vector<1x1x32xf32> to vector<1x32xf32>
    %cst_151 = arith.constant dense<0.000000e+00> : vector<8xf32>
    %258 = vector.multi_reduction <add>, %253, %cst_151 [1] : vector<8x32xf32> to vector<8xf32>
    %259 = vector.shape_cast %258 : vector<8xf32> to vector<8x1xf32>
    %cst_152 = arith.constant 3.200000e+01 : f32
    %260 = vector.broadcast %cst_152 : f32 to vector<8x1xf32>
    %261 = arith.divf %259, %260 : vector<8x1xf32>
    %262 = vector.broadcast %261 : vector<8x1xf32> to vector<8x32xf32>
    %263 = arith.subf %253, %262 : vector<8x32xf32>
    %264 = arith.mulf %263, %263 : vector<8x32xf32>
    %cst_153 = arith.constant dense<0.000000e+00> : vector<8xf32>
    %265 = vector.multi_reduction <add>, %264, %cst_153 [1] : vector<8x32xf32> to vector<8xf32>
    %266 = vector.shape_cast %265 : vector<8xf32> to vector<8x1xf32>
    %cst_154 = arith.constant 3.200000e+01 : f32
    %267 = vector.broadcast %cst_154 : f32 to vector<8x1xf32>
    %268 = arith.divf %266, %267 : vector<8x1xf32>
    %cst_155 = arith.constant 9.99999974E-6 : f32
    %269 = vector.broadcast %cst_155 : f32 to vector<8x1xf32>
    %270 = arith.addf %268, %269 : vector<8x1xf32>
    %271 = math.rsqrt %270 : vector<8x1xf32>
    %272 = vector.broadcast %271 : vector<8x1xf32> to vector<8x32xf32>
    %273 = arith.mulf %263, %272 : vector<8x32xf32>
    %274 = vector.broadcast %255 : vector<1x32xf32> to vector<8x32xf32>
    %275 = arith.mulf %273, %274 : vector<8x32xf32>
    %276 = vector.broadcast %257 : vector<1x32xf32> to vector<8x32xf32>
    %277 = arith.addf %275, %276 : vector<8x32xf32>
    %c0_156 = arith.constant 0 : index
    %c0_157 = arith.constant 0 : index
    %278 = vector.load %arg48[%c0_156, %c0_157] : memref<1x32xf32, #tpu.memory_space<vmem>>, vector<1x32xf32>
    %c0_158 = arith.constant 0 : index
    %c0_159 = arith.constant 0 : index
    %279 = vector.load %arg49[%c0_158, %c0_159] : memref<1x32xf32, #tpu.memory_space<vmem>>, vector<1x32xf32>
    %cst_160 = arith.constant dense<0.000000e+00> : vector<8xf32>
    %280 = vector.multi_reduction <add>, %277, %cst_160 [1] : vector<8x32xf32> to vector<8xf32>
    %281 = vector.shape_cast %280 : vector<8xf32> to vector<8x1xf32>
    %cst_161 = arith.constant 3.200000e+01 : f32
    %282 = vector.broadcast %cst_161 : f32 to vector<8x1xf32>
    %283 = arith.divf %281, %282 : vector<8x1xf32>
    %284 = vector.broadcast %283 : vector<8x1xf32> to vector<8x32xf32>
    %285 = arith.subf %277, %284 : vector<8x32xf32>
    %286 = arith.mulf %285, %285 : vector<8x32xf32>
    %cst_162 = arith.constant dense<0.000000e+00> : vector<8xf32>
    %287 = vector.multi_reduction <add>, %286, %cst_162 [1] : vector<8x32xf32> to vector<8xf32>
    %288 = vector.shape_cast %287 : vector<8xf32> to vector<8x1xf32>
    %cst_163 = arith.constant 3.200000e+01 : f32
    %289 = vector.broadcast %cst_163 : f32 to vector<8x1xf32>
    %290 = arith.divf %288, %289 : vector<8x1xf32>
    %cst_164 = arith.constant 9.99999974E-6 : f32
    %291 = vector.broadcast %cst_164 : f32 to vector<8x1xf32>
    %292 = arith.addf %290, %291 : vector<8x1xf32>
    %293 = math.rsqrt %292 : vector<8x1xf32>
    %294 = vector.broadcast %293 : vector<8x1xf32> to vector<8x32xf32>
    %295 = arith.mulf %285, %294 : vector<8x32xf32>
    %296 = vector.broadcast %278 : vector<1x32xf32> to vector<8x32xf32>
    %297 = arith.mulf %295, %296 : vector<8x32xf32>
    %298 = vector.broadcast %279 : vector<1x32xf32> to vector<8x32xf32>
    %299 = arith.addf %297, %298 : vector<8x32xf32>
    %c0_165 = arith.constant 0 : index
    %c0_166 = arith.constant 0 : index
    %c0_167 = arith.constant 0 : index
    %300 = vector.load %arg22[%c0_165, %c0_166, %c0_167] : memref<2x32x32xbf16, #tpu.memory_space<vmem>>, vector<1x32x32xbf16>
    %301 = vector.shape_cast %300 : vector<1x32x32xbf16> to vector<32x32xbf16>
    %c0_168 = arith.constant 0 : index
    %c0_169 = arith.constant 0 : index
    %c0_170 = arith.constant 0 : index
    %302 = vector.load %arg23[%c0_168, %c0_169, %c0_170] : memref<2x1x32xf32, #tpu.memory_space<vmem>>, vector<1x1x32xf32>
    %303 = vector.shape_cast %302 : vector<1x1x32xf32> to vector<1x32xf32>
    %304 = arith.truncf %25 : vector<8x32xf32> to vector<8x32xbf16>
    %cst_171 = arith.constant dense<0.000000e+00> : vector<8x32xf32>
    %305 = tpu.matmul %304, %301, %cst_171 {dimension_numbers = #tpu.dot_dimension_numbers<[1], [0], [0], [1], [0, 0, 1, 1], [], []>} : vector<8x32xbf16>, vector<32x32xbf16>, vector<8x32xf32> -> vector<8x32xf32>
    %306 = vector.broadcast %303 : vector<1x32xf32> to vector<8x32xf32>
    %307 = arith.addf %305, %306 : vector<8x32xf32>
    %c0_172 = arith.constant 0 : index
    %c0_173 = arith.constant 0 : index
    %c0_174 = arith.constant 0 : index
    %308 = vector.load %arg24[%c0_172, %c0_173, %c0_174] : memref<2x32x32xbf16, #tpu.memory_space<vmem>>, vector<1x32x32xbf16>
    %309 = vector.shape_cast %308 : vector<1x32x32xbf16> to vector<32x32xbf16>
    %c0_175 = arith.constant 0 : index
    %c0_176 = arith.constant 0 : index
    %c0_177 = arith.constant 0 : index
    %310 = vector.load %arg25[%c0_175, %c0_176, %c0_177] : memref<2x1x32xf32, #tpu.memory_space<vmem>>, vector<1x1x32xf32>
    %311 = vector.shape_cast %310 : vector<1x1x32xf32> to vector<1x32xf32>
    %312 = arith.truncf %25 : vector<8x32xf32> to vector<8x32xbf16>
    %cst_178 = arith.constant dense<0.000000e+00> : vector<8x32xf32>
    %313 = tpu.matmul %312, %309, %cst_178 {dimension_numbers = #tpu.dot_dimension_numbers<[1], [0], [0], [1], [0, 0, 1, 1], [], []>} : vector<8x32xbf16>, vector<32x32xbf16>, vector<8x32xf32> -> vector<8x32xf32>
    %314 = vector.broadcast %311 : vector<1x32xf32> to vector<8x32xf32>
    %315 = arith.addf %313, %314 : vector<8x32xf32>
    %c0_179 = arith.constant 0 : index
    %c0_180 = arith.constant 0 : index
    %c0_181 = arith.constant 0 : index
    %316 = vector.load %arg26[%c0_179, %c0_180, %c0_181] : memref<2x32x32xbf16, #tpu.memory_space<vmem>>, vector<1x32x32xbf16>
    %317 = vector.shape_cast %316 : vector<1x32x32xbf16> to vector<32x32xbf16>
    %c0_182 = arith.constant 0 : index
    %c0_183 = arith.constant 0 : index
    %c0_184 = arith.constant 0 : index
    %318 = vector.load %arg27[%c0_182, %c0_183, %c0_184] : memref<2x1x32xf32, #tpu.memory_space<vmem>>, vector<1x1x32xf32>
    %319 = vector.shape_cast %318 : vector<1x1x32xf32> to vector<1x32xf32>
    %320 = arith.truncf %25 : vector<8x32xf32> to vector<8x32xbf16>
    %cst_185 = arith.constant dense<0.000000e+00> : vector<8x32xf32>
    %321 = tpu.matmul %320, %317, %cst_185 {dimension_numbers = #tpu.dot_dimension_numbers<[1], [0], [0], [1], [0, 0, 1, 1], [], []>} : vector<8x32xbf16>, vector<32x32xbf16>, vector<8x32xf32> -> vector<8x32xf32>
    %322 = vector.broadcast %319 : vector<1x32xf32> to vector<8x32xf32>
    %323 = arith.addf %321, %322 : vector<8x32xf32>
    %324 = arith.truncf %307 : vector<8x32xf32> to vector<8x32xbf16>
    %325 = vector.shape_cast %324 : vector<8x32xbf16> to vector<8x4x8xbf16>
    %326 = arith.truncf %315 : vector<8x32xf32> to vector<8x32xbf16>
    %327 = vector.shape_cast %326 : vector<8x32xbf16> to vector<8x4x8xbf16>
    %328 = arith.truncf %323 : vector<8x32xf32> to vector<8x32xbf16>
    %329 = vector.shape_cast %328 : vector<8x32xbf16> to vector<8x4x8xbf16>
    "tpu.trace_start"() <{level = 10 : i32, message = "qhd,khd->hqk"}> : () -> ()
    %cst_186 = arith.constant dense<0.000000e+00> : vector<4x8x8xf32>
    %330 = tpu.matmul %325, %327, %cst_186 {dimension_numbers = #tpu.dot_dimension_numbers<[2], [2], [0], [0], [0, 1, 0, 0, 1, 0], [1], [1]>} : vector<8x4x8xbf16>, vector<8x4x8xbf16>, vector<4x8x8xf32> -> vector<4x8x8xf32>
    "tpu.trace_stop"() : () -> ()
    %cst_187 = arith.constant 0.353553385 : f32
    %331 = vector.broadcast %cst_187 : f32 to vector<4x8x8xf32>
    %332 = arith.mulf %330, %331 : vector<4x8x8xf32>
    %333 = vector.shape_cast %13 : vector<8x8xf32> to vector<1x8x8xf32>
    %334 = vector.broadcast %333 : vector<1x8x8xf32> to vector<4x8x8xf32>
    %335 = arith.addf %332, %334 : vector<4x8x8xf32>
    %cst_188 = arith.constant dense<0xFF800000> : vector<4x8xf32>
    %336 = vector.multi_reduction <maximumf>, %335, %cst_188 [2] : vector<4x8x8xf32> to vector<4x8xf32>
    %337 = vector.shape_cast %336 : vector<4x8xf32> to vector<4x8x1xf32>
    %338 = vector.broadcast %337 : vector<4x8x1xf32> to vector<4x8x8xf32>
    %339 = arith.subf %335, %338 : vector<4x8x8xf32>
    %340 = math.exp %339 : vector<4x8x8xf32>
    %cst_189 = arith.constant dense<0.000000e+00> : vector<4x8xf32>
    %341 = vector.multi_reduction <add>, %340, %cst_189 [2] : vector<4x8x8xf32> to vector<4x8xf32>
    %342 = vector.shape_cast %341 : vector<4x8xf32> to vector<4x8x1xf32>
    %343 = tpu.reciprocal %342 {approx = true} : vector<4x8x1xf32> -> vector<4x8x1xf32>
    %344 = vector.broadcast %343 : vector<4x8x1xf32> to vector<4x8x8xf32>
    %345 = arith.mulf %340, %344 : vector<4x8x8xf32>
    %346 = arith.truncf %345 : vector<4x8x8xf32> to vector<4x8x8xbf16>
    "tpu.trace_start"() <{level = 10 : i32, message = "hqk,khd->qhd"}> : () -> ()
    %cst_190 = arith.constant dense<0.000000e+00> : vector<4x8x8xf32>
    %347 = tpu.matmul %329, %346, %cst_190 {dimension_numbers = #tpu.dot_dimension_numbers<[0], [2], [2], [1], [0, 1, 0, 2, 1, 1], [1], [0]>} : vector<8x4x8xbf16>, vector<4x8x8xbf16>, vector<4x8x8xf32> -> vector<4x8x8xf32>
    %348 = tpu.transpose %347, [2, 0, 1] : vector<4x8x8xf32> -> vector<8x4x8xf32>
    "tpu.trace_stop"() : () -> ()
    %349 = vector.shape_cast %348 : vector<8x4x8xf32> to vector<8x32xf32>
    %c0_191 = arith.constant 0 : index
    %c0_192 = arith.constant 0 : index
    %c0_193 = arith.constant 0 : index
    %350 = vector.load %arg28[%c0_191, %c0_192, %c0_193] : memref<2x32x32xbf16, #tpu.memory_space<vmem>>, vector<1x32x32xbf16>
    %351 = vector.shape_cast %350 : vector<1x32x32xbf16> to vector<32x32xbf16>
    %c0_194 = arith.constant 0 : index
    %c0_195 = arith.constant 0 : index
    %c0_196 = arith.constant 0 : index
    %352 = vector.load %arg29[%c0_194, %c0_195, %c0_196] : memref<2x1x32xf32, #tpu.memory_space<vmem>>, vector<1x1x32xf32>
    %353 = vector.shape_cast %352 : vector<1x1x32xf32> to vector<1x32xf32>
    %354 = arith.truncf %349 : vector<8x32xf32> to vector<8x32xbf16>
    %cst_197 = arith.constant dense<0.000000e+00> : vector<8x32xf32>
    %355 = tpu.matmul %354, %351, %cst_197 {dimension_numbers = #tpu.dot_dimension_numbers<[1], [0], [0], [1], [0, 0, 1, 1], [], []>} : vector<8x32xbf16>, vector<32x32xbf16>, vector<8x32xf32> -> vector<8x32xf32>
    %356 = vector.broadcast %353 : vector<1x32xf32> to vector<8x32xf32>
    %357 = arith.addf %355, %356 : vector<8x32xf32>
    %358 = arith.addf %25, %357 : vector<8x32xf32>
    %c0_198 = arith.constant 0 : index
    %c0_199 = arith.constant 0 : index
    %c0_200 = arith.constant 0 : index
    %359 = vector.load %arg42[%c0_198, %c0_199, %c0_200] : memref<2x1x32xf32, #tpu.memory_space<vmem>>, vector<1x1x32xf32>
    %360 = vector.shape_cast %359 : vector<1x1x32xf32> to vector<1x32xf32>
    %c0_201 = arith.constant 0 : index
    %c0_202 = arith.constant 0 : index
    %c0_203 = arith.constant 0 : index
    %361 = vector.load %arg43[%c0_201, %c0_202, %c0_203] : memref<2x1x32xf32, #tpu.memory_space<vmem>>, vector<1x1x32xf32>
    %362 = vector.shape_cast %361 : vector<1x1x32xf32> to vector<1x32xf32>
    %cst_204 = arith.constant dense<0.000000e+00> : vector<8xf32>
    %363 = vector.multi_reduction <add>, %358, %cst_204 [1] : vector<8x32xf32> to vector<8xf32>
    %364 = vector.shape_cast %363 : vector<8xf32> to vector<8x1xf32>
    %cst_205 = arith.constant 3.200000e+01 : f32
    %365 = vector.broadcast %cst_205 : f32 to vector<8x1xf32>
    %366 = arith.divf %364, %365 : vector<8x1xf32>
    %367 = vector.broadcast %366 : vector<8x1xf32> to vector<8x32xf32>
    %368 = arith.subf %358, %367 : vector<8x32xf32>
    %369 = arith.mulf %368, %368 : vector<8x32xf32>
    %cst_206 = arith.constant dense<0.000000e+00> : vector<8xf32>
    %370 = vector.multi_reduction <add>, %369, %cst_206 [1] : vector<8x32xf32> to vector<8xf32>
    %371 = vector.shape_cast %370 : vector<8xf32> to vector<8x1xf32>
    %cst_207 = arith.constant 3.200000e+01 : f32
    %372 = vector.broadcast %cst_207 : f32 to vector<8x1xf32>
    %373 = arith.divf %371, %372 : vector<8x1xf32>
    %cst_208 = arith.constant 9.99999974E-6 : f32
    %374 = vector.broadcast %cst_208 : f32 to vector<8x1xf32>
    %375 = arith.addf %373, %374 : vector<8x1xf32>
    %376 = math.rsqrt %375 : vector<8x1xf32>
    %377 = vector.broadcast %376 : vector<8x1xf32> to vector<8x32xf32>
    %378 = arith.mulf %368, %377 : vector<8x32xf32>
    %379 = vector.broadcast %360 : vector<1x32xf32> to vector<8x32xf32>
    %380 = arith.mulf %378, %379 : vector<8x32xf32>
    %381 = vector.broadcast %362 : vector<1x32xf32> to vector<8x32xf32>
    %382 = arith.addf %380, %381 : vector<8x32xf32>
    %c0_209 = arith.constant 0 : index
    %c0_210 = arith.constant 0 : index
    %c0_211 = arith.constant 0 : index
    %383 = vector.load %arg30[%c0_209, %c0_210, %c0_211] : memref<2x32x32xbf16, #tpu.memory_space<vmem>>, vector<1x32x32xbf16>
    %384 = vector.shape_cast %383 : vector<1x32x32xbf16> to vector<32x32xbf16>
    %c0_212 = arith.constant 0 : index
    %c0_213 = arith.constant 0 : index
    %c0_214 = arith.constant 0 : index
    %385 = vector.load %arg31[%c0_212, %c0_213, %c0_214] : memref<2x1x32xf32, #tpu.memory_space<vmem>>, vector<1x1x32xf32>
    %386 = vector.shape_cast %385 : vector<1x1x32xf32> to vector<1x32xf32>
    %387 = arith.truncf %382 : vector<8x32xf32> to vector<8x32xbf16>
    %cst_215 = arith.constant dense<0.000000e+00> : vector<8x32xf32>
    %388 = tpu.matmul %387, %384, %cst_215 {dimension_numbers = #tpu.dot_dimension_numbers<[1], [0], [0], [1], [0, 0, 1, 1], [], []>} : vector<8x32xbf16>, vector<32x32xbf16>, vector<8x32xf32> -> vector<8x32xf32>
    %389 = vector.broadcast %386 : vector<1x32xf32> to vector<8x32xf32>
    %390 = arith.addf %388, %389 : vector<8x32xf32>
    %c0_216 = arith.constant 0 : index
    %c0_217 = arith.constant 0 : index
    %c0_218 = arith.constant 0 : index
    %391 = vector.load %arg32[%c0_216, %c0_217, %c0_218] : memref<2x32x32xbf16, #tpu.memory_space<vmem>>, vector<1x32x32xbf16>
    %392 = vector.shape_cast %391 : vector<1x32x32xbf16> to vector<32x32xbf16>
    %c0_219 = arith.constant 0 : index
    %c0_220 = arith.constant 0 : index
    %c0_221 = arith.constant 0 : index
    %393 = vector.load %arg33[%c0_219, %c0_220, %c0_221] : memref<2x1x32xf32, #tpu.memory_space<vmem>>, vector<1x1x32xf32>
    %394 = vector.shape_cast %393 : vector<1x1x32xf32> to vector<1x32xf32>
    %395 = arith.truncf %299 : vector<8x32xf32> to vector<8x32xbf16>
    %cst_222 = arith.constant dense<0.000000e+00> : vector<8x32xf32>
    %396 = tpu.matmul %395, %392, %cst_222 {dimension_numbers = #tpu.dot_dimension_numbers<[1], [0], [0], [1], [0, 0, 1, 1], [], []>} : vector<8x32xbf16>, vector<32x32xbf16>, vector<8x32xf32> -> vector<8x32xf32>
    %397 = vector.broadcast %394 : vector<1x32xf32> to vector<8x32xf32>
    %398 = arith.addf %396, %397 : vector<8x32xf32>
    %c0_223 = arith.constant 0 : index
    %c0_224 = arith.constant 0 : index
    %c0_225 = arith.constant 0 : index
    %399 = vector.load %arg34[%c0_223, %c0_224, %c0_225] : memref<2x32x32xbf16, #tpu.memory_space<vmem>>, vector<1x32x32xbf16>
    %400 = vector.shape_cast %399 : vector<1x32x32xbf16> to vector<32x32xbf16>
    %c0_226 = arith.constant 0 : index
    %c0_227 = arith.constant 0 : index
    %c0_228 = arith.constant 0 : index
    %401 = vector.load %arg35[%c0_226, %c0_227, %c0_228] : memref<2x1x32xf32, #tpu.memory_space<vmem>>, vector<1x1x32xf32>
    %402 = vector.shape_cast %401 : vector<1x1x32xf32> to vector<1x32xf32>
    %403 = arith.truncf %299 : vector<8x32xf32> to vector<8x32xbf16>
    %cst_229 = arith.constant dense<0.000000e+00> : vector<8x32xf32>
    %404 = tpu.matmul %403, %400, %cst_229 {dimension_numbers = #tpu.dot_dimension_numbers<[1], [0], [0], [1], [0, 0, 1, 1], [], []>} : vector<8x32xbf16>, vector<32x32xbf16>, vector<8x32xf32> -> vector<8x32xf32>
    %405 = vector.broadcast %402 : vector<1x32xf32> to vector<8x32xf32>
    %406 = arith.addf %404, %405 : vector<8x32xf32>
    %407 = arith.truncf %390 : vector<8x32xf32> to vector<8x32xbf16>
    %408 = vector.shape_cast %407 : vector<8x32xbf16> to vector<8x4x8xbf16>
    %409 = arith.truncf %398 : vector<8x32xf32> to vector<8x32xbf16>
    %410 = vector.shape_cast %409 : vector<8x32xbf16> to vector<8x4x8xbf16>
    %411 = arith.truncf %406 : vector<8x32xf32> to vector<8x32xbf16>
    %412 = vector.shape_cast %411 : vector<8x32xbf16> to vector<8x4x8xbf16>
    "tpu.trace_start"() <{level = 10 : i32, message = "qhd,khd->hqk"}> : () -> ()
    %cst_230 = arith.constant dense<0.000000e+00> : vector<4x8x8xf32>
    %413 = tpu.matmul %408, %410, %cst_230 {dimension_numbers = #tpu.dot_dimension_numbers<[2], [2], [0], [0], [0, 1, 0, 0, 1, 0], [1], [1]>} : vector<8x4x8xbf16>, vector<8x4x8xbf16>, vector<4x8x8xf32> -> vector<4x8x8xf32>
    "tpu.trace_stop"() : () -> ()
    %cst_231 = arith.constant 0.353553385 : f32
    %414 = vector.broadcast %cst_231 : f32 to vector<4x8x8xf32>
    %415 = arith.mulf %413, %414 : vector<4x8x8xf32>
    %cst_232 = arith.constant dense<0xFF800000> : vector<4x8xf32>
    %416 = vector.multi_reduction <maximumf>, %415, %cst_232 [2] : vector<4x8x8xf32> to vector<4x8xf32>
    %417 = vector.shape_cast %416 : vector<4x8xf32> to vector<4x8x1xf32>
    %418 = vector.broadcast %417 : vector<4x8x1xf32> to vector<4x8x8xf32>
    %419 = arith.subf %415, %418 : vector<4x8x8xf32>
    %420 = math.exp %419 : vector<4x8x8xf32>
    %cst_233 = arith.constant dense<0.000000e+00> : vector<4x8xf32>
    %421 = vector.multi_reduction <add>, %420, %cst_233 [2] : vector<4x8x8xf32> to vector<4x8xf32>
    %422 = vector.shape_cast %421 : vector<4x8xf32> to vector<4x8x1xf32>
    %423 = tpu.reciprocal %422 {approx = true} : vector<4x8x1xf32> -> vector<4x8x1xf32>
    %424 = vector.broadcast %423 : vector<4x8x1xf32> to vector<4x8x8xf32>
    %425 = arith.mulf %420, %424 : vector<4x8x8xf32>
    %426 = arith.truncf %425 : vector<4x8x8xf32> to vector<4x8x8xbf16>
    "tpu.trace_start"() <{level = 10 : i32, message = "hqk,khd->qhd"}> : () -> ()
    %cst_234 = arith.constant dense<0.000000e+00> : vector<4x8x8xf32>
    %427 = tpu.matmul %412, %426, %cst_234 {dimension_numbers = #tpu.dot_dimension_numbers<[0], [2], [2], [1], [0, 1, 0, 2, 1, 1], [1], [0]>} : vector<8x4x8xbf16>, vector<4x8x8xbf16>, vector<4x8x8xf32> -> vector<4x8x8xf32>
    %428 = tpu.transpose %427, [2, 0, 1] : vector<4x8x8xf32> -> vector<8x4x8xf32>
    "tpu.trace_stop"() : () -> ()
    %429 = vector.shape_cast %428 : vector<8x4x8xf32> to vector<8x32xf32>
    %c0_235 = arith.constant 0 : index
    %c0_236 = arith.constant 0 : index
    %c0_237 = arith.constant 0 : index
    %430 = vector.load %arg36[%c0_235, %c0_236, %c0_237] : memref<2x32x32xbf16, #tpu.memory_space<vmem>>, vector<1x32x32xbf16>
    %431 = vector.shape_cast %430 : vector<1x32x32xbf16> to vector<32x32xbf16>
    %c0_238 = arith.constant 0 : index
    %c0_239 = arith.constant 0 : index
    %c0_240 = arith.constant 0 : index
    %432 = vector.load %arg37[%c0_238, %c0_239, %c0_240] : memref<2x1x32xf32, #tpu.memory_space<vmem>>, vector<1x1x32xf32>
    %433 = vector.shape_cast %432 : vector<1x1x32xf32> to vector<1x32xf32>
    %434 = arith.truncf %429 : vector<8x32xf32> to vector<8x32xbf16>
    %cst_241 = arith.constant dense<0.000000e+00> : vector<8x32xf32>
    %435 = tpu.matmul %434, %431, %cst_241 {dimension_numbers = #tpu.dot_dimension_numbers<[1], [0], [0], [1], [0, 0, 1, 1], [], []>} : vector<8x32xbf16>, vector<32x32xbf16>, vector<8x32xf32> -> vector<8x32xf32>
    %436 = vector.broadcast %433 : vector<1x32xf32> to vector<8x32xf32>
    %437 = arith.addf %435, %436 : vector<8x32xf32>
    %438 = arith.addf %382, %437 : vector<8x32xf32>
    %c0_242 = arith.constant 0 : index
    %c0_243 = arith.constant 0 : index
    %c0_244 = arith.constant 0 : index
    %439 = vector.load %arg44[%c0_242, %c0_243, %c0_244] : memref<2x1x32xf32, #tpu.memory_space<vmem>>, vector<1x1x32xf32>
    %440 = vector.shape_cast %439 : vector<1x1x32xf32> to vector<1x32xf32>
    %c0_245 = arith.constant 0 : index
    %c0_246 = arith.constant 0 : index
    %c0_247 = arith.constant 0 : index
    %441 = vector.load %arg45[%c0_245, %c0_246, %c0_247] : memref<2x1x32xf32, #tpu.memory_space<vmem>>, vector<1x1x32xf32>
    %442 = vector.shape_cast %441 : vector<1x1x32xf32> to vector<1x32xf32>
    %cst_248 = arith.constant dense<0.000000e+00> : vector<8xf32>
    %443 = vector.multi_reduction <add>, %438, %cst_248 [1] : vector<8x32xf32> to vector<8xf32>
    %444 = vector.shape_cast %443 : vector<8xf32> to vector<8x1xf32>
    %cst_249 = arith.constant 3.200000e+01 : f32
    %445 = vector.broadcast %cst_249 : f32 to vector<8x1xf32>
    %446 = arith.divf %444, %445 : vector<8x1xf32>
    %447 = vector.broadcast %446 : vector<8x1xf32> to vector<8x32xf32>
    %448 = arith.subf %438, %447 : vector<8x32xf32>
    %449 = arith.mulf %448, %448 : vector<8x32xf32>
    %cst_250 = arith.constant dense<0.000000e+00> : vector<8xf32>
    %450 = vector.multi_reduction <add>, %449, %cst_250 [1] : vector<8x32xf32> to vector<8xf32>
    %451 = vector.shape_cast %450 : vector<8xf32> to vector<8x1xf32>
    %cst_251 = arith.constant 3.200000e+01 : f32
    %452 = vector.broadcast %cst_251 : f32 to vector<8x1xf32>
    %453 = arith.divf %451, %452 : vector<8x1xf32>
    %cst_252 = arith.constant 9.99999974E-6 : f32
    %454 = vector.broadcast %cst_252 : f32 to vector<8x1xf32>
    %455 = arith.addf %453, %454 : vector<8x1xf32>
    %456 = math.rsqrt %455 : vector<8x1xf32>
    %457 = vector.broadcast %456 : vector<8x1xf32> to vector<8x32xf32>
    %458 = arith.mulf %448, %457 : vector<8x32xf32>
    %459 = vector.broadcast %440 : vector<1x32xf32> to vector<8x32xf32>
    %460 = arith.mulf %458, %459 : vector<8x32xf32>
    %461 = vector.broadcast %442 : vector<1x32xf32> to vector<8x32xf32>
    %462 = arith.addf %460, %461 : vector<8x32xf32>
    %c0_253 = arith.constant 0 : index
    %c0_254 = arith.constant 0 : index
    %c0_255 = arith.constant 0 : index
    %463 = vector.load %arg38[%c0_253, %c0_254, %c0_255] : memref<2x32x64xbf16, #tpu.memory_space<vmem>>, vector<1x32x64xbf16>
    %464 = vector.shape_cast %463 : vector<1x32x64xbf16> to vector<32x64xbf16>
    %c0_256 = arith.constant 0 : index
    %c0_257 = arith.constant 0 : index
    %c0_258 = arith.constant 0 : index
    %465 = vector.load %arg39[%c0_256, %c0_257, %c0_258] : memref<2x1x64xf32, #tpu.memory_space<vmem>>, vector<1x1x64xf32>
    %466 = vector.shape_cast %465 : vector<1x1x64xf32> to vector<1x64xf32>
    %467 = arith.truncf %462 : vector<8x32xf32> to vector<8x32xbf16>
    %cst_259 = arith.constant dense<0.000000e+00> : vector<8x64xf32>
    %468 = tpu.matmul %467, %464, %cst_259 {dimension_numbers = #tpu.dot_dimension_numbers<[1], [0], [0], [1], [0, 0, 1, 1], [], []>} : vector<8x32xbf16>, vector<32x64xbf16>, vector<8x64xf32> -> vector<8x64xf32>
    %469 = vector.broadcast %466 : vector<1x64xf32> to vector<8x64xf32>
    %470 = arith.addf %468, %469 : vector<8x64xf32>
    %cst_260 = arith.constant 0.000000e+00 : f32
    %471 = vector.broadcast %cst_260 : f32 to vector<8x64xf32>
    %472 = arith.maximumf %470, %471 : vector<8x64xf32>
    %c0_261 = arith.constant 0 : index
    %c0_262 = arith.constant 0 : index
    %c0_263 = arith.constant 0 : index
    %473 = vector.load %arg40[%c0_261, %c0_262, %c0_263] : memref<2x64x32xbf16, #tpu.memory_space<vmem>>, vector<1x64x32xbf16>
    %474 = vector.shape_cast %473 : vector<1x64x32xbf16> to vector<64x32xbf16>
    %c0_264 = arith.constant 0 : index
    %c0_265 = arith.constant 0 : index
    %c0_266 = arith.constant 0 : index
    %475 = vector.load %arg41[%c0_264, %c0_265, %c0_266] : memref<2x1x32xf32, #tpu.memory_space<vmem>>, vector<1x1x32xf32>
    %476 = vector.shape_cast %475 : vector<1x1x32xf32> to vector<1x32xf32>
    %477 = arith.truncf %472 : vector<8x64xf32> to vector<8x64xbf16>
    %cst_267 = arith.constant dense<0.000000e+00> : vector<8x32xf32>
    %478 = tpu.matmul %477, %474, %cst_267 {dimension_numbers = #tpu.dot_dimension_numbers<[1], [0], [0], [1], [0, 0, 1, 1], [], []>} : vector<8x64xbf16>, vector<64x32xbf16>, vector<8x32xf32> -> vector<8x32xf32>
    %479 = vector.broadcast %476 : vector<1x32xf32> to vector<8x32xf32>
    %480 = arith.addf %478, %479 : vector<8x32xf32>
    %481 = arith.addf %462, %480 : vector<8x32xf32>
    %c0_268 = arith.constant 0 : index
    %c0_269 = arith.constant 0 : index
    %c0_270 = arith.constant 0 : index
    %482 = vector.load %arg46[%c0_268, %c0_269, %c0_270] : memref<2x1x32xf32, #tpu.memory_space<vmem>>, vector<1x1x32xf32>
    %483 = vector.shape_cast %482 : vector<1x1x32xf32> to vector<1x32xf32>
    %c0_271 = arith.constant 0 : index
    %c0_272 = arith.constant 0 : index
    %c0_273 = arith.constant 0 : index
    %484 = vector.load %arg47[%c0_271, %c0_272, %c0_273] : memref<2x1x32xf32, #tpu.memory_space<vmem>>, vector<1x1x32xf32>
    %485 = vector.shape_cast %484 : vector<1x1x32xf32> to vector<1x32xf32>
    %cst_274 = arith.constant dense<0.000000e+00> : vector<8xf32>
    %486 = vector.multi_reduction <add>, %481, %cst_274 [1] : vector<8x32xf32> to vector<8xf32>
    %487 = vector.shape_cast %486 : vector<8xf32> to vector<8x1xf32>
    %cst_275 = arith.constant 3.200000e+01 : f32
    %488 = vector.broadcast %cst_275 : f32 to vector<8x1xf32>
    %489 = arith.divf %487, %488 : vector<8x1xf32>
    %490 = vector.broadcast %489 : vector<8x1xf32> to vector<8x32xf32>
    %491 = arith.subf %481, %490 : vector<8x32xf32>
    %492 = arith.mulf %491, %491 : vector<8x32xf32>
    %cst_276 = arith.constant dense<0.000000e+00> : vector<8xf32>
    %493 = vector.multi_reduction <add>, %492, %cst_276 [1] : vector<8x32xf32> to vector<8xf32>
    %494 = vector.shape_cast %493 : vector<8xf32> to vector<8x1xf32>
    %cst_277 = arith.constant 3.200000e+01 : f32
    %495 = vector.broadcast %cst_277 : f32 to vector<8x1xf32>
    %496 = arith.divf %494, %495 : vector<8x1xf32>
    %cst_278 = arith.constant 9.99999974E-6 : f32
    %497 = vector.broadcast %cst_278 : f32 to vector<8x1xf32>
    %498 = arith.addf %496, %497 : vector<8x1xf32>
    %499 = math.rsqrt %498 : vector<8x1xf32>
    %500 = vector.broadcast %499 : vector<8x1xf32> to vector<8x32xf32>
    %501 = arith.mulf %491, %500 : vector<8x32xf32>
    %502 = vector.broadcast %483 : vector<1x32xf32> to vector<8x32xf32>
    %503 = arith.mulf %501, %502 : vector<8x32xf32>
    %504 = vector.broadcast %485 : vector<1x32xf32> to vector<8x32xf32>
    %505 = arith.addf %503, %504 : vector<8x32xf32>
    %c1_279 = arith.constant 1 : index
    %c0_280 = arith.constant 0 : index
    %c0_281 = arith.constant 0 : index
    %506 = vector.load %arg22[%c1_279, %c0_280, %c0_281] : memref<2x32x32xbf16, #tpu.memory_space<vmem>>, vector<1x32x32xbf16>
    %507 = vector.shape_cast %506 : vector<1x32x32xbf16> to vector<32x32xbf16>
    %c1_282 = arith.constant 1 : index
    %c0_283 = arith.constant 0 : index
    %c0_284 = arith.constant 0 : index
    %508 = vector.load %arg23[%c1_282, %c0_283, %c0_284] : memref<2x1x32xf32, #tpu.memory_space<vmem>>, vector<1x1x32xf32>
    %509 = vector.shape_cast %508 : vector<1x1x32xf32> to vector<1x32xf32>
    %510 = arith.truncf %505 : vector<8x32xf32> to vector<8x32xbf16>
    %cst_285 = arith.constant dense<0.000000e+00> : vector<8x32xf32>
    %511 = tpu.matmul %510, %507, %cst_285 {dimension_numbers = #tpu.dot_dimension_numbers<[1], [0], [0], [1], [0, 0, 1, 1], [], []>} : vector<8x32xbf16>, vector<32x32xbf16>, vector<8x32xf32> -> vector<8x32xf32>
    %512 = vector.broadcast %509 : vector<1x32xf32> to vector<8x32xf32>
    %513 = arith.addf %511, %512 : vector<8x32xf32>
    %c1_286 = arith.constant 1 : index
    %c0_287 = arith.constant 0 : index
    %c0_288 = arith.constant 0 : index
    %514 = vector.load %arg24[%c1_286, %c0_287, %c0_288] : memref<2x32x32xbf16, #tpu.memory_space<vmem>>, vector<1x32x32xbf16>
    %515 = vector.shape_cast %514 : vector<1x32x32xbf16> to vector<32x32xbf16>
    %c1_289 = arith.constant 1 : index
    %c0_290 = arith.constant 0 : index
    %c0_291 = arith.constant 0 : index
    %516 = vector.load %arg25[%c1_289, %c0_290, %c0_291] : memref<2x1x32xf32, #tpu.memory_space<vmem>>, vector<1x1x32xf32>
    %517 = vector.shape_cast %516 : vector<1x1x32xf32> to vector<1x32xf32>
    %518 = arith.truncf %505 : vector<8x32xf32> to vector<8x32xbf16>
    %cst_292 = arith.constant dense<0.000000e+00> : vector<8x32xf32>
    %519 = tpu.matmul %518, %515, %cst_292 {dimension_numbers = #tpu.dot_dimension_numbers<[1], [0], [0], [1], [0, 0, 1, 1], [], []>} : vector<8x32xbf16>, vector<32x32xbf16>, vector<8x32xf32> -> vector<8x32xf32>
    %520 = vector.broadcast %517 : vector<1x32xf32> to vector<8x32xf32>
    %521 = arith.addf %519, %520 : vector<8x32xf32>
    %c1_293 = arith.constant 1 : index
    %c0_294 = arith.constant 0 : index
    %c0_295 = arith.constant 0 : index
    %522 = vector.load %arg26[%c1_293, %c0_294, %c0_295] : memref<2x32x32xbf16, #tpu.memory_space<vmem>>, vector<1x32x32xbf16>
    %523 = vector.shape_cast %522 : vector<1x32x32xbf16> to vector<32x32xbf16>
    %c1_296 = arith.constant 1 : index
    %c0_297 = arith.constant 0 : index
    %c0_298 = arith.constant 0 : index
    %524 = vector.load %arg27[%c1_296, %c0_297, %c0_298] : memref<2x1x32xf32, #tpu.memory_space<vmem>>, vector<1x1x32xf32>
    %525 = vector.shape_cast %524 : vector<1x1x32xf32> to vector<1x32xf32>
    %526 = arith.truncf %505 : vector<8x32xf32> to vector<8x32xbf16>
    %cst_299 = arith.constant dense<0.000000e+00> : vector<8x32xf32>
    %527 = tpu.matmul %526, %523, %cst_299 {dimension_numbers = #tpu.dot_dimension_numbers<[1], [0], [0], [1], [0, 0, 1, 1], [], []>} : vector<8x32xbf16>, vector<32x32xbf16>, vector<8x32xf32> -> vector<8x32xf32>
    %528 = vector.broadcast %525 : vector<1x32xf32> to vector<8x32xf32>
    %529 = arith.addf %527, %528 : vector<8x32xf32>
    %530 = arith.truncf %513 : vector<8x32xf32> to vector<8x32xbf16>
    %531 = vector.shape_cast %530 : vector<8x32xbf16> to vector<8x4x8xbf16>
    %532 = arith.truncf %521 : vector<8x32xf32> to vector<8x32xbf16>
    %533 = vector.shape_cast %532 : vector<8x32xbf16> to vector<8x4x8xbf16>
    %534 = arith.truncf %529 : vector<8x32xf32> to vector<8x32xbf16>
    %535 = vector.shape_cast %534 : vector<8x32xbf16> to vector<8x4x8xbf16>
    "tpu.trace_start"() <{level = 10 : i32, message = "qhd,khd->hqk"}> : () -> ()
    %cst_300 = arith.constant dense<0.000000e+00> : vector<4x8x8xf32>
    %536 = tpu.matmul %531, %533, %cst_300 {dimension_numbers = #tpu.dot_dimension_numbers<[2], [2], [0], [0], [0, 1, 0, 0, 1, 0], [1], [1]>} : vector<8x4x8xbf16>, vector<8x4x8xbf16>, vector<4x8x8xf32> -> vector<4x8x8xf32>
    "tpu.trace_stop"() : () -> ()
    %cst_301 = arith.constant 0.353553385 : f32
    %537 = vector.broadcast %cst_301 : f32 to vector<4x8x8xf32>
    %538 = arith.mulf %536, %537 : vector<4x8x8xf32>
    %539 = vector.shape_cast %13 : vector<8x8xf32> to vector<1x8x8xf32>
    %540 = vector.broadcast %539 : vector<1x8x8xf32> to vector<4x8x8xf32>
    %541 = arith.addf %538, %540 : vector<4x8x8xf32>
    %cst_302 = arith.constant dense<0xFF800000> : vector<4x8xf32>
    %542 = vector.multi_reduction <maximumf>, %541, %cst_302 [2] : vector<4x8x8xf32> to vector<4x8xf32>
    %543 = vector.shape_cast %542 : vector<4x8xf32> to vector<4x8x1xf32>
    %544 = vector.broadcast %543 : vector<4x8x1xf32> to vector<4x8x8xf32>
    %545 = arith.subf %541, %544 : vector<4x8x8xf32>
    %546 = math.exp %545 : vector<4x8x8xf32>
    %cst_303 = arith.constant dense<0.000000e+00> : vector<4x8xf32>
    %547 = vector.multi_reduction <add>, %546, %cst_303 [2] : vector<4x8x8xf32> to vector<4x8xf32>
    %548 = vector.shape_cast %547 : vector<4x8xf32> to vector<4x8x1xf32>
    %549 = tpu.reciprocal %548 {approx = true} : vector<4x8x1xf32> -> vector<4x8x1xf32>
    %550 = vector.broadcast %549 : vector<4x8x1xf32> to vector<4x8x8xf32>
    %551 = arith.mulf %546, %550 : vector<4x8x8xf32>
    %552 = arith.truncf %551 : vector<4x8x8xf32> to vector<4x8x8xbf16>
    "tpu.trace_start"() <{level = 10 : i32, message = "hqk,khd->qhd"}> : () -> ()
    %cst_304 = arith.constant dense<0.000000e+00> : vector<4x8x8xf32>
    %553 = tpu.matmul %535, %552, %cst_304 {dimension_numbers = #tpu.dot_dimension_numbers<[0], [2], [2], [1], [0, 1, 0, 2, 1, 1], [1], [0]>} : vector<8x4x8xbf16>, vector<4x8x8xbf16>, vector<4x8x8xf32> -> vector<4x8x8xf32>
    %554 = tpu.transpose %553, [2, 0, 1] : vector<4x8x8xf32> -> vector<8x4x8xf32>
    "tpu.trace_stop"() : () -> ()
    %555 = vector.shape_cast %554 : vector<8x4x8xf32> to vector<8x32xf32>
    %c1_305 = arith.constant 1 : index
    %c0_306 = arith.constant 0 : index
    %c0_307 = arith.constant 0 : index
    %556 = vector.load %arg28[%c1_305, %c0_306, %c0_307] : memref<2x32x32xbf16, #tpu.memory_space<vmem>>, vector<1x32x32xbf16>
    %557 = vector.shape_cast %556 : vector<1x32x32xbf16> to vector<32x32xbf16>
    %c1_308 = arith.constant 1 : index
    %c0_309 = arith.constant 0 : index
    %c0_310 = arith.constant 0 : index
    %558 = vector.load %arg29[%c1_308, %c0_309, %c0_310] : memref<2x1x32xf32, #tpu.memory_space<vmem>>, vector<1x1x32xf32>
    %559 = vector.shape_cast %558 : vector<1x1x32xf32> to vector<1x32xf32>
    %560 = arith.truncf %555 : vector<8x32xf32> to vector<8x32xbf16>
    %cst_311 = arith.constant dense<0.000000e+00> : vector<8x32xf32>
    %561 = tpu.matmul %560, %557, %cst_311 {dimension_numbers = #tpu.dot_dimension_numbers<[1], [0], [0], [1], [0, 0, 1, 1], [], []>} : vector<8x32xbf16>, vector<32x32xbf16>, vector<8x32xf32> -> vector<8x32xf32>
    %562 = vector.broadcast %559 : vector<1x32xf32> to vector<8x32xf32>
    %563 = arith.addf %561, %562 : vector<8x32xf32>
    %564 = arith.addf %505, %563 : vector<8x32xf32>
    %c1_312 = arith.constant 1 : index
    %c0_313 = arith.constant 0 : index
    %c0_314 = arith.constant 0 : index
    %565 = vector.load %arg42[%c1_312, %c0_313, %c0_314] : memref<2x1x32xf32, #tpu.memory_space<vmem>>, vector<1x1x32xf32>
    %566 = vector.shape_cast %565 : vector<1x1x32xf32> to vector<1x32xf32>
    %c1_315 = arith.constant 1 : index
    %c0_316 = arith.constant 0 : index
    %c0_317 = arith.constant 0 : index
    %567 = vector.load %arg43[%c1_315, %c0_316, %c0_317] : memref<2x1x32xf32, #tpu.memory_space<vmem>>, vector<1x1x32xf32>
    %568 = vector.shape_cast %567 : vector<1x1x32xf32> to vector<1x32xf32>
    %cst_318 = arith.constant dense<0.000000e+00> : vector<8xf32>
    %569 = vector.multi_reduction <add>, %564, %cst_318 [1] : vector<8x32xf32> to vector<8xf32>
    %570 = vector.shape_cast %569 : vector<8xf32> to vector<8x1xf32>
    %cst_319 = arith.constant 3.200000e+01 : f32
    %571 = vector.broadcast %cst_319 : f32 to vector<8x1xf32>
    %572 = arith.divf %570, %571 : vector<8x1xf32>
    %573 = vector.broadcast %572 : vector<8x1xf32> to vector<8x32xf32>
    %574 = arith.subf %564, %573 : vector<8x32xf32>
    %575 = arith.mulf %574, %574 : vector<8x32xf32>
    %cst_320 = arith.constant dense<0.000000e+00> : vector<8xf32>
    %576 = vector.multi_reduction <add>, %575, %cst_320 [1] : vector<8x32xf32> to vector<8xf32>
    %577 = vector.shape_cast %576 : vector<8xf32> to vector<8x1xf32>
    %cst_321 = arith.constant 3.200000e+01 : f32
    %578 = vector.broadcast %cst_321 : f32 to vector<8x1xf32>
    %579 = arith.divf %577, %578 : vector<8x1xf32>
    %cst_322 = arith.constant 9.99999974E-6 : f32
    %580 = vector.broadcast %cst_322 : f32 to vector<8x1xf32>
    %581 = arith.addf %579, %580 : vector<8x1xf32>
    %582 = math.rsqrt %581 : vector<8x1xf32>
    %583 = vector.broadcast %582 : vector<8x1xf32> to vector<8x32xf32>
    %584 = arith.mulf %574, %583 : vector<8x32xf32>
    %585 = vector.broadcast %566 : vector<1x32xf32> to vector<8x32xf32>
    %586 = arith.mulf %584, %585 : vector<8x32xf32>
    %587 = vector.broadcast %568 : vector<1x32xf32> to vector<8x32xf32>
    %588 = arith.addf %586, %587 : vector<8x32xf32>
    %c1_323 = arith.constant 1 : index
    %c0_324 = arith.constant 0 : index
    %c0_325 = arith.constant 0 : index
    %589 = vector.load %arg30[%c1_323, %c0_324, %c0_325] : memref<2x32x32xbf16, #tpu.memory_space<vmem>>, vector<1x32x32xbf16>
    %590 = vector.shape_cast %589 : vector<1x32x32xbf16> to vector<32x32xbf16>
    %c1_326 = arith.constant 1 : index
    %c0_327 = arith.constant 0 : index
    %c0_328 = arith.constant 0 : index
    %591 = vector.load %arg31[%c1_326, %c0_327, %c0_328] : memref<2x1x32xf32, #tpu.memory_space<vmem>>, vector<1x1x32xf32>
    %592 = vector.shape_cast %591 : vector<1x1x32xf32> to vector<1x32xf32>
    %593 = arith.truncf %588 : vector<8x32xf32> to vector<8x32xbf16>
    %cst_329 = arith.constant dense<0.000000e+00> : vector<8x32xf32>
    %594 = tpu.matmul %593, %590, %cst_329 {dimension_numbers = #tpu.dot_dimension_numbers<[1], [0], [0], [1], [0, 0, 1, 1], [], []>} : vector<8x32xbf16>, vector<32x32xbf16>, vector<8x32xf32> -> vector<8x32xf32>
    %595 = vector.broadcast %592 : vector<1x32xf32> to vector<8x32xf32>
    %596 = arith.addf %594, %595 : vector<8x32xf32>
    %c1_330 = arith.constant 1 : index
    %c0_331 = arith.constant 0 : index
    %c0_332 = arith.constant 0 : index
    %597 = vector.load %arg32[%c1_330, %c0_331, %c0_332] : memref<2x32x32xbf16, #tpu.memory_space<vmem>>, vector<1x32x32xbf16>
    %598 = vector.shape_cast %597 : vector<1x32x32xbf16> to vector<32x32xbf16>
    %c1_333 = arith.constant 1 : index
    %c0_334 = arith.constant 0 : index
    %c0_335 = arith.constant 0 : index
    %599 = vector.load %arg33[%c1_333, %c0_334, %c0_335] : memref<2x1x32xf32, #tpu.memory_space<vmem>>, vector<1x1x32xf32>
    %600 = vector.shape_cast %599 : vector<1x1x32xf32> to vector<1x32xf32>
    %601 = arith.truncf %299 : vector<8x32xf32> to vector<8x32xbf16>
    %cst_336 = arith.constant dense<0.000000e+00> : vector<8x32xf32>
    %602 = tpu.matmul %601, %598, %cst_336 {dimension_numbers = #tpu.dot_dimension_numbers<[1], [0], [0], [1], [0, 0, 1, 1], [], []>} : vector<8x32xbf16>, vector<32x32xbf16>, vector<8x32xf32> -> vector<8x32xf32>
    %603 = vector.broadcast %600 : vector<1x32xf32> to vector<8x32xf32>
    %604 = arith.addf %602, %603 : vector<8x32xf32>
    %c1_337 = arith.constant 1 : index
    %c0_338 = arith.constant 0 : index
    %c0_339 = arith.constant 0 : index
    %605 = vector.load %arg34[%c1_337, %c0_338, %c0_339] : memref<2x32x32xbf16, #tpu.memory_space<vmem>>, vector<1x32x32xbf16>
    %606 = vector.shape_cast %605 : vector<1x32x32xbf16> to vector<32x32xbf16>
    %c1_340 = arith.constant 1 : index
    %c0_341 = arith.constant 0 : index
    %c0_342 = arith.constant 0 : index
    %607 = vector.load %arg35[%c1_340, %c0_341, %c0_342] : memref<2x1x32xf32, #tpu.memory_space<vmem>>, vector<1x1x32xf32>
    %608 = vector.shape_cast %607 : vector<1x1x32xf32> to vector<1x32xf32>
    %609 = arith.truncf %299 : vector<8x32xf32> to vector<8x32xbf16>
    %cst_343 = arith.constant dense<0.000000e+00> : vector<8x32xf32>
    %610 = tpu.matmul %609, %606, %cst_343 {dimension_numbers = #tpu.dot_dimension_numbers<[1], [0], [0], [1], [0, 0, 1, 1], [], []>} : vector<8x32xbf16>, vector<32x32xbf16>, vector<8x32xf32> -> vector<8x32xf32>
    %611 = vector.broadcast %608 : vector<1x32xf32> to vector<8x32xf32>
    %612 = arith.addf %610, %611 : vector<8x32xf32>
    %613 = arith.truncf %596 : vector<8x32xf32> to vector<8x32xbf16>
    %614 = vector.shape_cast %613 : vector<8x32xbf16> to vector<8x4x8xbf16>
    %615 = arith.truncf %604 : vector<8x32xf32> to vector<8x32xbf16>
    %616 = vector.shape_cast %615 : vector<8x32xbf16> to vector<8x4x8xbf16>
    %617 = arith.truncf %612 : vector<8x32xf32> to vector<8x32xbf16>
    %618 = vector.shape_cast %617 : vector<8x32xbf16> to vector<8x4x8xbf16>
    "tpu.trace_start"() <{level = 10 : i32, message = "qhd,khd->hqk"}> : () -> ()
    %cst_344 = arith.constant dense<0.000000e+00> : vector<4x8x8xf32>
    %619 = tpu.matmul %614, %616, %cst_344 {dimension_numbers = #tpu.dot_dimension_numbers<[2], [2], [0], [0], [0, 1, 0, 0, 1, 0], [1], [1]>} : vector<8x4x8xbf16>, vector<8x4x8xbf16>, vector<4x8x8xf32> -> vector<4x8x8xf32>
    "tpu.trace_stop"() : () -> ()
    %cst_345 = arith.constant 0.353553385 : f32
    %620 = vector.broadcast %cst_345 : f32 to vector<4x8x8xf32>
    %621 = arith.mulf %619, %620 : vector<4x8x8xf32>
    %cst_346 = arith.constant dense<0xFF800000> : vector<4x8xf32>
    %622 = vector.multi_reduction <maximumf>, %621, %cst_346 [2] : vector<4x8x8xf32> to vector<4x8xf32>
    %623 = vector.shape_cast %622 : vector<4x8xf32> to vector<4x8x1xf32>
    %624 = vector.broadcast %623 : vector<4x8x1xf32> to vector<4x8x8xf32>
    %625 = arith.subf %621, %624 : vector<4x8x8xf32>
    %626 = math.exp %625 : vector<4x8x8xf32>
    %cst_347 = arith.constant dense<0.000000e+00> : vector<4x8xf32>
    %627 = vector.multi_reduction <add>, %626, %cst_347 [2] : vector<4x8x8xf32> to vector<4x8xf32>
    %628 = vector.shape_cast %627 : vector<4x8xf32> to vector<4x8x1xf32>
    %629 = tpu.reciprocal %628 {approx = true} : vector<4x8x1xf32> -> vector<4x8x1xf32>
    %630 = vector.broadcast %629 : vector<4x8x1xf32> to vector<4x8x8xf32>
    %631 = arith.mulf %626, %630 : vector<4x8x8xf32>
    %632 = arith.truncf %631 : vector<4x8x8xf32> to vector<4x8x8xbf16>
    "tpu.trace_start"() <{level = 10 : i32, message = "hqk,khd->qhd"}> : () -> ()
    %cst_348 = arith.constant dense<0.000000e+00> : vector<4x8x8xf32>
    %633 = tpu.matmul %618, %632, %cst_348 {dimension_numbers = #tpu.dot_dimension_numbers<[0], [2], [2], [1], [0, 1, 0, 2, 1, 1], [1], [0]>} : vector<8x4x8xbf16>, vector<4x8x8xbf16>, vector<4x8x8xf32> -> vector<4x8x8xf32>
    %634 = tpu.transpose %633, [2, 0, 1] : vector<4x8x8xf32> -> vector<8x4x8xf32>
    "tpu.trace_stop"() : () -> ()
    %635 = vector.shape_cast %634 : vector<8x4x8xf32> to vector<8x32xf32>
    %c1_349 = arith.constant 1 : index
    %c0_350 = arith.constant 0 : index
    %c0_351 = arith.constant 0 : index
    %636 = vector.load %arg36[%c1_349, %c0_350, %c0_351] : memref<2x32x32xbf16, #tpu.memory_space<vmem>>, vector<1x32x32xbf16>
    %637 = vector.shape_cast %636 : vector<1x32x32xbf16> to vector<32x32xbf16>
    %c1_352 = arith.constant 1 : index
    %c0_353 = arith.constant 0 : index
    %c0_354 = arith.constant 0 : index
    %638 = vector.load %arg37[%c1_352, %c0_353, %c0_354] : memref<2x1x32xf32, #tpu.memory_space<vmem>>, vector<1x1x32xf32>
    %639 = vector.shape_cast %638 : vector<1x1x32xf32> to vector<1x32xf32>
    %640 = arith.truncf %635 : vector<8x32xf32> to vector<8x32xbf16>
    %cst_355 = arith.constant dense<0.000000e+00> : vector<8x32xf32>
    %641 = tpu.matmul %640, %637, %cst_355 {dimension_numbers = #tpu.dot_dimension_numbers<[1], [0], [0], [1], [0, 0, 1, 1], [], []>} : vector<8x32xbf16>, vector<32x32xbf16>, vector<8x32xf32> -> vector<8x32xf32>
    %642 = vector.broadcast %639 : vector<1x32xf32> to vector<8x32xf32>
    %643 = arith.addf %641, %642 : vector<8x32xf32>
    %644 = arith.addf %588, %643 : vector<8x32xf32>
    %c1_356 = arith.constant 1 : index
    %c0_357 = arith.constant 0 : index
    %c0_358 = arith.constant 0 : index
    %645 = vector.load %arg44[%c1_356, %c0_357, %c0_358] : memref<2x1x32xf32, #tpu.memory_space<vmem>>, vector<1x1x32xf32>
    %646 = vector.shape_cast %645 : vector<1x1x32xf32> to vector<1x32xf32>
    %c1_359 = arith.constant 1 : index
    %c0_360 = arith.constant 0 : index
    %c0_361 = arith.constant 0 : index
    %647 = vector.load %arg45[%c1_359, %c0_360, %c0_361] : memref<2x1x32xf32, #tpu.memory_space<vmem>>, vector<1x1x32xf32>
    %648 = vector.shape_cast %647 : vector<1x1x32xf32> to vector<1x32xf32>
    %cst_362 = arith.constant dense<0.000000e+00> : vector<8xf32>
    %649 = vector.multi_reduction <add>, %644, %cst_362 [1] : vector<8x32xf32> to vector<8xf32>
    %650 = vector.shape_cast %649 : vector<8xf32> to vector<8x1xf32>
    %cst_363 = arith.constant 3.200000e+01 : f32
    %651 = vector.broadcast %cst_363 : f32 to vector<8x1xf32>
    %652 = arith.divf %650, %651 : vector<8x1xf32>
    %653 = vector.broadcast %652 : vector<8x1xf32> to vector<8x32xf32>
    %654 = arith.subf %644, %653 : vector<8x32xf32>
    %655 = arith.mulf %654, %654 : vector<8x32xf32>
    %cst_364 = arith.constant dense<0.000000e+00> : vector<8xf32>
    %656 = vector.multi_reduction <add>, %655, %cst_364 [1] : vector<8x32xf32> to vector<8xf32>
    %657 = vector.shape_cast %656 : vector<8xf32> to vector<8x1xf32>
    %cst_365 = arith.constant 3.200000e+01 : f32
    %658 = vector.broadcast %cst_365 : f32 to vector<8x1xf32>
    %659 = arith.divf %657, %658 : vector<8x1xf32>
    %cst_366 = arith.constant 9.99999974E-6 : f32
    %660 = vector.broadcast %cst_366 : f32 to vector<8x1xf32>
    %661 = arith.addf %659, %660 : vector<8x1xf32>
    %662 = math.rsqrt %661 : vector<8x1xf32>
    %663 = vector.broadcast %662 : vector<8x1xf32> to vector<8x32xf32>
    %664 = arith.mulf %654, %663 : vector<8x32xf32>
    %665 = vector.broadcast %646 : vector<1x32xf32> to vector<8x32xf32>
    %666 = arith.mulf %664, %665 : vector<8x32xf32>
    %667 = vector.broadcast %648 : vector<1x32xf32> to vector<8x32xf32>
    %668 = arith.addf %666, %667 : vector<8x32xf32>
    %c1_367 = arith.constant 1 : index
    %c0_368 = arith.constant 0 : index
    %c0_369 = arith.constant 0 : index
    %669 = vector.load %arg38[%c1_367, %c0_368, %c0_369] : memref<2x32x64xbf16, #tpu.memory_space<vmem>>, vector<1x32x64xbf16>
    %670 = vector.shape_cast %669 : vector<1x32x64xbf16> to vector<32x64xbf16>
    %c1_370 = arith.constant 1 : index
    %c0_371 = arith.constant 0 : index
    %c0_372 = arith.constant 0 : index
    %671 = vector.load %arg39[%c1_370, %c0_371, %c0_372] : memref<2x1x64xf32, #tpu.memory_space<vmem>>, vector<1x1x64xf32>
    %672 = vector.shape_cast %671 : vector<1x1x64xf32> to vector<1x64xf32>
    %673 = arith.truncf %668 : vector<8x32xf32> to vector<8x32xbf16>
    %cst_373 = arith.constant dense<0.000000e+00> : vector<8x64xf32>
    %674 = tpu.matmul %673, %670, %cst_373 {dimension_numbers = #tpu.dot_dimension_numbers<[1], [0], [0], [1], [0, 0, 1, 1], [], []>} : vector<8x32xbf16>, vector<32x64xbf16>, vector<8x64xf32> -> vector<8x64xf32>
    %675 = vector.broadcast %672 : vector<1x64xf32> to vector<8x64xf32>
    %676 = arith.addf %674, %675 : vector<8x64xf32>
    %cst_374 = arith.constant 0.000000e+00 : f32
    %677 = vector.broadcast %cst_374 : f32 to vector<8x64xf32>
    %678 = arith.maximumf %676, %677 : vector<8x64xf32>
    %c1_375 = arith.constant 1 : index
    %c0_376 = arith.constant 0 : index
    %c0_377 = arith.constant 0 : index
    %679 = vector.load %arg40[%c1_375, %c0_376, %c0_377] : memref<2x64x32xbf16, #tpu.memory_space<vmem>>, vector<1x64x32xbf16>
    %680 = vector.shape_cast %679 : vector<1x64x32xbf16> to vector<64x32xbf16>
    %c1_378 = arith.constant 1 : index
    %c0_379 = arith.constant 0 : index
    %c0_380 = arith.constant 0 : index
    %681 = vector.load %arg41[%c1_378, %c0_379, %c0_380] : memref<2x1x32xf32, #tpu.memory_space<vmem>>, vector<1x1x32xf32>
    %682 = vector.shape_cast %681 : vector<1x1x32xf32> to vector<1x32xf32>
    %683 = arith.truncf %678 : vector<8x64xf32> to vector<8x64xbf16>
    %cst_381 = arith.constant dense<0.000000e+00> : vector<8x32xf32>
    %684 = tpu.matmul %683, %680, %cst_381 {dimension_numbers = #tpu.dot_dimension_numbers<[1], [0], [0], [1], [0, 0, 1, 1], [], []>} : vector<8x64xbf16>, vector<64x32xbf16>, vector<8x32xf32> -> vector<8x32xf32>
    %685 = vector.broadcast %682 : vector<1x32xf32> to vector<8x32xf32>
    %686 = arith.addf %684, %685 : vector<8x32xf32>
    %687 = arith.addf %668, %686 : vector<8x32xf32>
    %c1_382 = arith.constant 1 : index
    %c0_383 = arith.constant 0 : index
    %c0_384 = arith.constant 0 : index
    %688 = vector.load %arg46[%c1_382, %c0_383, %c0_384] : memref<2x1x32xf32, #tpu.memory_space<vmem>>, vector<1x1x32xf32>
    %689 = vector.shape_cast %688 : vector<1x1x32xf32> to vector<1x32xf32>
    %c1_385 = arith.constant 1 : index
    %c0_386 = arith.constant 0 : index
    %c0_387 = arith.constant 0 : index
    %690 = vector.load %arg47[%c1_385, %c0_386, %c0_387] : memref<2x1x32xf32, #tpu.memory_space<vmem>>, vector<1x1x32xf32>
    %691 = vector.shape_cast %690 : vector<1x1x32xf32> to vector<1x32xf32>
    %cst_388 = arith.constant dense<0.000000e+00> : vector<8xf32>
    %692 = vector.multi_reduction <add>, %687, %cst_388 [1] : vector<8x32xf32> to vector<8xf32>
    %693 = vector.shape_cast %692 : vector<8xf32> to vector<8x1xf32>
    %cst_389 = arith.constant 3.200000e+01 : f32
    %694 = vector.broadcast %cst_389 : f32 to vector<8x1xf32>
    %695 = arith.divf %693, %694 : vector<8x1xf32>
    %696 = vector.broadcast %695 : vector<8x1xf32> to vector<8x32xf32>
    %697 = arith.subf %687, %696 : vector<8x32xf32>
    %698 = arith.mulf %697, %697 : vector<8x32xf32>
    %cst_390 = arith.constant dense<0.000000e+00> : vector<8xf32>
    %699 = vector.multi_reduction <add>, %698, %cst_390 [1] : vector<8x32xf32> to vector<8xf32>
    %700 = vector.shape_cast %699 : vector<8xf32> to vector<8x1xf32>
    %cst_391 = arith.constant 3.200000e+01 : f32
    %701 = vector.broadcast %cst_391 : f32 to vector<8x1xf32>
    %702 = arith.divf %700, %701 : vector<8x1xf32>
    %cst_392 = arith.constant 9.99999974E-6 : f32
    %703 = vector.broadcast %cst_392 : f32 to vector<8x1xf32>
    %704 = arith.addf %702, %703 : vector<8x1xf32>
    %705 = math.rsqrt %704 : vector<8x1xf32>
    %706 = vector.broadcast %705 : vector<8x1xf32> to vector<8x32xf32>
    %707 = arith.mulf %697, %706 : vector<8x32xf32>
    %708 = vector.broadcast %689 : vector<1x32xf32> to vector<8x32xf32>
    %709 = arith.mulf %707, %708 : vector<8x32xf32>
    %710 = vector.broadcast %691 : vector<1x32xf32> to vector<8x32xf32>
    %711 = arith.addf %709, %710 : vector<8x32xf32>
    %c0_393 = arith.constant 0 : index
    %c0_394 = arith.constant 0 : index
    %712 = vector.load %arg50[%c0_393, %c0_394] : memref<1x32xf32, #tpu.memory_space<vmem>>, vector<1x32xf32>
    %c0_395 = arith.constant 0 : index
    %c0_396 = arith.constant 0 : index
    %713 = vector.load %arg51[%c0_395, %c0_396] : memref<1x32xf32, #tpu.memory_space<vmem>>, vector<1x32xf32>
    %cst_397 = arith.constant dense<0.000000e+00> : vector<8xf32>
    %714 = vector.multi_reduction <add>, %711, %cst_397 [1] : vector<8x32xf32> to vector<8xf32>
    %715 = vector.shape_cast %714 : vector<8xf32> to vector<8x1xf32>
    %cst_398 = arith.constant 3.200000e+01 : f32
    %716 = vector.broadcast %cst_398 : f32 to vector<8x1xf32>
    %717 = arith.divf %715, %716 : vector<8x1xf32>
    %718 = vector.broadcast %717 : vector<8x1xf32> to vector<8x32xf32>
    %719 = arith.subf %711, %718 : vector<8x32xf32>
    %720 = arith.mulf %719, %719 : vector<8x32xf32>
    %cst_399 = arith.constant dense<0.000000e+00> : vector<8xf32>
    %721 = vector.multi_reduction <add>, %720, %cst_399 [1] : vector<8x32xf32> to vector<8xf32>
    %722 = vector.shape_cast %721 : vector<8xf32> to vector<8x1xf32>
    %cst_400 = arith.constant 3.200000e+01 : f32
    %723 = vector.broadcast %cst_400 : f32 to vector<8x1xf32>
    %724 = arith.divf %722, %723 : vector<8x1xf32>
    %cst_401 = arith.constant 9.99999974E-6 : f32
    %725 = vector.broadcast %cst_401 : f32 to vector<8x1xf32>
    %726 = arith.addf %724, %725 : vector<8x1xf32>
    %727 = math.rsqrt %726 : vector<8x1xf32>
    %728 = vector.broadcast %727 : vector<8x1xf32> to vector<8x32xf32>
    %729 = arith.mulf %719, %728 : vector<8x32xf32>
    %730 = vector.broadcast %712 : vector<1x32xf32> to vector<8x32xf32>
    %731 = arith.mulf %729, %730 : vector<8x32xf32>
    %732 = vector.broadcast %713 : vector<1x32xf32> to vector<8x32xf32>
    %733 = arith.addf %731, %732 : vector<8x32xf32>
    %c0_402 = arith.constant 0 : index
    %c0_403 = arith.constant 0 : index
    %734 = vector.load %arg52[%c0_402, %c0_403] : memref<32x128xbf16, #tpu.memory_space<vmem>>, vector<32x128xbf16>
    %c0_404 = arith.constant 0 : index
    %c0_405 = arith.constant 0 : index
    %735 = vector.load %arg53[%c0_404, %c0_405] : memref<1x128xf32, #tpu.memory_space<vmem>>, vector<1x128xf32>
    %736 = arith.truncf %733 : vector<8x32xf32> to vector<8x32xbf16>
    %cst_406 = arith.constant dense<0.000000e+00> : vector<8x128xf32>
    %737 = tpu.matmul %736, %734, %cst_406 {dimension_numbers = #tpu.dot_dimension_numbers<[1], [0], [0], [1], [0, 0, 1, 1], [], []>} : vector<8x32xbf16>, vector<32x128xbf16>, vector<8x128xf32> -> vector<8x128xf32>
    %738 = vector.broadcast %735 : vector<1x128xf32> to vector<8x128xf32>
    %739 = arith.addf %737, %738 : vector<8x128xf32>
    %c0_407 = arith.constant 0 : index
    %c0_408 = arith.constant 0 : index
    %c0_409 = arith.constant 0 : index
    %740 = vector.load %arg54[%c0_407, %c0_408, %c0_409] : memref<1x8x128xf32, #tpu.memory_space<vmem>>, vector<1x8x128xf32>
    %741 = vector.shape_cast %740 : vector<1x8x128xf32> to vector<8x128xf32>
    %742 = vector.shape_cast %739 : vector<8x128xf32> to vector<1x8x128xf32>
    tpu.vector_store %arg54[%c0_407, %c0_408, %c0_409], %742 {strides = array<i32>} : memref<1x8x128xf32, #tpu.memory_space<vmem>>, vector<1x8x128xf32>,
    return
  }
  func.func @transform_0(%arg0: i32) -> (i32, i32, i32) {
    %c0_i32 = arith.constant 0 : i32
    %c0_i32_0 = arith.constant 0 : i32
    %c0_i32_1 = arith.constant 0 : i32
    return %arg0, %c0_i32, %c0_i32_0 : i32, i32, i32
  }
  func.func @transform_1(%arg0: i32) -> (i32, i32, i32) {
    %c0_i32 = arith.constant 0 : i32
    %c0_i32_0 = arith.constant 0 : i32
    %c0_i32_1 = arith.constant 0 : i32
    return %arg0, %c0_i32, %c0_i32_0 : i32, i32, i32
  }
  func.func @transform_2(%arg0: i32) -> (i32, i32, i32) {
    %c0_i32 = arith.constant 0 : i32
    %c0_i32_0 = arith.constant 0 : i32
    %c0_i32_1 = arith.constant 0 : i32
    return %arg0, %c0_i32, %c0_i32_0 : i32, i32, i32
  }
  func.func @transform_3(%arg0: i32) -> (i32, i32, i32) {
    %c0_i32 = arith.constant 0 : i32
    %c0_i32_0 = arith.constant 0 : i32
    %c0_i32_1 = arith.constant 0 : i32
    return %arg0, %c0_i32, %c0_i32_0 : i32, i32, i32
  }
  func.func @transform_4(%arg0: i32) -> (i32, i32, i32) {
    %c0_i32 = arith.constant 0 : i32
    %c0_i32_0 = arith.constant 0 : i32
    %c0_i32_1 = arith.constant 0 : i32
    return %arg0, %c0_i32, %c0_i32_0 : i32, i32, i32
  }
  func.func @transform_5(%arg0: i32) -> (i32, i32, i32) {
    %c0_i32 = arith.constant 0 : i32
    %c0_i32_0 = arith.constant 0 : i32
    %c0_i32_1 = arith.constant 0 : i32
    %c0_i32_2 = arith.constant 0 : i32
    return %c0_i32, %c0_i32_0, %c0_i32_1 : i32, i32, i32
  }
  func.func @transform_6(%arg0: i32) -> (i32, i32, i32) {
    %c0_i32 = arith.constant 0 : i32
    %c0_i32_0 = arith.constant 0 : i32
    %c0_i32_1 = arith.constant 0 : i32
    %c0_i32_2 = arith.constant 0 : i32
    return %c0_i32, %c0_i32_0, %c0_i32_1 : i32, i32, i32
  }
  func.func @transform_7(%arg0: i32) -> (i32, i32, i32) {
    %c0_i32 = arith.constant 0 : i32
    %c0_i32_0 = arith.constant 0 : i32
    %c0_i32_1 = arith.constant 0 : i32
    %c0_i32_2 = arith.constant 0 : i32
    return %c0_i32, %c0_i32_0, %c0_i32_1 : i32, i32, i32
  }
  func.func @transform_8(%arg0: i32) -> (i32, i32, i32) {
    %c0_i32 = arith.constant 0 : i32
    %c0_i32_0 = arith.constant 0 : i32
    %c0_i32_1 = arith.constant 0 : i32
    %c0_i32_2 = arith.constant 0 : i32
    return %c0_i32, %c0_i32_0, %c0_i32_1 : i32, i32, i32
  }
  func.func @transform_9(%arg0: i32) -> (i32, i32, i32) {
    %c0_i32 = arith.constant 0 : i32
    %c0_i32_0 = arith.constant 0 : i32
    %c0_i32_1 = arith.constant 0 : i32
    %c0_i32_2 = arith.constant 0 : i32
    return %c0_i32, %c0_i32_0, %c0_i32_1 : i32, i32, i32
  }
  func.func @transform_10(%arg0: i32) -> (i32, i32, i32) {
    %c0_i32 = arith.constant 0 : i32
    %c0_i32_0 = arith.constant 0 : i32
    %c0_i32_1 = arith.constant 0 : i32
    %c0_i32_2 = arith.constant 0 : i32
    return %c0_i32, %c0_i32_0, %c0_i32_1 : i32, i32, i32
  }
  func.func @transform_11(%arg0: i32) -> (i32, i32, i32) {
    %c0_i32 = arith.constant 0 : i32
    %c0_i32_0 = arith.constant 0 : i32
    %c0_i32_1 = arith.constant 0 : i32
    %c0_i32_2 = arith.constant 0 : i32
    return %c0_i32, %c0_i32_0, %c0_i32_1 : i32, i32, i32
  }
  func.func @transform_12(%arg0: i32) -> (i32, i32, i32) {
    %c0_i32 = arith.constant 0 : i32
    %c0_i32_0 = arith.constant 0 : i32
    %c0_i32_1 = arith.constant 0 : i32
    %c0_i32_2 = arith.constant 0 : i32
    return %c0_i32, %c0_i32_0, %c0_i32_1 : i32, i32, i32
  }
  func.func @transform_13(%arg0: i32) -> (i32, i32, i32) {
    %c0_i32 = arith.constant 0 : i32
    %c0_i32_0 = arith.constant 0 : i32
    %c0_i32_1 = arith.constant 0 : i32
    %c0_i32_2 = arith.constant 0 : i32
    return %c0_i32, %c0_i32_0, %c0_i32_1 : i32, i32, i32
  }
  func.func @transform_14(%arg0: i32) -> (i32, i32, i32) {
    %c0_i32 = arith.constant 0 : i32
    %c0_i32_0 = arith.constant 0 : i32
    %c0_i32_1 = arith.constant 0 : i32
    %c0_i32_2 = arith.constant 0 : i32
    return %c0_i32, %c0_i32_0, %c0_i32_1 : i32, i32, i32
  }
  func.func @transform_15(%arg0: i32) -> (i32, i32, i32) {
    %c0_i32 = arith.constant 0 : i32
    %c0_i32_0 = arith.constant 0 : i32
    %c0_i32_1 = arith.constant 0 : i32
    %c0_i32_2 = arith.constant 0 : i32
    return %c0_i32, %c0_i32_0, %c0_i32_1 : i32, i32, i32
  }
  func.func @transform_16(%arg0: i32) -> (i32, i32, i32) {
    %c0_i32 = arith.constant 0 : i32
    %c0_i32_0 = arith.constant 0 : i32
    %c0_i32_1 = arith.constant 0 : i32
    %c0_i32_2 = arith.constant 0 : i32
    return %c0_i32, %c0_i32_0, %c0_i32_1 : i32, i32, i32
  }
  func.func @transform_17(%arg0: i32) -> (i32, i32, i32) {
    %c0_i32 = arith.constant 0 : i32
    %c0_i32_0 = arith.constant 0 : i32
    %c0_i32_1 = arith.constant 0 : i32
    %c0_i32_2 = arith.constant 0 : i32
    return %c0_i32, %c0_i32_0, %c0_i32_1 : i32, i32, i32
  }
  func.func @transform_18(%arg0: i32) -> (i32, i32, i32) {
    %c0_i32 = arith.constant 0 : i32
    %c0_i32_0 = arith.constant 0 : i32
    %c0_i32_1 = arith.constant 0 : i32
    %c0_i32_2 = arith.constant 0 : i32
    return %c0_i32, %c0_i32_0, %c0_i32_1 : i32, i32, i32
  }
  func.func @transform_19(%arg0: i32) -> (i32, i32, i32) {
    %c0_i32 = arith.constant 0 : i32
    %c0_i32_0 = arith.constant 0 : i32
    %c0_i32_1 = arith.constant 0 : i32
    %c0_i32_2 = arith.constant 0 : i32
    return %c0_i32, %c0_i32_0, %c0_i32_1 : i32, i32, i32
  }
  func.func @transform_20(%arg0: i32) -> (i32, i32, i32) {
    %c0_i32 = arith.constant 0 : i32
    %c0_i32_0 = arith.constant 0 : i32
    %c0_i32_1 = arith.constant 0 : i32
    %c0_i32_2 = arith.constant 0 : i32
    return %c0_i32, %c0_i32_0, %c0_i32_1 : i32, i32, i32
  }
  func.func @transform_21(%arg0: i32) -> (i32, i32, i32) {
    %c0_i32 = arith.constant 0 : i32
    %c0_i32_0 = arith.constant 0 : i32
    %c0_i32_1 = arith.constant 0 : i32
    %c0_i32_2 = arith.constant 0 : i32
    return %c0_i32, %c0_i32_0, %c0_i32_1 : i32, i32, i32
  }
  func.func @transform_22(%arg0: i32) -> (i32, i32, i32) {
    %c0_i32 = arith.constant 0 : i32
    %c0_i32_0 = arith.constant 0 : i32
    %c0_i32_1 = arith.constant 0 : i32
    %c0_i32_2 = arith.constant 0 : i32
    return %c0_i32, %c0_i32_0, %c0_i32_1 : i32, i32, i32
  }
  func.func @transform_23(%arg0: i32) -> (i32, i32, i32) {
    %c0_i32 = arith.constant 0 : i32
    %c0_i32_0 = arith.constant 0 : i32
    %c0_i32_1 = arith.constant 0 : i32
    %c0_i32_2 = arith.constant 0 : i32
    return %c0_i32, %c0_i32_0, %c0_i32_1 : i32, i32, i32
  }
  func.func @transform_24(%arg0: i32) -> (i32, i32, i32) {
    %c0_i32 = arith.constant 0 : i32
    %c0_i32_0 = arith.constant 0 : i32
    %c0_i32_1 = arith.constant 0 : i32
    %c0_i32_2 = arith.constant 0 : i32
    return %c0_i32, %c0_i32_0, %c0_i32_1 : i32, i32, i32
  }
  func.func @transform_25(%arg0: i32) -> (i32, i32, i32) {
    %c0_i32 = arith.constant 0 : i32
    %c0_i32_0 = arith.constant 0 : i32
    %c0_i32_1 = arith.constant 0 : i32
    %c0_i32_2 = arith.constant 0 : i32
    return %c0_i32, %c0_i32_0, %c0_i32_1 : i32, i32, i32
  }
  func.func @transform_26(%arg0: i32) -> (i32, i32, i32) {
    %c0_i32 = arith.constant 0 : i32
    %c0_i32_0 = arith.constant 0 : i32
    %c0_i32_1 = arith.constant 0 : i32
    %c0_i32_2 = arith.constant 0 : i32
    return %c0_i32, %c0_i32_0, %c0_i32_1 : i32, i32, i32
  }
  func.func @transform_27(%arg0: i32) -> (i32, i32, i32) {
    %c0_i32 = arith.constant 0 : i32
    %c0_i32_0 = arith.constant 0 : i32
    %c0_i32_1 = arith.constant 0 : i32
    %c0_i32_2 = arith.constant 0 : i32
    return %c0_i32, %c0_i32_0, %c0_i32_1 : i32, i32, i32
  }
  func.func @transform_28(%arg0: i32) -> (i32, i32, i32) {
    %c0_i32 = arith.constant 0 : i32
    %c0_i32_0 = arith.constant 0 : i32
    %c0_i32_1 = arith.constant 0 : i32
    %c0_i32_2 = arith.constant 0 : i32
    return %c0_i32, %c0_i32_0, %c0_i32_1 : i32, i32, i32
  }
  func.func @transform_29(%arg0: i32) -> (i32, i32, i32) {
    %c0_i32 = arith.constant 0 : i32
    %c0_i32_0 = arith.constant 0 : i32
    %c0_i32_1 = arith.constant 0 : i32
    %c0_i32_2 = arith.constant 0 : i32
    return %c0_i32, %c0_i32_0, %c0_i32_1 : i32, i32, i32
  }
  func.func @transform_30(%arg0: i32) -> (i32, i32, i32) {
    %c0_i32 = arith.constant 0 : i32
    %c0_i32_0 = arith.constant 0 : i32
    %c0_i32_1 = arith.constant 0 : i32
    %c0_i32_2 = arith.constant 0 : i32
    return %c0_i32, %c0_i32_0, %c0_i32_1 : i32, i32, i32
  }
  func.func @transform_31(%arg0: i32) -> (i32, i32, i32) {
    %c0_i32 = arith.constant 0 : i32
    %c0_i32_0 = arith.constant 0 : i32
    %c0_i32_1 = arith.constant 0 : i32
    %c0_i32_2 = arith.constant 0 : i32
    return %c0_i32, %c0_i32_0, %c0_i32_1 : i32, i32, i32
  }
  func.func @transform_32(%arg0: i32) -> (i32, i32, i32) {
    %c0_i32 = arith.constant 0 : i32
    %c0_i32_0 = arith.constant 0 : i32
    %c0_i32_1 = arith.constant 0 : i32
    %c0_i32_2 = arith.constant 0 : i32
    return %c0_i32, %c0_i32_0, %c0_i32_1 : i32, i32, i32
  }
  func.func @transform_33(%arg0: i32) -> (i32, i32, i32) {
    %c0_i32 = arith.constant 0 : i32
    %c0_i32_0 = arith.constant 0 : i32
    %c0_i32_1 = arith.constant 0 : i32
    %c0_i32_2 = arith.constant 0 : i32
    return %c0_i32, %c0_i32_0, %c0_i32_1 : i32, i32, i32
  }
  func.func @transform_34(%arg0: i32) -> (i32, i32, i32) {
    %c0_i32 = arith.constant 0 : i32
    %c0_i32_0 = arith.constant 0 : i32
    %c0_i32_1 = arith.constant 0 : i32
    %c0_i32_2 = arith.constant 0 : i32
    return %c0_i32, %c0_i32_0, %c0_i32_1 : i32, i32, i32
  }
  func.func @transform_35(%arg0: i32) -> (i32, i32, i32) {
    %c0_i32 = arith.constant 0 : i32
    %c0_i32_0 = arith.constant 0 : i32
    %c0_i32_1 = arith.constant 0 : i32
    %c0_i32_2 = arith.constant 0 : i32
    return %c0_i32, %c0_i32_0, %c0_i32_1 : i32, i32, i32
  }
  func.func @transform_36(%arg0: i32) -> (i32, i32, i32) {
    %c0_i32 = arith.constant 0 : i32
    %c0_i32_0 = arith.constant 0 : i32
    %c0_i32_1 = arith.constant 0 : i32
    %c0_i32_2 = arith.constant 0 : i32
    return %c0_i32, %c0_i32_0, %c0_i32_1 : i32, i32, i32
  }
  func.func @transform_37(%arg0: i32) -> (i32, i32, i32) {
    %c0_i32 = arith.constant 0 : i32
    %c0_i32_0 = arith.constant 0 : i32
    %c0_i32_1 = arith.constant 0 : i32
    %c0_i32_2 = arith.constant 0 : i32
    return %c0_i32, %c0_i32_0, %c0_i32_1 : i32, i32, i32
  }
  func.func @transform_38(%arg0: i32) -> (i32, i32, i32) {
    %c0_i32 = arith.constant 0 : i32
    %c0_i32_0 = arith.constant 0 : i32
    %c0_i32_1 = arith.constant 0 : i32
    %c0_i32_2 = arith.constant 0 : i32
    return %c0_i32, %c0_i32_0, %c0_i32_1 : i32, i32, i32
  }
  func.func @transform_39(%arg0: i32) -> (i32, i32, i32) {
    %c0_i32 = arith.constant 0 : i32
    %c0_i32_0 = arith.constant 0 : i32
    %c0_i32_1 = arith.constant 0 : i32
    %c0_i32_2 = arith.constant 0 : i32
    return %c0_i32, %c0_i32_0, %c0_i32_1 : i32, i32, i32
  }
  func.func @transform_40(%arg0: i32) -> (i32, i32, i32) {
    %c0_i32 = arith.constant 0 : i32
    %c0_i32_0 = arith.constant 0 : i32
    %c0_i32_1 = arith.constant 0 : i32
    %c0_i32_2 = arith.constant 0 : i32
    return %c0_i32, %c0_i32_0, %c0_i32_1 : i32, i32, i32
  }
  func.func @transform_41(%arg0: i32) -> (i32, i32, i32) {
    %c0_i32 = arith.constant 0 : i32
    %c0_i32_0 = arith.constant 0 : i32
    %c0_i32_1 = arith.constant 0 : i32
    %c0_i32_2 = arith.constant 0 : i32
    return %c0_i32, %c0_i32_0, %c0_i32_1 : i32, i32, i32
  }
  func.func @transform_42(%arg0: i32) -> (i32, i32, i32) {
    %c0_i32 = arith.constant 0 : i32
    %c0_i32_0 = arith.constant 0 : i32
    %c0_i32_1 = arith.constant 0 : i32
    %c0_i32_2 = arith.constant 0 : i32
    return %c0_i32, %c0_i32_0, %c0_i32_1 : i32, i32, i32
  }
  func.func @transform_43(%arg0: i32) -> (i32, i32, i32) {
    %c0_i32 = arith.constant 0 : i32
    %c0_i32_0 = arith.constant 0 : i32
    %c0_i32_1 = arith.constant 0 : i32
    %c0_i32_2 = arith.constant 0 : i32
    return %c0_i32, %c0_i32_0, %c0_i32_1 : i32, i32, i32
  }
  func.func @transform_44(%arg0: i32) -> (i32, i32, i32) {
    %c0_i32 = arith.constant 0 : i32
    %c0_i32_0 = arith.constant 0 : i32
    %c0_i32_1 = arith.constant 0 : i32
    %c0_i32_2 = arith.constant 0 : i32
    return %c0_i32, %c0_i32_0, %c0_i32_1 : i32, i32, i32
  }
  func.func @transform_45(%arg0: i32) -> (i32, i32, i32) {
    %c0_i32 = arith.constant 0 : i32
    %c0_i32_0 = arith.constant 0 : i32
    %c0_i32_1 = arith.constant 0 : i32
    %c0_i32_2 = arith.constant 0 : i32
    return %c0_i32, %c0_i32_0, %c0_i32_1 : i32, i32, i32
  }
  func.func @transform_46(%arg0: i32) -> (i32, i32, i32) {
    %c0_i32 = arith.constant 0 : i32
    %c0_i32_0 = arith.constant 0 : i32
    %c0_i32_1 = arith.constant 0 : i32
    %c0_i32_2 = arith.constant 0 : i32
    return %c0_i32, %c0_i32_0, %c0_i32_1 : i32, i32, i32
  }
  func.func @transform_47(%arg0: i32) -> (i32, i32) {
    %c0_i32 = arith.constant 0 : i32
    %c0_i32_0 = arith.constant 0 : i32
    %c0_i32_1 = arith.constant 0 : i32
    return %c0_i32, %c0_i32_0 : i32, i32
  }
  func.func @transform_48(%arg0: i32) -> (i32, i32) {
    %c0_i32 = arith.constant 0 : i32
    %c0_i32_0 = arith.constant 0 : i32
    %c0_i32_1 = arith.constant 0 : i32
    return %c0_i32, %c0_i32_0 : i32, i32
  }
  func.func @transform_49(%arg0: i32) -> (i32, i32) {
    %c0_i32 = arith.constant 0 : i32
    %c0_i32_0 = arith.constant 0 : i32
    %c0_i32_1 = arith.constant 0 : i32
    return %c0_i32, %c0_i32_0 : i32, i32
  }
  func.func @transform_50(%arg0: i32) -> (i32, i32) {
    %c0_i32 = arith.constant 0 : i32
    %c0_i32_0 = arith.constant 0 : i32
    %c0_i32_1 = arith.constant 0 : i32
    return %c0_i32, %c0_i32_0 : i32, i32
  }
  func.func @transform_51(%arg0: i32) -> (i32, i32) {
    %c0_i32 = arith.constant 0 : i32
    %c0_i32_0 = arith.constant 0 : i32
    %c0_i32_1 = arith.constant 0 : i32
    return %c0_i32, %c0_i32_0 : i32, i32
  }
  func.func @transform_52(%arg0: i32) -> (i32, i32) {
    %c0_i32 = arith.constant 0 : i32
    %c0_i32_0 = arith.constant 0 : i32
    %c0_i32_1 = arith.constant 0 : i32
    return %c0_i32, %c0_i32_0 : i32, i32
  }
  func.func @transform_53(%arg0: i32) -> (i32, i32, i32) {
    %c0_i32 = arith.constant 0 : i32
    %c0_i32_0 = arith.constant 0 : i32
    %c0_i32_1 = arith.constant 0 : i32
    return %arg0, %c0_i32, %c0_i32_0 : i32, i32, i32
  }
}

</mosaic_0001>

<bundles_post_ra>
// kernel: fwd.1
= control target key start
LH: loop header
LB: loop body
LE: loop exit
PB: predicated region body
PF: predicated region fallthrough
CT: control target
= control target key end

     0   :  { %s10991_s6 = smov 1   ;;  %s10992_s10 = smov 2   ;;  %s12252_s0 = inlined_call_operand.smem [shape: u32[54], index: -1, kind: input, shape index: {}] }
   0x1   :  { %s11062_s5 = sld [smem:[%s12252_s0]]   ;;  %s10993_s14 = smov 3  }
   0x2   :  { %s11067_s9 = sld [smem:[%s12252_s0 + %s10991_s6]]   ;;  %s10994_s18 = smov 4  }
   0x3   :  { %s11072_s13 = sld [smem:[%s12252_s0 + %s10992_s10]]   ;;  %s10995_s22 = smov 5  }
   0x4   :  { %s11077_s17 = sld [smem:[%s12252_s0 + %s10993_s14]]   ;;  %s10996_s26 = smov 6  }
   0x5   :  { %s11082_s21 = sld [smem:[%s12252_s0 + %s10994_s18]]   ;;  %s10997_s30 = smov 7  }
   0x6   :  { %s11087_s25 = sld [smem:[%s12252_s0 + %s10995_s22]]   ;;  %s10998_s4 = smov 8  }
   0x7   :  { %12316 = sst [smem:[#allocation2_spill]] %s11062_s5  ;;  %s10999_s10 = smov 9  }
   0x8   :  { %12317 = sst [smem:[#allocation3_spill]] %s11067_s9  ;;  %s11000_s15 = smov 10  }
   0x9   :  { %12318 = sst [smem:[#allocation4_spill]] %s11072_s13  ;;  %s11001_s20 = smov 11  }
   0xa   :  { %12319 = sst [smem:[#allocation5_spill]] %s11077_s17  ;;  %s11003_s1 = smov 13  }
   0xb   :  { %12320 = sst [smem:[#allocation6_spill]] %s11082_s21  ;;  %s11004_s7 = smov 14  }
   0xc   :  { %12321 = sst [smem:[#allocation7_spill]] %s11087_s25  ;;  %s11006_s22 = smov 16  }
   0xd   :  { %s11092_s29 = sld [smem:[%s12252_s0 + %s10996_s26]]   ;;  %s11002_s26 = smov 12  }
   0xe   :  { %s11097_s3 = sld [smem:[%s12252_s0 + %s10997_s30]]   ;;  %s11007_s28 = smov 17  }
   0xf   :  { %s11102_s8 = sld [smem:[%s12252_s0 + %s10998_s4]]  }
  0x10   :  { %s11107_s14 = sld [smem:[%s12252_s0 + %s10999_s10]]  }
  0x11   :  { %s11112_s19 = sld [smem:[%s12252_s0 + %s11000_s15]]   ;;  %s11005_s15 = smov 15  }
  0x12   :  { %s11117_s24 = sld [smem:[%s12252_s0 + %s11001_s20]]  }
  0x13   :  { %12322 = sst [smem:[#allocation8_spill]] %s11092_s29 }
  0x14   :  { %12323 = sst [smem:[#allocation9_spill]] %s11097_s3 }
  0x15   :  { %12324 = sst [smem:[#allocation10_spill]] %s11102_s8 }
  0x16   :  { %12325 = sst [smem:[#allocation11_spill]] %s11107_s14 }
  0x17   :  { %12326 = sst [smem:[#allocation12_spill]] %s11112_s19 }
  0x18   :  { %12327 = sst [smem:[#allocation13_spill]] %s11117_s24 }
  0x19   :  { %s11122_s30 = sld [smem:[%s12252_s0 + %s11002_s26]]  }
  0x1a   :  { %s11127_s6 = sld [smem:[%s12252_s0 + %s11003_s1]]  }
  0x1b   :  { %s11132_s12 = sld [smem:[%s12252_s0 + %s11004_s7]]   ;;  %s11008_s7 = smov 18  }
  0x1c   :  { %s11137_s20 = sld [smem:[%s12252_s0 + %s11005_s15]]   ;;  %s11009_s15 = smov 19  }
  0x1d   :  { %s11142_s27 = sld [smem:[%s12252_s0 + %s11006_s22]]   ;;  %s11010_s22 = smov 20  }
  0x1e   :  { %s11147_s4 = sld [smem:[%s12252_s0 + %s11007_s28]]   ;;  %s11011_s28 = smov 21  }
  0x1f   :  { %12328 = sst [smem:[#allocation14_spill]] %s11122_s30 }
  0x20   :  { %12329 = sst [smem:[#allocation15_spill]] %s11127_s6 }
  0x21   :  { %12330 = sst [smem:[#allocation16_spill]] %s11132_s12 }
  0x22   :  { %12331 = sst [smem:[#allocation17_spill]] %s11137_s20 }
  0x23   :  { %12332 = sst [smem:[#allocation18_spill]] %s11142_s27 }
  0x24   :  { %12333 = sst [smem:[#allocation19_spill]] %s11147_s4 }
  0x25   :  { %s11152_s17 = sld [smem:[%s12252_s0 + %s11008_s7]]   ;;  %s11012_s7 = smov 22  }
  0x26   :  { %s11157_s9 = sld [smem:[%s12252_s0 + %s11009_s15]]   ;;  %s11013_s15 = smov 23  }
  0x27   :  { %s11162_s27 = sld [smem:[%s12252_s0 + %s11010_s22]]   ;;  %s11014_s22 = smov 24  }
  0x28   :  { %s11167_s12 = sld [smem:[%s12252_s0 + %s11011_s28]]   ;;  %s11015_s28 = smov 25  }
  0x2b   :  { %12334 = sst [smem:[#allocation20_spill]] %s11152_s17 }
  0x2c   :  { %12335 = sst [smem:[#allocation21_spill]] %s11157_s9 }
  0x2d   :  { %12336 = sst [smem:[#allocation22_spill]] %s11162_s27 }
  0x2e   :  { %12337 = sst [smem:[#allocation23_spill]] %s11167_s12 }
  0x2f   :  { %s11172_s17 = sld [smem:[%s12252_s0 + %s11012_s7]]   ;;  %s11016_s7 = smov 26  }
  0x30   :  { %s11177_s9 = sld [smem:[%s12252_s0 + %s11013_s15]]   ;;  %s11017_s15 = smov 27  }
  0x31   :  { %s11182_s27 = sld [smem:[%s12252_s0 + %s11014_s22]]   ;;  %s11018_s22 = smov 28  }
  0x32   :  { %s11187_s12 = sld [smem:[%s12252_s0 + %s11015_s28]]   ;;  %s11019_s28 = smov 29  }
  0x35   :  { %12338 = sst [smem:[#allocation24_spill]] %s11172_s17 }
  0x36   :  { %12339 = sst [smem:[#allocation25_spill]] %s11177_s9 }
  0x37   :  { %12340 = sst [smem:[#allocation26_spill]] %s11182_s27 }
  0x38   :  { %12341 = sst [smem:[#allocation27_spill]] %s11187_s12 }
  0x39   :  { %s11192_s17 = sld [smem:[%s12252_s0 + %s11016_s7]]   ;;  %s11020_s7 = smov 30  }
  0x3a   :  { %s11197_s9 = sld [smem:[%s12252_s0 + %s11017_s15]]   ;;  %s11021_s15 = smov 31  }
  0x3b   :  { %s11202_s27 = sld [smem:[%s12252_s0 + %s11018_s22]]   ;;  %s11022_s22 = smov 32  }
  0x3c   :  { %s11207_s12 = sld [smem:[%s12252_s0 + %s11019_s28]]   ;;  %s11023_s28 = smov 33  }
  0x3f   :  { %12342 = sst [smem:[#allocation28_spill]] %s11192_s17 }
  0x40   :  { %12343 = sst [smem:[#allocation29_spill]] %s11197_s9 }
  0x41   :  { %12344 = sst [smem:[#allocation30_spill]] %s11202_s27 }
  0x42   :  { %12345 = sst [smem:[#allocation31_spill]] %s11207_s12 }
  0x43   :  { %s11212_s17 = sld [smem:[%s12252_s0 + %s11020_s7]]   ;;  %s11024_s7 = smov 34  }
  0x44   :  { %s11217_s9 = sld [smem:[%s12252_s0 + %s11021_s15]]   ;;  %s11025_s15 = smov 35  }
  0x45   :  { %s11222_s27 = sld [smem:[%s12252_s0 + %s11022_s22]]   ;;  %s11026_s22 = smov 36  }
  0x46   :  { %s11227_s12 = sld [smem:[%s12252_s0 + %s11023_s28]]   ;;  %s11027_s28 = smov 37  }
  0x49   :  { %12346 = sst [smem:[#allocation32_spill]] %s11212_s17 }
  0x4a   :  { %12347 = sst [smem:[#allocation33_spill]] %s11217_s9 }
  0x4b   :  { %12348 = sst [smem:[#allocation34_spill]] %s11222_s27 }
  0x4c   :  { %12349 = sst [smem:[#allocation35_spill]] %s11227_s12 }
  0x4d   :  { %s11232_s17 = sld [smem:[%s12252_s0 + %s11024_s7]]   ;;  %s11028_s7 = smov 38  }
  0x4e   :  { %s11237_s9 = sld [smem:[%s12252_s0 + %s11025_s15]]   ;;  %s11029_s15 = smov 39  }
  0x4f   :  { %s11242_s27 = sld [smem:[%s12252_s0 + %s11026_s22]]   ;;  %s11030_s22 = smov 40  }
  0x50   :  { %s11247_s12 = sld [smem:[%s12252_s0 + %s11027_s28]]   ;;  %s11031_s28 = smov 41  }
  0x53   :  { %12350 = sst [smem:[#allocation36_spill]] %s11232_s17 }
  0x54   :  { %12351 = sst [smem:[#allocation37_spill]] %s11237_s9 }
  0x55   :  { %12352 = sst [smem:[#allocation38_spill]] %s11242_s27 }
  0x56   :  { %12353 = sst [smem:[#allocation39_spill]] %s11247_s12 }
  0x57   :  { %s11252_s17 = sld [smem:[%s12252_s0 + %s11028_s7]]   ;;  %s11032_s7 = smov 42  }
  0x58   :  { %s11257_s9 = sld [smem:[%s12252_s0 + %s11029_s15]]   ;;  %s11033_s15 = smov 43  }
  0x59   :  { %s11262_s27 = sld [smem:[%s12252_s0 + %s11030_s22]]   ;;  %s11034_s22 = smov 44  }
  0x5a   :  { %s11267_s12 = sld [smem:[%s12252_s0 + %s11031_s28]]   ;;  %s11035_s28 = smov 45  }
  0x5d   :  { %12354 = sst [smem:[#allocation40_spill]] %s11252_s17 }
  0x5e   :  { %12355 = sst [smem:[#allocation41_spill]] %s11257_s9 }
  0x5f   :  { %12356 = sst [smem:[#allocation42_spill]] %s11262_s27 }
  0x60   :  { %12357 = sst [smem:[#allocation43_spill]] %s11267_s12 }
  0x61   :  { %s11272_s17 = sld [smem:[%s12252_s0 + %s11032_s7]]   ;;  %s11036_s7 = smov 46  }
  0x62   :  { %s11277_s9 = sld [smem:[%s12252_s0 + %s11033_s15]]   ;;  %s11037_s15 = smov 47  }
  0x63   :  { %s11282_s27 = sld [smem:[%s12252_s0 + %s11034_s22]]   ;;  %s11038_s22 = smov 48  }
  0x64   :  { %s11287_s12 = sld [smem:[%s12252_s0 + %s11035_s28]]   ;;  %s11039_s28 = smov 49  }
  0x67   :  { %12358 = sst [smem:[#allocation44_spill]] %s11272_s17 }
  0x68   :  { %12359 = sst [smem:[#allocation45_spill]] %s11277_s9 }
  0x69   :  { %12360 = sst [smem:[#allocation46_spill]] %s11282_s27 }
  0x6a   :  { %12361 = sst [smem:[#allocation47_spill]] %s11287_s12 }
  0x6b   :  { %s11292_s17 = sld [smem:[%s12252_s0 + %s11036_s7]]   ;;  %s11040_s7 = smov 50  }
  0x6c   :  { %s11297_s9 = sld [smem:[%s12252_s0 + %s11037_s15]]   ;;  %s11041_s15 = smov 51  }
  0x6d   :  { %s11302_s27 = sld [smem:[%s12252_s0 + %s11038_s22]]   ;;  %s11042_s22 = smov 52  }
  0x6e   :  { %s11307_s12 = sld [smem:[%s12252_s0 + %s11039_s28]]   ;;  %s11043_s28 = smov 53  }
  0x71   :  { %12362 = sst [smem:[#allocation48_spill]] %s11292_s17 }
  0x72   :  { %12363 = sst [smem:[#allocation49_spill]] %s11297_s9 }
  0x73   :  { %12364 = sst [smem:[#allocation50_spill]] %s11302_s27 }
  0x74   :  { %12365 = sst [smem:[#allocation51_spill]] %s11307_s12 }
  0x75   :  { %s11312_s17 = sld [smem:[%s12252_s0 + %s11040_s7]]   ;;  %s11329_s7 = smov 0  }
  0x76   :  { %s11317_s9 = sld [smem:[%s12252_s0 + %s11041_s15]]  }
  0x77   :  { %s11322_s27 = sld [smem:[%s12252_s0 + %s11042_s22]]  }
  0x78   :  { %s11327_s12 = sld [smem:[%s12252_s0 + %s11043_s28]]  }
  0x7b   :  { %12366 = sst [smem:[#allocation52_spill]] %s11312_s17 }
  0x7c   :  { %12367 = sst [smem:[#allocation53_spill]] %s11317_s9 }
  0x7d   :  { %12368 = sst [smem:[#allocation54_spill]] %s11322_s27 }
  0x7e   :  { %12369 = sst [smem:[#allocation55_spill]] %s11327_s12 }
  0x7f LB: > { %s12370_s30 = sld [smem:[#allocation14_spill]]  ;;  %s12371_s29 = sld [smem:[#allocation8_spill]]  ;;  %s10989_s7 = sphi %s11329_s7, %s117_s7  }
  0x80   : > { %s12372_s25 = sld [smem:[#allocation7_spill]]  ;;  %s12373_s24 = sld [smem:[#allocation13_spill]] }
  0x81   : > { %s12374_s20 = sld [smem:[#allocation17_spill]]  ;;  %s12375_s19 = sld [smem:[#allocation12_spill]] }
  0x82   : > { %s12376_s14 = sld [smem:[#allocation11_spill]]  ;;  %s12377_s8 = sld [smem:[#allocation10_spill]] }
  0x83   : > { %s12378_s6 = sld [smem:[#allocation15_spill]]  ;;  %s12379_s4 = sld [smem:[#allocation19_spill]] }
  0x84   : > { %s12380_s3 = sld [smem:[#allocation9_spill]]  ;;  %12381 = sst [smem:[#allocation56_spill]] %s10989_s7 }
  0x85   : > { %s9610_s10 = sadd.s32 4294967295, %s10989_s7   ;;  %p9614_p0 = scmp.ge.s32.totalorder %s10989_s7, 1 }
  0x86   : > { %p1473_p1 = scmp.lt.s32.totalorder %s10989_s7, 3 }
  0x88   : > { %p1474_p2 = pnand %p9614_p0, %p1473_p1 }
  0x8a   : > { %1477 = sbr.rel (%p1474_p2) target bundleno = 15371 (0x3c0b), region = 232 }
  0x91   : > { %v10788_v0 = vld [vmem:[%s12380_s3] sm:$0xff]   ;;  %v1633_v1 = vlaneseq  ;;  %v11044_v2 = vmov 0.0   ;;  %s12382_s5 = sld [smem:[#allocation2_spill]]  ;;  %v10789_v3 = vld [vmem:[%s12380_s3 + $0x8] sm:$0xff]   ;;  %vm11045_vm0 = vmmov 0   ;;  %s12383_s21 = sld [smem:[#allocation6_spill]] }
  0x92   : > { %10156 = vmatprep.subr.bf16.mxu1 %v11044_v2  ;;  %10148 = vmatprep.subr.bf16.mxu0 %v11044_v2  ;;  %p1608_p3 = scmp.lt.s32.totalorder %s9610_s10, 1  ;;  %v10790_v6 = vld [vmem:[%s12372_s25] sm:$0xff]   ;;  %v10791_v7 = vld [vmem:[%s12372_s25 + $0x8] sm:$0xff]   ;;  %vm1682_vm2 = vcmask 261120   ;;  %s12288_s16 = smov 104   ;;  %vm1950_vm3 = vcmask 1043456  }
  0x93   : > { %10157 = vmatpush3.bf16.msra.mxu1 %v10788_v0  ;;  %10160 = vmatprep.mubr.msk.bf16.mxu1 %vm11045_vm0, %v11044_v2  ;;  %v11343_v4 = vshrl.u32 %v1633_v1, 7  ;;  %v11345_v5 = vand.u32 127, %v1633_v1  ;;  %v9624_v13 = vld [vmem:[%s12377_s8] ss:$0 sm:$0xff]  ;;  %s12290_s18 = smov 120   ;;  %s12294_s22 = smov 112  }
  0x94   : > { %10158 = vmatprep.subr.bf16.mxu1 %v11044_v2  ;;  %10152 = vmatprep.mubr.msk.bf16.mxu0 %vm11045_vm0, %v11044_v2  ;;  %s12439_s10 = smov (!%p1608_p3, %s9610_s10), 1  ;;  %v9620_v15 = vld [vmem:[%s12371_s29] ss:$0 sm:$0xff]  ;;  %v10793_v28 = vld [vmem:[%s12376_s14 + $0x8] sm:$0xff]   ;;  %vm1946_vm4 = vcmask 64512   ;;  %s12385_s13 = sld [smem:[#allocation4_spill]] }
  0x95   : > { %vm1637_vm1 = vcmp.gt.s32.totalorder %v11345_v5, %v11343_v4  ;;  %s11356_s0 = sshll.u32 %s12439_s10, 3  ;;  %10149 = vmatpush3.bf16.msra.mxu0 %v10790_v6  ;;  %v10792_v27 = vld [vmem:[%s12376_s14] sm:$0xff]   ;;  %s12292_s26 = smov 16   ;;  %vm2719_vm5 = vcmask 130048   ;;  %vm2721_vm6 = vcmask 195584   ;;  %vm2929_vm7 = vcmask 523264  }
  0x96   : > { %12384 = sst [smem:[#allocation57_spill]] %s11356_s0  ;;  %10150 = vmatprep.subr.bf16.mxu0 %v11044_v2  ;;  %s12286_s28 = smov 8  }
  0x97   : > { %10159 = vmatpush3.bf16.msra.mxu1 %v10789_v3  ;;  %s1611_s11 = scalar_lea.vmem %s12382_s5, %s11356_s0  ;;  %s11365_s15 = scalar_lea.vmem %s12383_s21, %s12439_s10 }
  0x98   : > { %10172 = vmatprep.subr.bf16.mxu1 %v11044_v2  ;;  %v1646_v8 = vld [vmem:[%s1611_s11] sm:$0xff]  ;;  %s12284_s1 = smov 24   ;;  %s12386_s2 = sld [smem:[#allocation20_spill]] }
  0x99   : > { %v9619_v9 = vld [vmem:[%s11365_s15] ss:$0 sm:$0xff]  ;;  %v1647_v10 = vmul.f32 5.656854, %v1646_v8  ;;  %10151 = vmatpush3.bf16.msra.mxu0 %v10791_v7  ;;  %s12387_s11 = sld [smem:[#allocation16_spill]]  ;;  %s12395_s5 = sld [smem:[#allocation25_spill]] }
  0x9a   : > { %10164 = vmatprep.subr.bf16.mxu0 %v11044_v2  ;;  %s1618_s23 = scalar_lea.vmem %s12385_s13, %s12439_s10  ;;  %s12406_s13 = sld [smem:[#allocation30_spill]] }
  0x9b   : > { %v11368_v11 = vadd.f32 %v9619_v9, %v1647_v10  ;;  %v11416_v48 = vld [vmem:[%s1618_s23] ss:$0 sm:$0xff]  ;;  %s12388_s23 = sld [smem:[#allocation18_spill]]  ;;  %s12411_s21 = sld [smem:[#allocation35_spill]] }
  0x9c   : > { %s12420_s7 = sld [smem:[#allocation41_spill]]  ;;  %s12423_s27 = sld [smem:[#allocation46_spill]] }
  0x9d   : > { %v1663_v12 = vpack.c.bf16 %v11368_v11, %v11368_v11  ;;  %s12424_s17 = sld [smem:[#allocation40_spill]] }
  0x9f   : > { %10161 = vmatmul.mubr.msk.bf16.vlgmr.msra.gmra.mrb[0].mxu1 %vm1682_vm2, %v1663_v12  ;;  %10153 = vmatmul.mubr.msk.bf16.vlgmr.msra.gmra.mrb[0].mxu0 %vm1682_vm2, %v1663_v12 }
  0xa0   : > { %10174 = vmatprep.mubr.msk.bf16.mxu1 %vm11045_vm0, %v11044_v2  ;;  %10168 = vmatprep.mubr.msk.bf16.mxu0 %vm11045_vm0, %v11044_v2 }
  0xa1   : > { %10165 = vmatpush3.bf16.msra.mxu0 %v10792_v27 }
  0xa2   : > { %10166 = vmatprep.subr.bf16.mxu0 %v11044_v2  ;;  %s12421_s12 = smov %s12420_s7 }
  0xa5   : > { %10167 = vmatpush3.bf16.msra.mxu0 %v10793_v28 }
  0xa6   : > { %10178 = vmatprep.subr.bf16.mxu0 %v11044_v2 }
  0xa8   : > { %10169 = vmatmul.mubr.msk.bf16.vlgmr.msra.gmra.mrb[4].mxu0 %vm1682_vm2, %v1663_v12 }
  0xa9   : > { %10180 = vmatprep.mubr.msk.bf16.mxu0 %vm11045_vm0, %v11044_v2 }
 0x172   : > { %v1783_v14 = vpop.f32.mrb[0].mxu1  ;;  %v1720_v16 = vpop.f32.mrb[0].mxu0 }
 0x173   : > { %v1784_v17 = vadd.f32 %v9624_v13, %v1783_v14  ;;  %v10162_v18 = vpop.f32.mrb[1].mxu1  ;;  %v10154_v19 = vpop.f32.mrb[1].mxu0  ;;  %v1721_v24 = vadd.f32 %v9620_v15, %v1720_v16  ;;  %v9628_v16 = vld [vmem:[%s12375_s19] ss:$0 sm:$0xff] }
 0x174   : > { %v1786_v20 = vpop.f32.mrb[2].mxu1  ;;  %v1723_v21 = vpop.f32.mrb[2].mxu0 }
 0x175   : > { %v1860_v22 = vpack.c.bf16 %v1784_v17, %v1784_v17  ;;  %v10163_v23 = vpop.f32.mrb[3].mxu1  ;;  %v10155_v25 = vpop.f32.mrb[3].mxu0  ;;  %v1852_v26 = vpack.c.bf16 %v1721_v24, %v1721_v24 }
 0x177   : > { %1868 = vrot.lane.b32.xlu1 %v1860_v22, %s12288_s16  ;;  %1862 = vrot.lane.b32.xlu0 %v1860_v22, %s12290_s18 }
 0x17b   : > { %1865 = vrot.lane.b32.xlu0 %v1860_v22, %s12294_s22  ;;  %1854 = vrot.lane.b32.xlu1 %v1852_v26, %s12290_s18  ;;  %v1846_v43 = vpop.f32.mrb[4].mxu0 }
 0x17c   : > { %v10170_v44 = vpop.f32.mrb[5].mxu0  ;;  %v1847_v17 = vadd.f32 %v9628_v16, %v1846_v43 }
 0x17d   : > { %v1849_v45 = vpop.f32.mrb[6].mxu0 }
 0x17e   : > { %v10171_v46 = vpop.f32.mrb[7].mxu0  ;;  %v1871_v18 = vpack.c.bf16 %v1847_v17, %v1847_v17 }
 0x17f   : > { %1856 = vrot.lane.b32.xlu0 %v1852_v26, %s12294_s22  ;;  %1858 = vrot.lane.b32.xlu1 %v1852_v26, %s12288_s16 }
 0x19d   : > { %1882 = vxpose.xlu0.c.b16.start.end [1/1] (short) (narrow) %v1860_v22, 16 }
 0x1e9   : > { %v1863_v29 = vpop.permute.xlu0 %1862  ;;  %v1869_v31 = vpop.permute.xlu1 %1868 }
 0x1ea   : > { %1898 = vxpose.xlu1.c.b16.start.end [1/1] (short) (narrow) %v1863_v29, 16 }
 0x1ed   : > { %v1866_v30 = vpop.permute.xlu0 %1865  ;;  %v1855_v35 = vpop.permute.xlu1 %1854 }
 0x1ee   : > { %1914 = vxpose.xlu0.c.b16.start.end [1/1] (short) (narrow) %v1866_v30, 16 }
 0x1f1   : > { %v1857_v32 = vpop.permute.xlu0 %1856  ;;  %v1859_v36 = vpop.permute.xlu1 %1858 }
 0x1f2   : > { %1930 = vxpose.xlu0.c.b16.start.end [1/1] (short) (narrow) %v1869_v31, 16 }
 0x203   : > { %v1890_v33 = vpop.trf.xlu0 }
 0x204   : > { %v1952_v34 = vsel %vm1950_vm3, %v1890_v33, 0 }
 0x205   : > { %10173 = vmatpush3.bf16.msra.mxu1 %v1952_v34 }
 0x206   : > { %10184 = vmatprep.subr.bf16.mxu1 %v11044_v2 }
 0x208   : > { %10175 = vmatmul.mubr.msk.bf16.vlgmr.msra.gmra.mrb[4].mxu1 %vm1946_vm4, %v1852_v26 }
 0x209   : > { %10186 = vmatprep.mubr.msk.bf16.mxu1 %vm11045_vm0, %v11044_v2 }
 0x250   : > { %v1906_v37 = vpop.trf.xlu1 }
 0x251   : > { %v1998_v38 = vsel %vm1950_vm3, %v1906_v37, 0 }
 0x252   : > { %10179 = vmatpush3.bf16.msra.mxu0 %v1998_v38 }
 0x253   : > { %10190 = vmatprep.subr.bf16.mxu0 %v11044_v2 }
 0x254   : > { %v1922_v39 = vpop.trf.xlu0 }
 0x255   : > { %v2044_v40 = vsel %vm1950_vm3, %v1922_v39, 0  ;;  %10181 = vmatmul.mubr.msk.bf16.vlgmr.msra.gmra.mrb[8].mxu0 %vm1946_vm4, %v1855_v35 }
 0x256   : > { %10185 = vmatpush3.bf16.msra.mxu1 %v2044_v40  ;;  %10192 = vmatprep.mubr.msk.bf16.mxu0 %vm11045_vm0, %v11044_v2 }
 0x257   : > { %10196 = vmatprep.subr.bf16.mxu1 %v11044_v2 }
 0x258   : > { %v1938_v41 = vpop.trf.xlu0 }
 0x259   : > { %v2090_v42 = vsel %vm1950_vm3, %v1938_v41, 0  ;;  %10187 = vmatmul.mubr.msk.bf16.vlgmr.msra.gmra.mrb[8].mxu1 %vm1946_vm4, %v1857_v32 }
 0x25a   : > { %10191 = vmatpush3.bf16.msra.mxu0 %v2090_v42  ;;  %10198 = vmatprep.mubr.msk.bf16.mxu1 %vm11045_vm0, %v11044_v2 }
 0x25b   : > { %10202 = vmatprep.subr.bf16.mxu0 %v11044_v2 }
 0x25d   : > { %10193 = vmatmul.mubr.msk.bf16.vlgmr.msra.gmra.mrb[12].mxu0 %vm1946_vm4, %v1859_v36 }
 0x25e   : > { %10204 = vmatprep.mubr.msk.bf16.mxu0 %vm11045_vm0, %v11044_v2 }
 0x2db   : > { %v1988_v47 = vpop.f32.mrb[4].mxu1 }
 0x2dc   : > { %v2132_v49 = vmul.f32 0.35355338, %v1988_v47  ;;  %v10176_v50 = vpop.f32.mrb[5].mxu1 }
 0x2dd   : > { %v1991_v51 = vpop.f32.mrb[6].mxu1 }
 0x2de   : > { %v10177_v52 = vpop.f32.mrb[7].mxu1  ;;  %v2142_v53 = vadd.f32 %v11416_v48, %v2132_v49 }
 0x2e0   : > { %v2146_v54 = vsel %vm1946_vm4, %v2142_v53, -inf }
 0x2e1   : > { %2147 = vmax.xlane.f32.xlu1 %v2146_v54 }
 0x328   : > { %v2034_v55 = vpop.f32.mrb[8].mxu0 }
 0x329   : > { %v2133_v56 = vmul.f32 0.35355338, %v2034_v55  ;;  %v10182_v57 = vpop.f32.mrb[9].mxu0 }
 0x32a   : > { %v2037_v58 = vpop.f32.mrb[10].mxu0 }
 0x32b   : > { %v10183_v59 = vpop.f32.mrb[11].mxu0  ;;  %v2143_v60 = vadd.f32 %v11416_v48, %v2133_v56 }
 0x32c   : > { %v2080_v61 = vpop.f32.mrb[8].mxu1 }
 0x32d   : > { %v2134_v62 = vmul.f32 0.35355338, %v2080_v61  ;;  %v10188_v63 = vpop.f32.mrb[9].mxu1  ;;  %v2149_v0 = vsel %vm1946_vm4, %v2143_v60, -inf }
 0x32e   : > { %v2083_v1 = vpop.f32.mrb[10].mxu1  ;;  %2150 = vmax.xlane.f32.xlu0 %v2149_v0 }
 0x32f   : > { %v10189_v3 = vpop.f32.mrb[11].mxu1  ;;  %v2144_v6 = vadd.f32 %v11416_v48, %v2134_v62 }
 0x330   : > { %v2126_v7 = vpop.f32.mrb[12].mxu0 }
 0x331   : > { %v2135_v8 = vmul.f32 0.35355338, %v2126_v7  ;;  %v10194_v9 = vpop.f32.mrb[13].mxu0  ;;  %v2152_v10 = vsel %vm1946_vm4, %v2144_v6, -inf }
 0x332   : > { %2153 = vmax.xlane.f32.xlu1 %v2152_v10  ;;  %v2129_v12 = vpop.f32.mrb[14].mxu0 }
 0x333   : > { %v10195_v13 = vpop.f32.mrb[15].mxu0  ;;  %v2145_v14 = vadd.f32 %v11416_v48, %v2135_v8 }
 0x335   : > { %v2155_v15 = vsel %vm1946_vm4, %v2145_v14, -inf }
 0x336   : > { %2156 = vmax.xlane.f32.xlu0 %v2155_v15 }
 0x343   : > { %1873 = vrot.lane.b32.xlu1 %v1871_v18, %s12290_s18 }
 0x347   : > { %1879 = vrot.lane.b32.xlu1 %v1871_v18, %s12288_s16 }
 0x36e   : > { %v2148_v19 = vpop.xlane.xlu1 %2147 }
 0x36f   : > { %v2158_v20 = vsub.f32 %v2142_v53, %v2148_v19 }
 0x371   : > { %v2162_v21 = vmul.f32 1.442695, %v2158_v20 }
 0x373   : > { %10862 = vpow2.f32 %v2162_v21 }
 0x37d   : > { %v10863_v22 = vpop.eup %10862 }
 0x37e   : > { %v2170_v23 = vsel %vm1946_vm4, %v10863_v22, 0.0 }
 0x37f   : > { %2171 = vadd.xlane.f32.xlu0 %v2170_v23 }
 0x3bb   : > { %v2151_v24 = vpop.xlane.xlu0 %2150 }
 0x3bc   : > { %v2159_v25 = vsub.f32 %v2143_v60, %v2151_v24  ;;  %v11049_v24 = vmov 1983009808  }
 0x3be   : > { %v2164_v26 = vmul.f32 1.442695, %v2159_v25  ;;  %v2573_v25 = vunpack.c.l.s4 %v11049_v24 }
 0x3bf   : > { %v2154_v27 = vpop.xlane.xlu1 %2153 }
 0x3c0   : > { %10864 = vpow2.f32 %v2164_v26  ;;  %v2160_v28 = vsub.f32 %v2144_v6, %v2154_v27  ;;  %v11050_v26 = vmov 1934713408  }
 0x3c1   : > { %v2605_v27 = vunpack.c.l.s4 %v11050_v26 }
 0x3c2   : > { %v2166_v29 = vmul.f32 1.442695, %v2160_v28  ;;  %v2574_v28 = vunpack.c.0.s8 %v2573_v25 }
 0x3c3   : > { %v2157_v34 = vpop.xlane.xlu0 %2156  ;;  %v1874_v44 = vpop.permute.xlu1 %1873 }
 0x3c4   : > { %10866 = vpow2.f32 %v2166_v29  ;;  %v2161_v35 = vsub.f32 %v2145_v14, %v2157_v34 }
 0x3c6   : > { %v2168_v36 = vmul.f32 1.442695, %v2161_v35 }
 0x3c7   : > { %v1880_v45 = vpop.permute.xlu1 %1879 }
 0x3c8   : > { %10868 = vpow2.f32 %v2168_v36 }
 0x3ca   : > { %v10865_v30 = vpop.eup %10864 }
 0x3cb   : > { %v2173_v31 = vsel %vm1946_vm4, %v10865_v30, 0.0 }
 0x3cc   : > { %2174 = vadd.xlane.f32.xlu0 %v2173_v31 }
 0x3ce   : > { %v10867_v32 = vpop.eup %10866 }
 0x3cf   : > { %v2176_v33 = vsel %vm1946_vm4, %v10867_v32, 0.0 }
 0x3d0   : > { %2177 = vadd.xlane.f32.xlu1 %v2176_v33 }
 0x3d2   : > { %v10869_v37 = vpop.eup %10868 }
 0x3d3   : > { %v2179_v38 = vsel %vm1946_vm4, %v10869_v37, 0.0 }
 0x3e2   : > { %1876 = vrot.lane.b32.xlu0 %v1871_v18, %s12294_s22 }
 0x3fd   : > { %2194 = vxpose.xlu1.c.b16.start.end [1/1] (short) (narrow) %v1871_v18, 16 }
 0x401   : > { %2180 = vadd.xlane.f32.xlu0 %v2179_v38 }
 0x40c   : > { %v2172_v39 = vpop.xlane.xlu0 %2171 }
 0x40d   : > { %10870 = vrcp.f32 %v2172_v39 }
 0x417   : > { %v10871_v40 = vpop.eup %10870 }
 0x418   : > { %v2186_v41 = vmul.f32 %v10871_v40, %v10863_v22 }
 0x41a   : > { %v2190_v42 = vpack.c.bf16 %v2186_v41, %v2186_v41 }
 0x41c   : > { %v2262_v43 = vsel %vm1946_vm4, %v2190_v42, 0 }
 0x41d   : > { %10197 = vmatpush3.bf16.xpose.msra.mxu1 %v2262_v43  ;;  %v10794_v43 = vld [vmem:[%s12373_s24] sm:$0xff]  }
 0x41e   : > { %10208 = vmatprep.subr.bf16.mxu1 %v11044_v2 }
 0x42e   : > { %2210 = vxpose.xlu0.c.b16.start.end [1/1] (short) (narrow) %v1874_v44, 16 }
 0x459   : > { %v2175_v46 = vpop.xlane.xlu0 %2174 }
 0x45a   : > { %10872 = vrcp.f32 %v2175_v46 }
 0x45d   : > { %v2178_v47 = vpop.xlane.xlu1 %2177  ;;  %v1877_v49 = vpop.permute.xlu0 %1876 }
 0x45e   : > { %10874 = vrcp.f32 %v2178_v47  ;;  %2226 = vxpose.xlu1.c.b16.start.end [1/1] (short) (narrow) %v1877_v49, 16 }
 0x462   : > { %2242 = vxpose.xlu1.c.b16.start.end [1/1] (short) (narrow) %v1880_v45, 16 }
 0x463   : > { %v2202_v50 = vpop.trf.xlu1 }
 0x464   : > { %v10873_v51 = vpop.eup %10872  ;;  %10199 = vmatmul.mubr.msk.bf16.vlgmr.msra.gmra.mrb[12].mxu1 %vm1946_vm4, %v2202_v50 }
 0x465   : > { %v2187_v52 = vmul.f32 %v10873_v51, %v10865_v30  ;;  %10210 = vmatprep.mubr.msk.bf16.mxu1 %vm11045_vm0, %v11044_v2  ;;  %v2606_v30 = vunpack.c.0.s8 %v2605_v27 }
 0x467   : > { %v2191_v53 = vpack.c.bf16 %v2187_v52, %v2187_v52  ;;  %v11458_v38 = vsub.s32 %v2606_v30, %v11343_v4 }
 0x468   : > { %v10875_v54 = vpop.eup %10874 }
 0x469   : > { %v2308_v55 = vsel %vm1946_vm4, %v2191_v53, 0  ;;  %v2188_v56 = vmul.f32 %v10875_v54, %v10867_v32  ;;  %v11455_v32 = vsub.s32 %v2574_v28, %v11343_v4  ;;  %v10795_v53 = vld [vmem:[%s12373_s24 + $0x8] sm:$0xff]  }
 0x46a   : > { %10203 = vmatpush3.bf16.xpose.msra.mxu0 %v2308_v55 }
 0x46b   : > { %v2192_v57 = vpack.c.bf16 %v2188_v56, %v2188_v56  ;;  %10214 = vmatprep.subr.bf16.mxu0 %v11044_v2 }
 0x46d   : > { %v2354_v58 = vsel %vm1946_vm4, %v2192_v57, 0 }
 0x46e   : > { %10209 = vmatpush3.bf16.xpose.msra.mxu1 %v2354_v58 }
 0x46f   : > { %10220 = vmatprep.subr.bf16.mxu1 %v11044_v2 }
 0x48e   : > { %v2181_v59 = vpop.xlane.xlu0 %2180 }
 0x48f   : > { %10876 = vrcp.f32 %v2181_v59 }
 0x494   : > { %v2218_v60 = vpop.trf.xlu0 }
 0x495   : > { %10205 = vmatmul.mubr.msk.bf16.vlgmr.msra.gmra.mrb[16].mxu0 %vm1946_vm4, %v2218_v60 }
 0x496   : > { %10216 = vmatprep.mubr.msk.bf16.mxu0 %vm11045_vm0, %v11044_v2 }
 0x499   : > { %v10877_v61 = vpop.eup %10876 }
 0x49a   : > { %v2189_v62 = vmul.f32 %v10877_v61, %v10869_v37 }
 0x49c   : > { %v2193_v63 = vpack.c.bf16 %v2189_v62, %v2189_v62 }
 0x49e   : > { %v2400_v0 = vsel %vm1946_vm4, %v2193_v63, 0 }
 0x49f   : > { %10215 = vmatpush3.bf16.xpose.msra.mxu0 %v2400_v0 }
 0x4a0   : > { %10228 = vmatprep.subr.bf16.mxu0 %v11044_v2 }
 0x4c4   : > { %v2234_v1 = vpop.trf.xlu1 }
 0x4c5   : > { %10211 = vmatmul.mubr.msk.bf16.vlgmr.msra.gmra.mrb[16].mxu1 %vm1946_vm4, %v2234_v1 }
 0x4c6   : > { %10224 = vmatprep.mubr.msk.bf16.mxu1 %vm11045_vm0, %v11044_v2  ;;  %10221 = vmatpush3.bf16.msra.mxu1 %v10794_v43  ;;  %v9647_v43 = vld [vmem:[%s12379_s4] ss:$0 sm:$0xff] }
 0x4c7   : > { %10222 = vmatprep.subr.bf16.mxu1 %v11044_v2 }
 0x4c8   : > { %v2250_v3 = vpop.trf.xlu1 }
 0x4c9   : > { %10217 = vmatmul.mubr.msk.bf16.vlgmr.msra.gmra.mrb[20].mxu0 %vm1946_vm4, %v2250_v3 }
 0x4ca   : > { %10232 = vmatprep.mubr.msk.bf16.mxu0 %vm11045_vm0, %v11044_v2  ;;  %10223 = vmatpush3.bf16.msra.mxu1 %v10795_v53 }
 0x4cb   : > { %10236 = vmatprep.subr.bf16.mxu1 %v11044_v2 }
 0x537   : > { %v2298_v6 = vpop.f32.mrb[12].mxu1 }
 0x538   : > { %v10200_v7 = vpop.f32.mrb[13].mxu1  ;;  %2442 = vxpose.xlu0.b32.start.end [1/1] (short) (narrow) %v2298_v6, 8 }
 0x539   : > { %v2301_v8 = vpop.f32.mrb[14].mxu1 }
 0x53a   : > { %v10201_v9 = vpop.f32.mrb[15].mxu1 }
 0x568   : > { %v2344_v10 = vpop.f32.mrb[16].mxu0 }
 0x569   : > { %v10206_v12 = vpop.f32.mrb[17].mxu0  ;;  %2474 = vxpose.xlu1.b32.start.end [1/1] (short) (narrow) %v2344_v10, 8 }
 0x56a   : > { %v2347_v13 = vpop.f32.mrb[18].mxu0 }
 0x56b   : > { %v10207_v14 = vpop.f32.mrb[19].mxu0 }
 0x598   : > { %v2390_v15 = vpop.f32.mrb[16].mxu1 }
 0x599   : > { %2506 = vxpose.xlu0.b32.start.end [1/1] (short) (narrow) %v2390_v15, 8  ;;  %v10212_v16 = vpop.f32.mrb[17].mxu1 }
 0x59a   : > { %v2393_v17 = vpop.f32.mrb[18].mxu1 }
 0x59b   : > { %v10213_v18 = vpop.f32.mrb[19].mxu1 }
 0x59c   : > { %v2436_v19 = vpop.f32.mrb[20].mxu0 }
 0x59d   : > { %2538 = vxpose.xlu0.b32.start.end [1/1] (short) (narrow) %v2436_v19, 8  ;;  %v10218_v20 = vpop.f32.mrb[21].mxu0 }
 0x59e   : > { %v2439_v21 = vpop.f32.mrb[22].mxu0 }
 0x59f   : > { %v10219_v22 = vpop.f32.mrb[23].mxu0  ;;  %v9643_v21 = vld [vmem:[%s12370_s30] ss:$0 sm:$0xff] }
 0x5b8   : > { %v2458_v23 = vpop.trf.xlu0 }
 0x5e9   : > { %v2490_v31 = vpop.trf.xlu1 }
 0x619   : > { %v2522_v29 = vpop.trf.xlu0 }
 0x61a   : > { %v2570_v33 = vcombine.low %v2458_v23, %v2522_v29  ;;  %v2571_v34 = vcombine.high %v2458_v23, %v2522_v29 }
 0x61c   : > { %v2578_v39 = vrot.slane %v2570_v33, %v11455_v32  ;;  %v2585_v40 = vrot.slane %v2571_v34, %v11455_v32 }
 0x61d   : > { %v2554_v35 = vpop.trf.xlu0 }
 0x61e   : > { %v2586_v36 = vcombine.low %v2490_v31, %v2554_v35  ;;  %v2587_v37 = vcombine.high %v2490_v31, %v2554_v35  ;;  %v10796_v35 = vld [vmem:[%s12378_s6] sm:$0xff]  }
 0x61f   : > { %10229 = vmatpush3.bf16.msra.mxu0 %v10796_v35 }
 0x620   : > { %v2594_v41 = vrot.slane %v2586_v36, %v11455_v32  ;;  %v2601_v42 = vrot.slane %v2587_v37, %v11455_v32  ;;  %10230 = vmatprep.subr.bf16.mxu0 %v11044_v2  ;;  %v10797_v36 = vld [vmem:[%s12378_s6 + $0x8] sm:$0xff]  }
 0x621   : > { %v10799_v37 = vld [vmem:[%s12374_s20 + $0x8] sm:$0xff]  }
 0x622   : > { %v2602_v44 = vcombine.low %v2578_v39, %v2594_v41  ;;  %v2603_v45 = vcombine.high %v2578_v39, %v2594_v41  ;;  %v2618_v46 = vcombine.low %v2585_v40, %v2601_v42  ;;  %v2619_v47 = vcombine.high %v2585_v40, %v2601_v42 }
 0x623   : > { %10231 = vmatpush3.bf16.msra.mxu0 %v10797_v36 }
 0x624   : > { %v2610_v49 = vrot.slane %v2602_v44, %v11458_v38  ;;  %v2617_v50 = vrot.slane %v2603_v45, %v11458_v38  ;;  %v2626_v51 = vrot.slane %v2618_v46, %v11458_v38  ;;  %v2633_v52 = vrot.slane %v2619_v47, %v11458_v38  ;;  %10248 = vmatprep.subr.bf16.mxu0 %v11044_v2  ;;  %v9648_v45 = vld [vmem:[%s12386_s2] ss:$0 sm:$0xff] }
 0x626   : > { %v2638_v54 = vcombine.low %v2610_v49, %v2617_v50  ;;  %v9641_v55 = vcombine.high %v2610_v49, %v2617_v50  ;;  %v2654_v56 = vcombine.low %v2626_v51, %v2633_v52  ;;  %v9642_v57 = vcombine.high %v2626_v51, %v2633_v52  ;;  %v10800_v50 = vld [vmem:[%s12374_s20 + $0x10] sm:$0xff]   ;;  %v10801_v51 = vld [vmem:[%s12374_s20 + $0x18] sm:$0xff]   ;;  %v9649_v52 = vld [vmem:[%s12387_s11] ss:$0 sm:$0xff] }
 0x628   : > { %v2645_v58 = vrot.slane %v2638_v54, %v11455_v32  ;;  %v2653_v59 = vrot.slane %v9641_v55, %v11455_v32  ;;  %v2661_v60 = vrot.slane %v2654_v56, %v11455_v32  ;;  %v2669_v61 = vrot.slane %v9642_v57, %v11455_v32 }
 0x62a   : > { %v2671_v62 = vcombine.high %v2645_v58, %v2653_v59  ;;  %v2687_v63 = vcombine.high %v2661_v60, %v2669_v61  ;;  %v2670_v0 = vcombine.low %v2645_v58, %v2653_v59  ;;  %v2686_v1 = vcombine.low %v2661_v60, %v2669_v61  ;;  %v9653_v60 = vld [vmem:[%s12388_s23] ss:$0 sm:$0xff] }
 0x62c   : > { %v2685_v3 = vrot.slane %v2671_v62, %v11458_v38  ;;  %v2701_v6 = vrot.slane %v2687_v63, %v11458_v38  ;;  %v2678_v7 = vrot.slane %v2670_v0, %v11458_v38  ;;  %v2694_v8 = vrot.slane %v2686_v1, %v11458_v38 }
 0x62e   : > { %v2704_v9 = vcombine.low %v2685_v3, %v2701_v6  ;;  %v2703_v10 = vcombine.high %v2678_v7, %v2694_v8  ;;  %v2702_v12 = vcombine.low %v2678_v7, %v2694_v8  ;;  %v2705_v13 = vcombine.high %v2685_v3, %v2701_v6 }
 0x630   : > { %2711 = vrot.lane.b32.xlu0 %v2704_v9, %s12292_s26  ;;  %2707 = vrot.lane.b32.xlu1 %v2703_v10, %s12286_s28  ;;  %s12390_s28 = sld [smem:[#allocation22_spill]] }
 0x634   : > { %2715 = vrot.lane.b32.xlu1 %v2705_v13, %s12284_s1  ;;  %v10802_v13 = vld [vmem:[%s12372_s25 + $0x10] sm:$0xff]   ;;  %s12389_s1 = sld [smem:[#allocation21_spill]] }
 0x6a2   : > { %v2708_v14 = vpop.permute.xlu1 %2707  ;;  %v2712_v15 = vpop.permute.xlu0 %2711 }
 0x6a3   : > { %v2718_v16 = vsel %vm1946_vm4, %v2702_v12, %v2708_v14  ;;  %v10803_v14 = vld [vmem:[%s12376_s14 + $0x10] sm:$0xff]  }
 0x6a4   : > { %v2720_v18 = vsel %vm2719_vm5, %v2718_v16, %v2712_v15  ;;  %v10804_v15 = vld [vmem:[%s12372_s25 + $0x18] sm:$0xff]   ;;  %s12414_s25 = sld [smem:[#allocation34_spill]] }
 0x6a5   : > { %v10805_v16 = vld [vmem:[%s12376_s14 + $0x18] sm:$0xff]   ;;  %s12407_s14 = sld [smem:[#allocation31_spill]] }
 0x6a6   : > { %v2716_v17 = vpop.permute.xlu1 %2715 }
 0x6a7   : > { %v2722_v19 = vsel %vm2721_vm6, %v2720_v18, %v2716_v17 }
 0x6a8   : > { %v2728_v20 = vpack.c.bf16 %v2722_v19, %v2722_v19 }
 0x6aa   : > { %10225 = vmatmul.mubr.msk.bf16.vlgmr.msra.gmra.mrb[20].mxu1 %vm1682_vm2, %v2728_v20 }
 0x6ab   : > { %10244 = vmatprep.mubr.msk.bf16.mxu1 %vm11045_vm0, %v11044_v2 }
 0x77d   : > { %v2784_v22 = vpop.f32.mrb[20].mxu1 }
 0x77e   : > { %v2785_v23 = vadd.f32 %v9643_v21, %v2784_v22  ;;  %v10226_v24 = vpop.f32.mrb[21].mxu1  ;;  %v9659_v21 = vld [vmem:[%s12389_s1] ss:$0 sm:$0xff] }
 0x77f   : > { %v2787_v25 = vpop.f32.mrb[22].mxu1 }
 0x780   : > { %v10227_v26 = vpop.f32.mrb[23].mxu1  ;;  %v2790_v27 = vadd.f32 %v2785_v23, %v11368_v11  ;;  %v10798_v11 = vld [vmem:[%s12374_s20] sm:$0xff]  }
 0x781   : > { %10237 = vmatpush3.bf16.msra.mxu1 %v10798_v11  ;;  %v9660_v23 = vld [vmem:[%s12390_s28] ss:$0 sm:$0xff]  ;;  %v10806_v26 = vld [vmem:[%s12380_s3 + $0x10] sm:$0xff]  }
 0x782   : > { %v2793_v28 = vsel %vm1682_vm2, %v2790_v27, 0.0  ;;  %10238 = vmatprep.subr.bf16.mxu1 %v11044_v2 }
 0x783   : > { %2794 = vadd.xlane.f32.xlu1 %v2793_v28  ;;  %v10807_v28 = vld [vmem:[%s12380_s3 + $0x18] sm:$0xff]  }
 0x785   : > { %10239 = vmatpush3.bf16.msra.mxu1 %v10799_v37  ;;  %v9675_v37 = vld [vmem:[%s12377_s8 + $0x1] ss:$0 sm:$0xff]  ;;  %s12402_s8 = sld [smem:[#allocation5_spill]] }
 0x786   : > { %10240 = vmatprep.subr.bf16.mxu1 %v11044_v2 }
 0x789   : > { %10241 = vmatpush3.bf16.msra.mxu1 %v10800_v50 }
 0x78a   : > { %10242 = vmatprep.subr.bf16.mxu1 %v11044_v2 }
 0x78d   : > { %10243 = vmatpush3.bf16.msra.mxu1 %v10801_v51 }
 0x78e   : > { %10264 = vmatprep.subr.bf16.mxu1 %v11044_v2 }
 0x810   : > { %v2795_v29 = vpop.xlane.xlu1 %2794 }
 0x811   : > { %v2797_v30 = vmul.f32 0.03125, %v2795_v29 }
 0x813   : > { %v2798_v31 = vsub.f32 %v2790_v27, %v2797_v30 }
 0x815   : > { %v2799_v33 = vmul.f32 %v2798_v31, %v2798_v31 }
 0x817   : > { %v2800_v34 = vsel %vm1682_vm2, %v2799_v33, 0.0 }
 0x818   : > { %2801 = vadd.xlane.f32.xlu0 %v2800_v34 }
 0x8a5   : > { %v2802_v39 = vpop.xlane.xlu0 %2801 }
 0x8a6   : > { %v2803_v40 = vmul.f32 0.03125, %v2802_v39  ;;  %v9666_v39 = vld [vmem:[%s12371_s29 + $0x1] ss:$0 sm:$0xff]  ;;  %s12418_s29 = sld [smem:[#allocation38_spill]] }
 0x8a8   : > { %v2804_v41 = vadd.f32 1e-05, %v2803_v40 }
 0x8aa   : > { %10878 = vrsqrt.f32 %v2804_v41 }
 0x8b4   : > { %v10879_v42 = vpop.eup %10878 }
 0x8b5   : > { %v2806_v44 = vmul.f32 %v10879_v42, %v2798_v31 }
 0x8b7   : > { %v2813_v46 = vmul.f32 %v9647_v43, %v2806_v44 }
 0x8b9   : > { %v2820_v47 = vadd.f32 %v9648_v45, %v2813_v46 }
 0x8bb   : > { %v2826_v49 = vpack.c.bf16 %v2820_v47, %v2820_v47 }
 0x8bd   : > { %10233 = vmatmul.mubr.msk.bf16.vlgmr.msra.gmra.mrb[24].mxu0 %vm1682_vm2, %v2826_v49 }
 0x8be   : > { %10252 = vmatprep.mubr.msk.bf16.mxu0 %vm11045_vm0, %v11044_v2  ;;  %10249 = vmatpush3.bf16.msra.mxu0 %v10802_v13 }
 0x8bf   : > { %10250 = vmatprep.subr.bf16.mxu0 %v11044_v2 }
 0x8c2   : > { %10251 = vmatpush3.bf16.msra.mxu0 %v10804_v15 }
 0x8c3   : > { %10256 = vmatprep.subr.bf16.mxu0 %v11044_v2 }
 0x990   : > { %v2882_v53 = vpop.f32.mrb[24].mxu0 }
 0x991   : > { %v2883_v54 = vadd.f32 %v9649_v52, %v2882_v53  ;;  %v10234_v55 = vpop.f32.mrb[25].mxu0 }
 0x992   : > { %v2885_v56 = vpop.f32.mrb[26].mxu0 }
 0x993   : > { %v2888_v57 = vmax.f32 %v2883_v54, 0.0  ;;  %v10235_v58 = vpop.f32.mrb[27].mxu0 }
 0x995   : > { %v2898_v59 = vpack.c.bf16 %v2888_v57, %v2888_v57 }
 0x997   : > { %10245 = vmatmul.mubr.msk.bf16.vlgmr.msra.gmra.mrb[24].mxu1 %vm2929_vm7, %v2898_v59 }
 0x998   : > { %10268 = vmatprep.mubr.msk.bf16.mxu1 %vm11045_vm0, %v11044_v2  ;;  %10265 = vmatpush3.bf16.msra.mxu1 %v10803_v14 }
 0x999   : > { %10266 = vmatprep.subr.bf16.mxu1 %v11044_v2 }
 0x99c   : > { %10267 = vmatpush3.bf16.msra.mxu1 %v10805_v16 }
 0x99d   : > { %10278 = vmatprep.subr.bf16.mxu1 %v11044_v2 }
 0xa6a   : > { %v2967_v61 = vpop.f32.mrb[24].mxu1 }
 0xa6b   : > { %v2968_v62 = vadd.f32 %v9653_v60, %v2967_v61  ;;  %v10246_v63 = vpop.f32.mrb[25].mxu1 }
 0xa6c   : > { %v2970_v0 = vpop.f32.mrb[26].mxu1 }
 0xa6d   : > { %v10247_v1 = vpop.f32.mrb[27].mxu1  ;;  %v2973_v3 = vadd.f32 %v2968_v62, %v2820_v47 }
 0xa6f   : > { %v2976_v6 = vsel %vm1682_vm2, %v2973_v3, 0.0 }
 0xa70   : > { %2977 = vadd.xlane.f32.xlu1 %v2976_v6 }
 0xafd   : > { %v2978_v7 = vpop.xlane.xlu1 %2977 }
 0xafe   : > { %v2979_v8 = vmul.f32 0.03125, %v2978_v7 }
 0xb00   : > { %v2980_v9 = vsub.f32 %v2973_v3, %v2979_v8 }
 0xb02   : > { %v2981_v10 = vmul.f32 %v2980_v9, %v2980_v9 }
 0xb04   : > { %v2982_v12 = vsel %vm1682_vm2, %v2981_v10, 0.0 }
 0xb05   : > { %2983 = vadd.xlane.f32.xlu0 %v2982_v12 }
 0xb92   : > { %v2984_v17 = vpop.xlane.xlu0 %2983 }
 0xb93   : > { %v2985_v18 = vmul.f32 0.03125, %v2984_v17 }
 0xb95   : > { %v2986_v19 = vadd.f32 1e-05, %v2985_v18 }
 0xb97   : > { %10880 = vrsqrt.f32 %v2986_v19 }
 0xba1   : > { %v10881_v20 = vpop.eup %10880 }
 0xba2   : > { %v2988_v22 = vmul.f32 %v10881_v20, %v2980_v9 }
 0xba4   : > { %v2995_v24 = vmul.f32 %v9659_v21, %v2988_v22 }
 0xba6   : > { %v11527_v25 = vadd.f32 %v9660_v23, %v2995_v24 }
 0xba8   : > { %v3010_v27 = vpack.c.bf16 %v11527_v25, %v11527_v25 }
 0xbaa   : > { %10253 = vmatmul.mubr.msk.bf16.vlgmr.msra.gmra.mrb[28].mxu0 %vm1682_vm2, %v3010_v27  ;;  %10269 = vmatmul.mubr.msk.bf16.vlgmr.msra.gmra.mrb[28].mxu1 %vm1682_vm2, %v3010_v27 }
 0xbab   : > { %10257 = vmatpush3.bf16.msra.mxu0 %v10806_v26  ;;  %10260 = vmatprep.mubr.msk.bf16.mxu0 %vm11045_vm0, %v11044_v2 }
 0xbac   : > { %10258 = vmatprep.subr.bf16.mxu0 %v11044_v2  ;;  %10280 = vmatprep.mubr.msk.bf16.mxu1 %vm11045_vm0, %v11044_v2 }
 0xbaf   : > { %10259 = vmatpush3.bf16.msra.mxu0 %v10807_v28 }
 0xbb0   : > { %10272 = vmatprep.subr.bf16.mxu0 %v11044_v2 }
 0xbb2   : > { %10261 = vmatmul.mubr.msk.bf16.vlgmr.msra.gmra.mrb[32].mxu0 %vm1682_vm2, %v3010_v27 }
 0xbb3   : > { %10274 = vmatprep.mubr.msk.bf16.mxu0 %vm11045_vm0, %v11044_v2 }
 0xc7d   : > { %v3066_v29 = vpop.f32.mrb[28].mxu0  ;;  %v11544_v30 = vpop.f32.mrb[28].mxu1 }
 0xc7e   : > { %v10254_v31 = vpop.f32.mrb[29].mxu0  ;;  %v10270_v33 = vpop.f32.mrb[29].mxu1  ;;  %v3067_v44 = vadd.f32 %v9666_v39, %v3066_v29 }
 0xc7f   : > { %v3069_v34 = vpop.f32.mrb[30].mxu0  ;;  %v3199_v35 = vpop.f32.mrb[30].mxu1 }
 0xc80   : > { %v10255_v36 = vpop.f32.mrb[31].mxu0  ;;  %v10271_v11 = vpop.f32.mrb[31].mxu1  ;;  %v3202_v47 = vpack.c.bf16 %v3067_v44, %v3067_v44  ;;  %v9684_v34 = vld [vmem:[%s12375_s19 + $0x1] ss:$0 sm:$0xff]  ;;  %s12408_s19 = sld [smem:[#allocation33_spill]] }
 0xc81   : > { %v3197_v35 = vadd.f32 %v9684_v34, %v11544_v30 }
 0xc83   : > { %v3221_v36 = vpack.c.bf16 %v3197_v35, %v3197_v35 }
 0xc85   : > { %v3131_v40 = vpop.f32.mrb[32].mxu0 }
 0xc86   : > { %v3132_v41 = vadd.f32 %v9675_v37, %v3131_v40  ;;  %v10262_v42 = vpop.f32.mrb[33].mxu0 }
 0xc87   : > { %v3134_v43 = vpop.f32.mrb[34].mxu0 }
 0xc88   : > { %v3210_v45 = vpack.c.bf16 %v3132_v41, %v3132_v41  ;;  %v10263_v46 = vpop.f32.mrb[35].mxu0 }
 0xc8a   : > { %3215 = vrot.lane.b32.xlu0 %v3210_v45, %s12294_s22  ;;  %3212 = vrot.lane.b32.xlu1 %v3210_v45, %s12290_s18 }
 0xc8e   : > { %3206 = vrot.lane.b32.xlu0 %v3202_v47, %s12294_s22  ;;  %3218 = vrot.lane.b32.xlu1 %v3210_v45, %s12288_s16 }
 0xc92   : > { %3204 = vrot.lane.b32.xlu1 %v3202_v47, %s12290_s18 }
 0xc96   : > { %3208 = vrot.lane.b32.xlu1 %v3202_v47, %s12288_s16 }
 0xcac   : > { %3232 = vxpose.xlu0.c.b16.start.end [1/1] (short) (narrow) %v3210_v45, 16 }
 0xcfc   : > { %v3216_v49 = vpop.permute.xlu0 %3215  ;;  %v3213_v50 = vpop.permute.xlu1 %3212 }
 0xcfd   : > { %3264 = vxpose.xlu0.c.b16.start.end [1/1] (short) (narrow) %v3216_v49, 16  ;;  %3248 = vxpose.xlu1.c.b16.start.end [1/1] (short) (narrow) %v3213_v50, 16 }
 0xd00   : > { %v3219_v51 = vpop.permute.xlu1 %3218  ;;  %v3207_v52 = vpop.permute.xlu0 %3206 }
 0xd01   : > { %3280 = vxpose.xlu0.c.b16.start.end [1/1] (short) (narrow) %v3219_v51, 16 }
 0xd04   : > { %v3205_v55 = vpop.permute.xlu1 %3204 }
 0xd08   : > { %v3209_v56 = vpop.permute.xlu1 %3208 }
 0xd12   : > { %v3240_v53 = vpop.trf.xlu0 }
 0xd13   : > { %v3300_v54 = vsel %vm1950_vm3, %v3240_v53, 0 }
 0xd14   : > { %10273 = vmatpush3.bf16.msra.mxu0 %v3300_v54 }
 0xd15   : > { %10284 = vmatprep.subr.bf16.mxu0 %v11044_v2 }
 0xd17   : > { %10275 = vmatmul.mubr.msk.bf16.vlgmr.msra.gmra.mrb[36].mxu0 %vm1946_vm4, %v3202_v47 }
 0xd18   : > { %10286 = vmatprep.mubr.msk.bf16.mxu0 %vm11045_vm0, %v11044_v2 }
 0xd63   : > { %v3272_v57 = vpop.trf.xlu0  ;;  %v3256_v58 = vpop.trf.xlu1 }
 0xd64   : > { %v3392_v59 = vsel %vm1950_vm3, %v3272_v57, 0  ;;  %v3346_v60 = vsel %vm1950_vm3, %v3256_v58, 0 }
 0xd65   : > { %10279 = vmatpush3.bf16.msra.mxu1 %v3346_v60  ;;  %10285 = vmatpush3.bf16.msra.mxu0 %v3392_v59 }
 0xd66   : > { %10290 = vmatprep.subr.bf16.mxu1 %v11044_v2  ;;  %10296 = vmatprep.subr.bf16.mxu0 %v11044_v2 }
 0xd67   : > { %v3288_v61 = vpop.trf.xlu0 }
 0xd68   : > { %10281 = vmatmul.mubr.msk.bf16.vlgmr.msra.gmra.mrb[32].mxu1 %vm1946_vm4, %v3205_v55  ;;  %10287 = vmatmul.mubr.msk.bf16.vlgmr.msra.gmra.mrb[40].mxu0 %vm1946_vm4, %v3207_v52  ;;  %v3438_v62 = vsel %vm1950_vm3, %v3288_v61, 0 }
 0xd69   : > { %10291 = vmatpush3.bf16.msra.mxu1 %v3438_v62  ;;  %10292 = vmatprep.mubr.msk.bf16.mxu1 %vm11045_vm0, %v11044_v2 }
 0xd6a   : > { %10298 = vmatprep.mubr.msk.bf16.mxu0 %vm11045_vm0, %v11044_v2  ;;  %10302 = vmatprep.subr.bf16.mxu1 %v11044_v2 }
 0xd70   : > { %10293 = vmatmul.mubr.msk.bf16.vlgmr.msra.gmra.mrb[36].mxu1 %vm1946_vm4, %v3209_v56 }
 0xd71   : > { %10304 = vmatprep.mubr.msk.bf16.mxu1 %vm11045_vm0, %v11044_v2 }
 0xdea   : > { %v3336_v63 = vpop.f32.mrb[36].mxu0 }
 0xdeb   : > { %v3480_v0 = vmul.f32 0.35355338, %v3336_v63  ;;  %v10276_v1 = vpop.f32.mrb[37].mxu0 }
 0xdec   : > { %v3339_v3 = vpop.f32.mrb[38].mxu0 }
 0xded   : > { %v10277_v6 = vpop.f32.mrb[39].mxu0  ;;  %v3484_v7 = vadd.f32 %v11416_v48, %v3480_v0 }
 0xdef   : > { %v3488_v8 = vsel %vm1946_vm4, %v3484_v7, -inf }
 0xdf0   : > { %3489 = vmax.xlane.f32.xlu1 %v3488_v8 }
 0xe3b   : > { %v3382_v9 = vpop.f32.mrb[32].mxu1  ;;  %v3428_v10 = vpop.f32.mrb[40].mxu0 }
 0xe3c   : > { %v3481_v12 = vmul.f32 0.35355338, %v3382_v9  ;;  %v3482_v13 = vmul.f32 0.35355338, %v3428_v10  ;;  %v10282_v14 = vpop.f32.mrb[33].mxu1  ;;  %v10288_v15 = vpop.f32.mrb[41].mxu0 }
 0xe3d   : > { %v3385_v16 = vpop.f32.mrb[34].mxu1  ;;  %v3431_v17 = vpop.f32.mrb[42].mxu0 }
 0xe3e   : > { %v10283_v18 = vpop.f32.mrb[35].mxu1  ;;  %v10289_v19 = vpop.f32.mrb[43].mxu0  ;;  %v3485_v20 = vadd.f32 %v11416_v48, %v3481_v12  ;;  %v3486_v21 = vadd.f32 %v11416_v48, %v3482_v13 }
 0xe40   : > { %v3491_v22 = vsel %vm1946_vm4, %v3485_v20, -inf  ;;  %v3494_v23 = vsel %vm1946_vm4, %v3486_v21, -inf }
 0xe41   : > { %3492 = vmax.xlane.f32.xlu0 %v3491_v22  ;;  %3495 = vmax.xlane.f32.xlu1 %v3494_v23 }
 0xe43   : > { %v3474_v24 = vpop.f32.mrb[36].mxu1 }
 0xe44   : > { %v3483_v26 = vmul.f32 0.35355338, %v3474_v24  ;;  %v10294_v27 = vpop.f32.mrb[37].mxu1 }
 0xe45   : > { %v3477_v28 = vpop.f32.mrb[38].mxu1 }
 0xe46   : > { %v10295_v29 = vpop.f32.mrb[39].mxu1  ;;  %v3487_v31 = vadd.f32 %v11416_v48, %v3483_v26 }
 0xe48   : > { %v3497_v33 = vsel %vm1946_vm4, %v3487_v31, -inf }
 0xe49   : > { %3498 = vmax.xlane.f32.xlu0 %v3497_v33 }
 0xe52   : > { %3223 = vrot.lane.b32.xlu1 %v3221_v36, %s12290_s18  ;;  %s12392_s18 = smov 24  }
 0xe56   : > { %3229 = vrot.lane.b32.xlu1 %v3221_v36, %s12288_s16  ;;  %s12391_s16 = smov 8  }
 0xe7d   : > { %v3490_v11 = vpop.xlane.xlu1 %3489 }
 0xe7e   : > { %v3500_v37 = vsub.f32 %v3484_v7, %v3490_v11 }
 0xe80   : > { %v3504_v39 = vmul.f32 1.442695, %v3500_v37 }
 0xe82   : > { %10882 = vpow2.f32 %v3504_v39 }
 0xe8c   : > { %v10883_v40 = vpop.eup %10882 }
 0xe8d   : > { %v3512_v41 = vsel %vm1946_vm4, %v10883_v40, 0.0 }
 0xe8e   : > { %3513 = vadd.xlane.f32.xlu0 %v3512_v41 }
 0xece   : > { %v3493_v48 = vpop.xlane.xlu0 %3492  ;;  %v3496_v42 = vpop.xlane.xlu1 %3495 }
 0xecf   : > { %v3501_v43 = vsub.f32 %v3485_v20, %v3493_v48  ;;  %v3502_v44 = vsub.f32 %v3486_v21, %v3496_v42 }
 0xed1   : > { %v3506_v45 = vmul.f32 1.442695, %v3501_v43  ;;  %v3508_v46 = vmul.f32 1.442695, %v3502_v44 }
 0xed2   : > { %v3224_v61 = vpop.permute.xlu1 %3223 }
 0xed3   : > { %10884 = vpow2.f32 %v3506_v45 }
 0xed4   : > { %10886 = vpow2.f32 %v3508_v46 }
 0xed6   : > { %v3499_v51 = vpop.xlane.xlu0 %3498  ;;  %v3230_v62 = vpop.permute.xlu1 %3229 }
 0xed7   : > { %v3503_v52 = vsub.f32 %v3487_v31, %v3499_v51 }
 0xed9   : > { %v3510_v53 = vmul.f32 1.442695, %v3503_v52 }
 0xedb   : > { %10888 = vpow2.f32 %v3510_v53 }
 0xedd   : > { %v10885_v30 = vpop.eup %10884 }
 0xede   : > { %v10887_v47 = vpop.eup %10886  ;;  %v3515_v49 = vsel %vm1946_vm4, %v10885_v30, 0.0 }
 0xedf   : > { %3516 = vadd.xlane.f32.xlu0 %v3515_v49  ;;  %v3518_v50 = vsel %vm1946_vm4, %v10887_v47, 0.0 }
 0xee0   : > { %3519 = vadd.xlane.f32.xlu1 %v3518_v50 }
 0xee5   : > { %v10889_v54 = vpop.eup %10888 }
 0xee6   : > { %v3521_v55 = vsel %vm1946_vm4, %v10889_v54, 0.0 }
 0xef5   : > { %3226 = vrot.lane.b32.xlu0 %v3221_v36, %s12294_s22  ;;  %s12394_s22 = sld [smem:[#allocation23_spill]] }
 0xf0d   : > { %3536 = vxpose.xlu1.c.b16.start.end [1/1] (short) (narrow) %v3221_v36, 16 }
 0xf14   : > { %3522 = vadd.xlane.f32.xlu0 %v3521_v55 }
 0xf1b   : > { %v3514_v56 = vpop.xlane.xlu0 %3513 }
 0xf1c   : > { %10890 = vrcp.f32 %v3514_v56 }
 0xf26   : > { %v10891_v57 = vpop.eup %10890 }
 0xf27   : > { %v3528_v58 = vmul.f32 %v10891_v57, %v10883_v40  ;;  %v10808_v57 = vld [vmem:[%s12373_s24 + $0x10] sm:$0xff]  }
 0xf29   : > { %v3532_v59 = vpack.c.bf16 %v3528_v58, %v3528_v58 }
 0xf2b   : > { %v3604_v60 = vsel %vm1946_vm4, %v3532_v59, 0 }
 0xf2c   : > { %10297 = vmatpush3.bf16.xpose.msra.mxu0 %v3604_v60 }
 0xf2d   : > { %10308 = vmatprep.subr.bf16.mxu0 %v11044_v2 }
 0xf41   : > { %3552 = vxpose.xlu0.c.b16.start.end [1/1] (short) (narrow) %v3224_v61, 16 }
 0xf6c   : > { %v3517_v63 = vpop.xlane.xlu0 %3516 }
 0xf6d   : > { %10892 = vrcp.f32 %v3517_v63  ;;  %v3520_v0 = vpop.xlane.xlu1 %3519 }
 0xf6e   : > { %10894 = vrcp.f32 %v3520_v0 }
 0xf70   : > { %v3227_v1 = vpop.permute.xlu0 %3226 }
 0xf71   : > { %3568 = vxpose.xlu1.c.b16.start.end [1/1] (short) (narrow) %v3227_v1, 16 }
 0xf73   : > { %v3544_v3 = vpop.trf.xlu1 }
 0xf74   : > { %10299 = vmatmul.mubr.msk.bf16.vlgmr.msra.gmra.mrb[44].mxu0 %vm1946_vm4, %v3544_v3  ;;  %v10809_v3 = vld [vmem:[%s12373_s24 + $0x18] sm:$0xff]   ;;  %s12413_s24 = sld [smem:[#allocation50_spill]] }
 0xf75   : > { %3584 = vxpose.xlu1.c.b16.start.end [1/1] (short) (narrow) %v3230_v62, 16  ;;  %10310 = vmatprep.mubr.msk.bf16.mxu0 %vm11045_vm0, %v11044_v2 }
 0xf77   : > { %v10893_v6 = vpop.eup %10892 }
 0xf78   : > { %v10895_v7 = vpop.eup %10894  ;;  %v3529_v8 = vmul.f32 %v10893_v6, %v10885_v30 }
 0xf79   : > { %v3530_v9 = vmul.f32 %v10895_v7, %v10887_v47 }
 0xf7a   : > { %v3533_v10 = vpack.c.bf16 %v3529_v8, %v3529_v8 }
 0xf7b   : > { %v3534_v12 = vpack.c.bf16 %v3530_v9, %v3530_v9 }
 0xf7c   : > { %v3650_v13 = vsel %vm1946_vm4, %v3533_v10, 0 }
 0xf7d   : > { %10303 = vmatpush3.bf16.xpose.msra.mxu1 %v3650_v13  ;;  %v3696_v14 = vsel %vm1946_vm4, %v3534_v12, 0 }
 0xf7e   : > { %10309 = vmatpush3.bf16.xpose.msra.mxu0 %v3696_v14  ;;  %10314 = vmatprep.subr.bf16.mxu1 %v11044_v2 }
 0xf7f   : > { %10320 = vmatprep.subr.bf16.mxu0 %v11044_v2 }
 0xfa1   : > { %v3523_v15 = vpop.xlane.xlu0 %3522 }
 0xfa2   : > { %10896 = vrcp.f32 %v3523_v15 }
 0xfa7   : > { %v3560_v16 = vpop.trf.xlu0 }
 0xfa8   : > { %10305 = vmatmul.mubr.msk.bf16.vlgmr.msra.gmra.mrb[40].mxu1 %vm1946_vm4, %v3560_v16 }
 0xfa9   : > { %10316 = vmatprep.mubr.msk.bf16.mxu1 %vm11045_vm0, %v11044_v2 }
 0xfac   : > { %v10897_v17 = vpop.eup %10896 }
 0xfad   : > { %v3531_v18 = vmul.f32 %v10897_v17, %v10889_v54 }
 0xfaf   : > { %v3535_v19 = vpack.c.bf16 %v3531_v18, %v3531_v18 }
 0xfb1   : > { %v3742_v20 = vsel %vm1946_vm4, %v3535_v19, 0 }
 0xfb2   : > { %10315 = vmatpush3.bf16.xpose.msra.mxu1 %v3742_v20 }
 0xfb3   : > { %10328 = vmatprep.subr.bf16.mxu1 %v11044_v2 }
 0xfd7   : > { %v3576_v21 = vpop.trf.xlu1 }
 0xfd8   : > { %10311 = vmatmul.mubr.msk.bf16.vlgmr.msra.gmra.mrb[48].mxu0 %vm1946_vm4, %v3576_v21 }
 0xfd9   : > { %10324 = vmatprep.mubr.msk.bf16.mxu0 %vm11045_vm0, %v11044_v2  ;;  %10321 = vmatpush3.bf16.msra.mxu0 %v10808_v57 }
 0xfda   : > { %10322 = vmatprep.subr.bf16.mxu0 %v11044_v2 }
 0xfdb   : > { %v3592_v22 = vpop.trf.xlu1 }
 0xfdc   : > { %10317 = vmatmul.mubr.msk.bf16.vlgmr.msra.gmra.mrb[44].mxu1 %vm1946_vm4, %v3592_v22 }
 0xfdd   : > { %10332 = vmatprep.mubr.msk.bf16.mxu1 %vm11045_vm0, %v11044_v2  ;;  %10323 = vmatpush3.bf16.msra.mxu0 %v10809_v3  ;;  %v10815_v3 = vld [vmem:[%s12395_s5 + $0x8] sm:$0xff]  }
 0xfde   : > { %10336 = vmatprep.subr.bf16.mxu0 %v11044_v2 }
0x1047   : > { %v3640_v23 = vpop.f32.mrb[44].mxu0 }
0x1048   : > { %v10300_v24 = vpop.f32.mrb[45].mxu0  ;;  %3784 = vxpose.xlu0.b32.start.end [1/1] (short) (narrow) %v3640_v23, 8 }
0x1049   : > { %v3643_v26 = vpop.f32.mrb[46].mxu0 }
0x104a   : > { %v10301_v27 = vpop.f32.mrb[47].mxu0 }
0x107b   : > { %v3686_v28 = vpop.f32.mrb[40].mxu1 }
0x107c   : > { %v10306_v29 = vpop.f32.mrb[41].mxu1  ;;  %3816 = vxpose.xlu1.b32.start.end [1/1] (short) (narrow) %v3686_v28, 8 }
0x107d   : > { %v3689_v31 = vpop.f32.mrb[42].mxu1 }
0x107e   : > { %v10307_v33 = vpop.f32.mrb[43].mxu1 }
0x107f   : > { %v9703_v33 = vld [vmem:[%s12370_s30 + $0x1] ss:$0 sm:$0xff]  ;;  %s12419_s30 = sld [smem:[#allocation39_spill]] }
0x10ab   : > { %v3732_v34 = vpop.f32.mrb[48].mxu0 }
0x10ac   : > { %3848 = vxpose.xlu0.b32.start.end [1/1] (short) (narrow) %v3732_v34, 8  ;;  %v10312_v35 = vpop.f32.mrb[49].mxu0 }
0x10ad   : > { %v3735_v36 = vpop.f32.mrb[50].mxu0 }
0x10ae   : > { %v10313_v11 = vpop.f32.mrb[51].mxu0 }
0x10af   : > { %v3778_v37 = vpop.f32.mrb[44].mxu1 }
0x10b0   : > { %v10318_v39 = vpop.f32.mrb[45].mxu1  ;;  %3880 = vxpose.xlu0.b32.start.end [1/1] (short) (narrow) %v3778_v37, 8 }
0x10b1   : > { %v3781_v40 = vpop.f32.mrb[46].mxu1 }
0x10b2   : > { %v10319_v41 = vpop.f32.mrb[47].mxu1 }
0x10c8   : > { %v3800_v48 = vpop.trf.xlu0 }
0x10fc   : > { %v3832_v43 = vpop.trf.xlu1 }
0x112c   : > { %v3864_v42 = vpop.trf.xlu0 }
0x112d   : > { %v3912_v44 = vcombine.low %v3800_v48, %v3864_v42  ;;  %v3913_v45 = vcombine.high %v3800_v48, %v3864_v42 }
0x112f   : > { %v3920_v49 = vrot.slane %v3912_v44, %v11455_v32  ;;  %v3927_v50 = vrot.slane %v3913_v45, %v11455_v32  ;;  %v10810_v45 = vld [vmem:[%s12378_s6 + $0x10] sm:$0xff]  }
0x1130   : > { %v3896_v46 = vpop.trf.xlu0  ;;  %10329 = vmatpush3.bf16.msra.mxu1 %v10810_v45 }
0x1131   : > { %v3928_v30 = vcombine.low %v3832_v43, %v3896_v46  ;;  %v3929_v47 = vcombine.high %v3832_v43, %v3896_v46  ;;  %v10811_v46 = vld [vmem:[%s12378_s6 + $0x18] sm:$0xff]   ;;  %10330 = vmatprep.subr.bf16.mxu1 %v11044_v2  ;;  %s12401_s6 = smov 104  }
0x1133   : > { %v3936_v51 = vrot.slane %v3928_v30, %v11455_v32  ;;  %v3943_v52 = vrot.slane %v3929_v47, %v11455_v32  ;;  %v10817_v30 = vld [vmem:[%s12374_s20 + $0x28] sm:$0xff]  }
0x1134   : > { %10331 = vmatpush3.bf16.msra.mxu1 %v10811_v46 }
0x1135   : > { %v3944_v53 = vcombine.low %v3920_v49, %v3936_v51  ;;  %v3945_v54 = vcombine.high %v3920_v49, %v3936_v51  ;;  %v3960_v55 = vcombine.low %v3927_v50, %v3943_v52  ;;  %v3961_v56 = vcombine.high %v3927_v50, %v3943_v52  ;;  %10348 = vmatprep.subr.bf16.mxu1 %v11044_v2  ;;  %v9709_v52 = vld [vmem:[%s12379_s4 + $0x1] ss:$0 sm:$0xff]  ;;  %s12400_s4 = smov 120  }
0x1137   : > { %v3952_v58 = vrot.slane %v3944_v53, %v11458_v38  ;;  %v3959_v59 = vrot.slane %v3945_v54, %v11458_v38  ;;  %v3968_v60 = vrot.slane %v3960_v55, %v11458_v38  ;;  %v3975_v61 = vrot.slane %v3961_v56, %v11458_v38  ;;  %v9710_v55 = vld [vmem:[%s12386_s2 + $0x1] ss:$0 sm:$0xff]  ;;  %s12399_s2 = smov 112  }
0x1139   : > { %v3980_v62 = vcombine.low %v3952_v58, %v3959_v59  ;;  %v9696_v63 = vcombine.high %v3952_v58, %v3959_v59  ;;  %v3996_v0 = vcombine.low %v3968_v60, %v3975_v61  ;;  %v9697_v1 = vcombine.high %v3968_v60, %v3975_v61  ;;  %v10812_v59 = vld [vmem:[%s12394_s22] sm:$0xff]  }
0x113a   : > { %v10982_v61 = vld [vmem:[%s11365_s15] ss:$0 sm:$0xff]  ;;  %s12397_s15 = sld [smem:[#allocation24_spill]] }
0x113b   : > { %v3987_v6 = vrot.slane %v3980_v62, %v11455_v32  ;;  %v3995_v7 = vrot.slane %v9696_v63, %v11455_v32  ;;  %v4003_v8 = vrot.slane %v3996_v0, %v11455_v32  ;;  %v4011_v9 = vrot.slane %v9697_v1, %v11455_v32  ;;  %v10813_v63 = vld [vmem:[%s12394_s22 + $0x8] sm:$0xff]   ;;  %v10814_v1 = vld [vmem:[%s12395_s5] sm:$0xff]  }
0x113d   : > { %v4013_v10 = vcombine.high %v3987_v6, %v3995_v7  ;;  %v4029_v12 = vcombine.high %v4003_v8, %v4011_v9  ;;  %v4012_v13 = vcombine.low %v3987_v6, %v3995_v7  ;;  %v4028_v14 = vcombine.low %v4003_v8, %v4011_v9  ;;  %v10818_v6 = vld [vmem:[%s12374_s20 + $0x30] sm:$0xff]   ;;  %v10819_v7 = vld [vmem:[%s12374_s20 + $0x38] sm:$0xff]   ;;  %v9716_v8 = vld [vmem:[%s12387_s11 + $0x1] ss:$0 sm:$0xff]  ;;  %s1621_s11 = scalar_lea.vmem %s12402_s8, %s12439_s10  ;;  %s12403_s8 = sld [smem:[#allocation28_spill]] }
0x113e   : > { %s12404_s10 = sld [smem:[#allocation29_spill]] }
0x113f   : > { %v4027_v15 = vrot.slane %v4013_v10, %v11458_v38  ;;  %v4043_v16 = vrot.slane %v4029_v12, %v11458_v38  ;;  %v4020_v17 = vrot.slane %v4012_v13, %v11458_v38  ;;  %v4036_v18 = vrot.slane %v4028_v14, %v11458_v38 }
0x1141   : > { %v4046_v19 = vcombine.low %v4027_v15, %v4043_v16  ;;  %v4045_v20 = vcombine.high %v4020_v17, %v4036_v18  ;;  %v4044_v21 = vcombine.low %v4020_v17, %v4036_v18  ;;  %v4047_v22 = vcombine.high %v4027_v15, %v4043_v16 }
0x1143   : > { %4053 = vrot.lane.b32.xlu0 %v4046_v19, %s12292_s26  ;;  %4049 = vrot.lane.b32.xlu1 %v4045_v20, %s12391_s16  ;;  %s12393_s26 = sld [smem:[#allocation3_spill]] }
0x1147   : > { %4057 = vrot.lane.b32.xlu1 %v4047_v22, %s12392_s18  ;;  %v9741_v22 = vld [vmem:[%s12397_s15] ss:$0 sm:$0xff] }
0x1149   : > { %s1615_s3 = scalar_lea.vmem %s12393_s26, %s11356_s0  ;;  %s12398_s26 = sld [smem:[#allocation27_spill]] }
0x114a   : > { %v1655_v54 = vld [vmem:[%s1615_s3] sm:$0xff]  ;;  %s12396_s3 = sld [smem:[#allocation26_spill]]  ;;  %s12422_s0 = sld [smem:[#allocation45_spill]] }
0x114b   : > { %v1656_v57 = vmul.f32 5.656854, %v1655_v54 }
0x114d   : > { %v11662_v62 = vadd.f32 %v10982_v61, %v1656_v57  ;;  %v1638_v57 = vsel %vm1637_vm1, -1e+30, %v11044_v2 }
0x114f   : > { %v4385_v0 = vpack.c.bf16 %v11662_v62, %v11662_v62 }
0x11b5   : > { %v4050_v23 = vpop.permute.xlu1 %4049  ;;  %v4054_v24 = vpop.permute.xlu0 %4053 }
0x11b6   : > { %v4060_v26 = vsel %vm1946_vm4, %v4044_v21, %v4050_v23  ;;  %v9745_v21 = vld [vmem:[%s12396_s3] ss:$0 sm:$0xff] }
0x11b7   : > { %v4061_v28 = vsel %vm2719_vm5, %v4060_v26, %v4054_v24 }
0x11b9   : > { %v4058_v27 = vpop.permute.xlu1 %4057 }
0x11ba   : > { %v4062_v29 = vsel %vm2721_vm6, %v4061_v28, %v4058_v27 }
0x11bb   : > { %v4070_v31 = vpack.c.bf16 %v4062_v29, %v4062_v29 }
0x11bd   : > { %10325 = vmatmul.mubr.msk.bf16.vlgmr.msra.gmra.mrb[52].mxu0 %vm1682_vm2, %v4070_v31 }
0x11be   : > { %10344 = vmatprep.mubr.msk.bf16.mxu0 %vm11045_vm0, %v11044_v2 }
0x1290   : > { %v4126_v34 = vpop.f32.mrb[52].mxu0 }
0x1291   : > { %v4127_v35 = vadd.f32 %v9703_v33, %v4126_v34  ;;  %v10326_v36 = vpop.f32.mrb[53].mxu0  ;;  %v10820_v34 = vld [vmem:[%s12398_s26] sm:$0xff]  }
0x1292   : > { %v4129_v11 = vpop.f32.mrb[54].mxu0 }
0x1293   : > { %v10327_v37 = vpop.f32.mrb[55].mxu0  ;;  %v4132_v39 = vadd.f32 %v4127_v35, %v11527_v25  ;;  %v10816_v25 = vld [vmem:[%s12374_s20 + $0x20] sm:$0xff]   ;;  %v10821_v35 = vld [vmem:[%s12398_s26 + $0x8] sm:$0xff]   ;;  %s12410_s20 = sld [smem:[#allocation44_spill]] }
0x1294   : > { %10337 = vmatpush3.bf16.msra.mxu0 %v10816_v25 }
0x1295   : > { %v4137_v40 = vsel %vm1682_vm2, %v4132_v39, 0.0  ;;  %10338 = vmatprep.subr.bf16.mxu0 %v11044_v2 }
0x1296   : > { %4138 = vadd.xlane.f32.xlu1 %v4137_v40 }
0x1298   : > { %10339 = vmatpush3.bf16.msra.mxu0 %v10817_v30 }
0x1299   : > { %10340 = vmatprep.subr.bf16.mxu0 %v11044_v2 }
0x129c   : > { %10341 = vmatpush3.bf16.msra.mxu0 %v10818_v6 }
0x129d   : > { %10342 = vmatprep.subr.bf16.mxu0 %v11044_v2 }
0x12a0   : > { %10343 = vmatpush3.bf16.msra.mxu0 %v10819_v7 }
0x12a1   : > { %10364 = vmatprep.subr.bf16.mxu0 %v11044_v2 }
0x1323   : > { %v4139_v41 = vpop.xlane.xlu1 %4138 }
0x1324   : > { %v4140_v48 = vmul.f32 0.03125, %v4139_v41 }
0x1326   : > { %v4141_v42 = vsub.f32 %v4132_v39, %v4140_v48 }
0x1328   : > { %v4142_v43 = vmul.f32 %v4141_v42, %v4141_v42 }
0x132a   : > { %v4143_v44 = vsel %vm1682_vm2, %v4142_v43, 0.0 }
0x132b   : > { %4144 = vadd.xlane.f32.xlu0 %v4143_v44 }
0x13b8   : > { %v4145_v47 = vpop.xlane.xlu0 %4144 }
0x13b9   : > { %v4146_v49 = vmul.f32 0.03125, %v4145_v47 }
0x13bb   : > { %v4147_v50 = vadd.f32 1e-05, %v4146_v49 }
0x13bd   : > { %10898 = vrsqrt.f32 %v4147_v50 }
0x13c7   : > { %v10899_v51 = vpop.eup %10898 }
0x13c8   : > { %v4149_v53 = vmul.f32 %v10899_v51, %v4141_v42 }
0x13ca   : > { %v4156_v56 = vmul.f32 %v9709_v52, %v4149_v53 }
0x13cc   : > { %v11656_v58 = vadd.f32 %v9710_v55, %v4156_v56  ;;  %v9618_v56 = vld [vmem:[%s1621_s11] ss:$0 sm:$0xff]  ;;  %s12405_s11 = smov 16  }
0x13ce   : > { %v4171_v60 = vpack.c.bf16 %v11656_v58, %v11656_v58 }
0x13d0   : > { %10333 = vmatmul.mubr.msk.bf16.vlgmr.msra.gmra.mrb[48].mxu1 %vm1682_vm2, %v4171_v60 }
0x13d1   : > { %10349 = vmatpush3.bf16.msra.mxu1 %v10812_v59  ;;  %10352 = vmatprep.mubr.msk.bf16.mxu1 %vm11045_vm0, %v11044_v2  ;;  %v11733_v59 = vadd.f32 %v9618_v56, %v1638_v57 }
0x13d2   : > { %10350 = vmatprep.subr.bf16.mxu1 %v11044_v2 }
0x13d5   : > { %10351 = vmatpush3.bf16.msra.mxu1 %v10813_v63 }
0x13d6   : > { %10356 = vmatprep.subr.bf16.mxu1 %v11044_v2 }
0x13d8   : > { %10353 = vmatmul.mubr.msk.bf16.vlgmr.msra.gmra.mrb[52].mxu1 %vm1682_vm2, %v4385_v0 }
0x13d9   : > { %10357 = vmatpush3.bf16.msra.mxu1 %v10814_v1  ;;  %10360 = vmatprep.mubr.msk.bf16.mxu1 %vm11045_vm0, %v11044_v2 }
0x13da   : > { %10358 = vmatprep.subr.bf16.mxu1 %v11044_v2 }
0x13dd   : > { %10359 = vmatpush3.bf16.msra.mxu1 %v10815_v3 }
0x13de   : > { %10372 = vmatprep.subr.bf16.mxu1 %v11044_v2 }
0x13e0   : > { %10361 = vmatmul.mubr.msk.bf16.vlgmr.msra.gmra.mrb[56].mxu1 %vm1682_vm2, %v4385_v0 }
0x13e1   : > { %10374 = vmatprep.mubr.msk.bf16.mxu1 %vm11045_vm0, %v11044_v2 }
0x14a3   : > { %v4227_v9 = vpop.f32.mrb[48].mxu1 }
0x14a4   : > { %v4228_v10 = vadd.f32 %v9716_v8, %v4227_v9  ;;  %v10334_v12 = vpop.f32.mrb[49].mxu1 }
0x14a5   : > { %v4230_v13 = vpop.f32.mrb[50].mxu1 }
0x14a6   : > { %v4233_v14 = vmax.f32 %v4228_v10, 0.0  ;;  %v10335_v15 = vpop.f32.mrb[51].mxu1 }
0x14a8   : > { %v4245_v16 = vpack.c.bf16 %v4233_v14, %v4233_v14 }
0x14aa   : > { %10345 = vmatmul.mubr.msk.bf16.vlgmr.msra.gmra.mrb[56].mxu0 %vm2929_vm7, %v4245_v16 }
0x14ab   : > { %v4441_v17 = vpop.f32.mrb[52].mxu1  ;;  %10368 = vmatprep.mubr.msk.bf16.mxu0 %vm11045_vm0, %v11044_v2  ;;  %10365 = vmatpush3.bf16.msra.mxu0 %v10820_v34 }
0x14ac   : > { %v10354_v18 = vpop.f32.mrb[53].mxu1  ;;  %v4442_v28 = vadd.f32 %v9741_v22, %v4441_v17  ;;  %10366 = vmatprep.subr.bf16.mxu0 %v11044_v2 }
0x14ad   : > { %v4444_v19 = vpop.f32.mrb[54].mxu1 }
0x14ae   : > { %v10355_v20 = vpop.f32.mrb[55].mxu1  ;;  %v4573_v33 = vpack.c.bf16 %v4442_v28, %v4442_v28  ;;  %v9749_v28 = vld [vmem:[%s12403_s8] ss:$0 sm:$0xff] }
0x14af   : > { %10367 = vmatpush3.bf16.msra.mxu0 %v10821_v35 }
0x14b0   : > { %10378 = vmatprep.subr.bf16.mxu0 %v11044_v2 }
0x14b2   : > { %10369 = vmatmul.mubr.msk.bf16.vlgmr.msra.gmra.mrb[60].mxu0 %vm1682_vm2, %v4385_v0 }
0x14b3   : > { %v4504_v23 = vpop.f32.mrb[56].mxu1  ;;  %10380 = vmatprep.mubr.msk.bf16.mxu0 %vm11045_vm0, %v11044_v2 }
0x14b4   : > { %v4505_v24 = vadd.f32 %v9745_v21, %v4504_v23  ;;  %v10362_v26 = vpop.f32.mrb[57].mxu1 }
0x14b5   : > { %v4507_v27 = vpop.f32.mrb[58].mxu1 }
0x14b6   : > { %v4581_v29 = vpack.c.bf16 %v4505_v24, %v4505_v24  ;;  %v10363_v31 = vpop.f32.mrb[59].mxu1 }
0x14b8   : > { %4586 = vrot.lane.b32.xlu0 %v4581_v29, %s12399_s2  ;;  %4583 = vrot.lane.b32.xlu1 %v4581_v29, %s12400_s4 }
0x14bc   : > { %4577 = vrot.lane.b32.xlu0 %v4573_v33, %s12399_s2  ;;  %4589 = vrot.lane.b32.xlu1 %v4581_v29, %s12401_s6 }
0x14c0   : > { %4575 = vrot.lane.b32.xlu1 %v4573_v33, %s12400_s4 }
0x14c4   : > { %4579 = vrot.lane.b32.xlu1 %v4573_v33, %s12401_s6 }
0x14da   : > { %4603 = vxpose.xlu0.c.b16.start.end [1/1] (short) (narrow) %v4581_v29, 16 }
0x152a   : > { %v4587_v36 = vpop.permute.xlu0 %4586  ;;  %v4584_v11 = vpop.permute.xlu1 %4583 }
0x152b   : > { %4635 = vxpose.xlu0.c.b16.start.end [1/1] (short) (narrow) %v4587_v36, 16  ;;  %4619 = vxpose.xlu1.c.b16.start.end [1/1] (short) (narrow) %v4584_v11, 16 }
0x152e   : > { %v4590_v37 = vpop.permute.xlu1 %4589  ;;  %v4578_v39 = vpop.permute.xlu0 %4577 }
0x152f   : > { %4651 = vxpose.xlu0.c.b16.start.end [1/1] (short) (narrow) %v4590_v37, 16 }
0x1532   : > { %v4576_v45 = vpop.permute.xlu1 %4575 }
0x1536   : > { %v4580_v46 = vpop.permute.xlu1 %4579 }
0x1540   : > { %v4611_v40 = vpop.trf.xlu0 }
0x1541   : > { %v4671_v41 = vsel %vm1950_vm3, %v4611_v40, 0 }
0x1542   : > { %10373 = vmatpush3.bf16.msra.mxu1 %v4671_v41 }
0x1543   : > { %10384 = vmatprep.subr.bf16.mxu1 %v11044_v2 }
0x1545   : > { %10375 = vmatmul.mubr.msk.bf16.vlgmr.msra.gmra.mrb[60].mxu1 %vm1946_vm4, %v4573_v33 }
0x1546   : > { %10386 = vmatprep.mubr.msk.bf16.mxu1 %vm11045_vm0, %v11044_v2 }
0x157d   : > { %v11710_v48 = vpop.f32.mrb[56].mxu0 }
0x157e   : > { %v10346_v42 = vpop.f32.mrb[57].mxu0 }
0x157f   : > { %v4316_v43 = vpop.f32.mrb[58].mxu0 }
0x1580   : > { %v10347_v44 = vpop.f32.mrb[59].mxu0 }
0x1585   : > { %v4567_v52 = vpop.f32.mrb[60].mxu0 }
0x1586   : > { %v10370_v53 = vpop.f32.mrb[61].mxu0  ;;  %v4568_v29 = vadd.f32 %v9749_v28, %v4567_v52 }
0x1587   : > { %v4570_v54 = vpop.f32.mrb[62].mxu0 }
0x1588   : > { %v10371_v55 = vpop.f32.mrb[63].mxu0  ;;  %v4592_v31 = vpack.c.bf16 %v4568_v29, %v4568_v29 }
0x1591   : > { %v4643_v25 = vpop.trf.xlu0  ;;  %v4627_v30 = vpop.trf.xlu1 }
0x1592   : > { %v4763_v47 = vsel %vm1950_vm3, %v4643_v25, 0  ;;  %v4717_v49 = vsel %vm1950_vm3, %v4627_v30, 0 }
0x1593   : > { %10379 = vmatpush3.bf16.msra.mxu0 %v4717_v49  ;;  %10385 = vmatpush3.bf16.msra.mxu1 %v4763_v47 }
0x1594   : > { %10390 = vmatprep.subr.bf16.mxu0 %v11044_v2  ;;  %10396 = vmatprep.subr.bf16.mxu1 %v11044_v2 }
0x1595   : > { %v4659_v50 = vpop.trf.xlu0 }
0x1596   : > { %10381 = vmatmul.mubr.msk.bf16.vlgmr.msra.gmra.mrb[64].mxu0 %vm1946_vm4, %v4576_v45  ;;  %10387 = vmatmul.mubr.msk.bf16.vlgmr.msra.gmra.mrb[64].mxu1 %vm1946_vm4, %v4578_v39  ;;  %v4809_v51 = vsel %vm1950_vm3, %v4659_v50, 0 }
0x1597   : > { %10391 = vmatpush3.bf16.msra.mxu0 %v4809_v51  ;;  %10392 = vmatprep.mubr.msk.bf16.mxu0 %vm11045_vm0, %v11044_v2 }
0x1598   : > { %10398 = vmatprep.mubr.msk.bf16.mxu1 %vm11045_vm0, %v11044_v2  ;;  %10402 = vmatprep.subr.bf16.mxu0 %v11044_v2 }
0x159e   : > { %10393 = vmatmul.mubr.msk.bf16.vlgmr.msra.gmra.mrb[68].mxu0 %vm1946_vm4, %v4580_v46 }
0x159f   : > { %10404 = vmatprep.mubr.msk.bf16.mxu0 %vm11045_vm0, %v11044_v2 }
0x1618   : > { %v4707_v60 = vpop.f32.mrb[60].mxu1 }
0x1619   : > { %v4851_v61 = vmul.f32 0.35355338, %v4707_v60  ;;  %v10376_v63 = vpop.f32.mrb[61].mxu1 }
0x161a   : > { %v4710_v0 = vpop.f32.mrb[62].mxu1 }
0x161b   : > { %v10377_v1 = vpop.f32.mrb[63].mxu1  ;;  %v4855_v3 = vadd.f32 %v4851_v61, %v11733_v59 }
0x161d   : > { %v4859_v6 = vsel %vm1946_vm4, %v4855_v3, -inf }
0x161e   : > { %4860 = vmax.xlane.f32.xlu1 %v4859_v6 }
0x1669   : > { %v4753_v7 = vpop.f32.mrb[64].mxu0  ;;  %v4799_v8 = vpop.f32.mrb[64].mxu1 }
0x166a   : > { %v4852_v9 = vmul.f32 0.35355338, %v4753_v7  ;;  %v4853_v10 = vmul.f32 0.35355338, %v4799_v8  ;;  %v10382_v12 = vpop.f32.mrb[65].mxu0  ;;  %v10388_v13 = vpop.f32.mrb[65].mxu1 }
0x166b   : > { %v4756_v4 = vpop.f32.mrb[66].mxu0  ;;  %v4802_v5 = vpop.f32.mrb[66].mxu1 }
0x166c   : > { %v10383_v14 = vpop.f32.mrb[67].mxu0  ;;  %v10389_v15 = vpop.f32.mrb[67].mxu1  ;;  %v4857_v16 = vadd.f32 %v4853_v10, %v11733_v59  ;;  %v4856_v17 = vadd.f32 %v4852_v9, %v11733_v59 }
0x166e   : > { %v4865_v18 = vsel %vm1946_vm4, %v4857_v16, -inf  ;;  %v4862_v19 = vsel %vm1946_vm4, %v4856_v17, -inf }
0x166f   : > { %4866 = vmax.xlane.f32.xlu1 %v4865_v18  ;;  %4863 = vmax.xlane.f32.xlu0 %v4862_v19 }
0x1671   : > { %v4845_v20 = vpop.f32.mrb[68].mxu0 }
0x1672   : > { %v4854_v21 = vmul.f32 0.35355338, %v4845_v20  ;;  %v10394_v22 = vpop.f32.mrb[69].mxu0 }
0x1673   : > { %v4848_v23 = vpop.f32.mrb[70].mxu0 }
0x1674   : > { %v10395_v24 = vpop.f32.mrb[71].mxu0  ;;  %v4858_v26 = vadd.f32 %v4854_v21, %v11733_v59 }
0x1676   : > { %v4868_v27 = vsel %vm1946_vm4, %v4858_v26, -inf }
0x1677   : > { %4869 = vmax.xlane.f32.xlu0 %v4868_v27 }
0x1680   : > { %4594 = vrot.lane.b32.xlu1 %v4592_v31, %s12400_s4 }
0x1684   : > { %4600 = vrot.lane.b32.xlu1 %v4592_v31, %s12401_s6 }
0x16ab   : > { %v4861_v33 = vpop.xlane.xlu1 %4860 }
0x16ac   : > { %v4871_v34 = vsub.f32 %v4855_v3, %v4861_v33 }
0x16ae   : > { %v4875_v35 = vmul.f32 1.442695, %v4871_v34 }
0x16b0   : > { %10900 = vpow2.f32 %v4875_v35 }
0x16ba   : > { %v10901_v36 = vpop.eup %10900 }
0x16bb   : > { %v4883_v11 = vsel %vm1946_vm4, %v10901_v36, 0.0 }
0x16bc   : > { %4884 = vadd.xlane.f32.xlu0 %v4883_v11 }
0x16fc   : > { %v4867_v37 = vpop.xlane.xlu1 %4866  ;;  %v4864_v39 = vpop.xlane.xlu0 %4863 }
0x16fd   : > { %v4873_v40 = vsub.f32 %v4857_v16, %v4867_v37  ;;  %v4872_v41 = vsub.f32 %v4856_v17, %v4864_v39 }
0x16ff   : > { %v4879_v42 = vmul.f32 1.442695, %v4873_v40  ;;  %v4877_v43 = vmul.f32 1.442695, %v4872_v41 }
0x1700   : > { %v4595_v57 = vpop.permute.xlu1 %4594 }
0x1701   : > { %10902 = vpow2.f32 %v4879_v42 }
0x1702   : > { %10904 = vpow2.f32 %v4877_v43 }
0x1704   : > { %v4870_v30 = vpop.xlane.xlu0 %4869  ;;  %v4601_v60 = vpop.permute.xlu1 %4600 }
0x1705   : > { %v4874_v47 = vsub.f32 %v4858_v26, %v4870_v30 }
0x1707   : > { %v4881_v49 = vmul.f32 1.442695, %v4874_v47 }
0x1709   : > { %10906 = vpow2.f32 %v4881_v49 }
0x170b   : > { %v10903_v44 = vpop.eup %10902 }
0x170c   : > { %v10905_v45 = vpop.eup %10904  ;;  %v4889_v46 = vsel %vm1946_vm4, %v10903_v44, 0.0 }
0x170d   : > { %4890 = vadd.xlane.f32.xlu1 %v4889_v46  ;;  %v4886_v25 = vsel %vm1946_vm4, %v10905_v45, 0.0 }
0x170e   : > { %4887 = vadd.xlane.f32.xlu0 %v4886_v25 }
0x1713   : > { %v10907_v50 = vpop.eup %10906 }
0x1714   : > { %v4892_v51 = vsel %vm1946_vm4, %v10907_v50, 0.0 }
0x1724   : > { %4597 = vrot.lane.b32.xlu0 %v4592_v31, %s12399_s2 }
0x173a   : > { %4907 = vxpose.xlu1.c.b16.start.end [1/1] (short) (narrow) %v4592_v31, 16 }
0x1743   : > { %4893 = vadd.xlane.f32.xlu0 %v4892_v51 }
0x1749   : > { %v4885_v52 = vpop.xlane.xlu0 %4884 }
0x174a   : > { %10908 = vrcp.f32 %v4885_v52 }
0x1754   : > { %v10909_v53 = vpop.eup %10908 }
0x1755   : > { %v4899_v54 = vmul.f32 %v10909_v53, %v10901_v36 }
0x1757   : > { %v4903_v55 = vpack.c.bf16 %v4899_v54, %v4899_v54 }
0x1759   : > { %v4975_v56 = vsel %vm1946_vm4, %v4903_v55, 0 }
0x175a   : > { %10397 = vmatpush3.bf16.xpose.msra.mxu1 %v4975_v56 }
0x175b   : > { %10408 = vmatprep.subr.bf16.mxu1 %v11044_v2 }
0x1770   : > { %4923 = vxpose.xlu0.c.b16.start.end [1/1] (short) (narrow) %v4595_v57, 16 }
0x179a   : > { %v4891_v61 = vpop.xlane.xlu1 %4890 }
0x179b   : > { %10910 = vrcp.f32 %v4891_v61  ;;  %v4888_v63 = vpop.xlane.xlu0 %4887  ;;  %v10823_v61 = vld [vmem:[%s12404_s10 + $0x8] sm:$0xff]  }
0x179c   : > { %10912 = vrcp.f32 %v4888_v63 }
0x179f   : > { %v4598_v0 = vpop.permute.xlu0 %4597 }
0x17a0   : > { %4939 = vxpose.xlu1.c.b16.start.end [1/1] (short) (narrow) %v4598_v0, 16  ;;  %v4915_v1 = vpop.trf.xlu1 }
0x17a1   : > { %10399 = vmatmul.mubr.msk.bf16.vlgmr.msra.gmra.mrb[68].mxu1 %vm1946_vm4, %v4915_v1 }
0x17a2   : > { %10410 = vmatprep.mubr.msk.bf16.mxu1 %vm11045_vm0, %v11044_v2 }
0x17a4   : > { %4955 = vxpose.xlu1.c.b16.start.end [1/1] (short) (narrow) %v4601_v60, 16 }
0x17a5   : > { %v10911_v3 = vpop.eup %10910 }
0x17a6   : > { %v10913_v6 = vpop.eup %10912  ;;  %v4901_v7 = vmul.f32 %v10911_v3, %v10903_v44 }
0x17a7   : > { %v4900_v8 = vmul.f32 %v10913_v6, %v10905_v45 }
0x17a8   : > { %v4905_v9 = vpack.c.bf16 %v4901_v7, %v4901_v7 }
0x17a9   : > { %v4904_v10 = vpack.c.bf16 %v4900_v8, %v4900_v8 }
0x17aa   : > { %v5067_v12 = vsel %vm1946_vm4, %v4905_v9, 0 }
0x17ab   : > { %v5021_v13 = vsel %vm1946_vm4, %v4904_v10, 0  ;;  %10409 = vmatpush3.bf16.xpose.msra.mxu1 %v5067_v12 }
0x17ac   : > { %10403 = vmatpush3.bf16.xpose.msra.mxu0 %v5021_v13  ;;  %10420 = vmatprep.subr.bf16.mxu1 %v11044_v2 }
0x17ad   : > { %10414 = vmatprep.subr.bf16.mxu0 %v11044_v2 }
0x17d0   : > { %v4894_v4 = vpop.xlane.xlu0 %4893 }
0x17d1   : > { %10914 = vrcp.f32 %v4894_v4 }
0x17d6   : > { %v4931_v5 = vpop.trf.xlu0 }
0x17d7   : > { %10405 = vmatmul.mubr.msk.bf16.vlgmr.msra.gmra.mrb[72].mxu0 %vm1946_vm4, %v4931_v5 }
0x17d8   : > { %10416 = vmatprep.mubr.msk.bf16.mxu0 %vm11045_vm0, %v11044_v2 }
0x17db   : > { %v10915_v14 = vpop.eup %10914 }
0x17dc   : > { %v4902_v15 = vmul.f32 %v10915_v14, %v10907_v50  ;;  %v10822_v50 = vld [vmem:[%s12404_s10] sm:$0xff]  }
0x17de   : > { %v4906_v16 = vpack.c.bf16 %v4902_v15, %v4902_v15 }
0x17e0   : > { %v5113_v17 = vsel %vm1946_vm4, %v4906_v16, 0 }
0x17e1   : > { %10415 = vmatpush3.bf16.xpose.msra.mxu0 %v5113_v17 }
0x17e2   : > { %10428 = vmatprep.subr.bf16.mxu0 %v11044_v2 }
0x1806   : > { %v4947_v18 = vpop.trf.xlu1 }
0x1807   : > { %10411 = vmatmul.mubr.msk.bf16.vlgmr.msra.gmra.mrb[72].mxu1 %vm1946_vm4, %v4947_v18 }
0x1808   : > { %10424 = vmatprep.mubr.msk.bf16.mxu1 %vm11045_vm0, %v11044_v2  ;;  %10421 = vmatpush3.bf16.msra.mxu1 %v10822_v50 }
0x1809   : > { %10422 = vmatprep.subr.bf16.mxu1 %v11044_v2 }
0x180a   : > { %v4963_v19 = vpop.trf.xlu1 }
0x180b   : > { %10417 = vmatmul.mubr.msk.bf16.vlgmr.msra.gmra.mrb[76].mxu0 %vm1946_vm4, %v4963_v19 }
0x180c   : > { %10432 = vmatprep.mubr.msk.bf16.mxu0 %vm11045_vm0, %v11044_v2  ;;  %10423 = vmatpush3.bf16.msra.mxu1 %v10823_v61 }
0x180d   : > { %10436 = vmatprep.subr.bf16.mxu1 %v11044_v2 }
0x1874   : > { %v5011_v20 = vpop.f32.mrb[68].mxu1 }
0x1875   : > { %v10400_v21 = vpop.f32.mrb[69].mxu1  ;;  %5155 = vxpose.xlu0.b32.start.end [1/1] (short) (narrow) %v5011_v20, 8 }
0x1876   : > { %v5014_v22 = vpop.f32.mrb[70].mxu1  ;;  %v9729_v21 = vld [vmem:[%s12388_s23 + $0x1] ss:$0 sm:$0xff]  ;;  %s12412_s23 = sld [smem:[#allocation49_spill]] }
0x1877   : > { %v10401_v23 = vpop.f32.mrb[71].mxu1  ;;  %v4314_v22 = vadd.f32 %v9729_v21, %v11710_v48  ;;  %v10827_v21 = vld [vmem:[%s12411_s21] sm:$0xff]  }
0x1879   : > { %v4319_v23 = vadd.f32 %v4314_v22, %v11656_v58 }
0x18aa   : > { %v5057_v24 = vpop.f32.mrb[72].mxu0 }
0x18ab   : > { %v10406_v26 = vpop.f32.mrb[73].mxu0  ;;  %5187 = vxpose.xlu1.b32.start.end [1/1] (short) (narrow) %v5057_v24, 8  ;;  %v4324_v24 = vsel %vm1682_vm2, %v4319_v23, 0.0 }
0x18ac   : > { %v5060_v27 = vpop.f32.mrb[74].mxu0 }
0x18ad   : > { %v10407_v28 = vpop.f32.mrb[75].mxu0 }
0x18da   : > { %v5103_v29 = vpop.f32.mrb[72].mxu1 }
0x18db   : > { %5219 = vxpose.xlu0.b32.start.end [1/1] (short) (narrow) %v5103_v29, 8  ;;  %v10412_v31 = vpop.f32.mrb[73].mxu1 }
0x18dc   : > { %v5106_v33 = vpop.f32.mrb[74].mxu1 }
0x18dd   : > { %v10413_v34 = vpop.f32.mrb[75].mxu1 }
0x18de   : > { %v5149_v35 = vpop.f32.mrb[76].mxu0 }
0x18df   : > { %5251 = vxpose.xlu0.b32.start.end [1/1] (short) (narrow) %v5149_v35, 8  ;;  %v10418_v36 = vpop.f32.mrb[77].mxu0 }
0x18e0   : > { %v5152_v11 = vpop.f32.mrb[78].mxu0 }
0x18e1   : > { %v10419_v37 = vpop.f32.mrb[79].mxu0 }
0x18f5   : > { %v5171_v39 = vpop.trf.xlu0 }
0x192b   : > { %v5203_v41 = vpop.trf.xlu1 }
0x195b   : > { %v5235_v40 = vpop.trf.xlu0 }
0x195c   : > { %v5283_v42 = vcombine.low %v5171_v39, %v5235_v40  ;;  %v5284_v43 = vcombine.high %v5171_v39, %v5235_v40  ;;  %v9763_v40 = vld [vmem:[%s12406_s13] ss:$0 sm:$0xff] }
0x195e   : > { %v5291_v25 = vrot.slane %v5283_v42, %v11455_v32  ;;  %v5298_v30 = vrot.slane %v5284_v43, %v11455_v32 }
0x195f   : > { %v5267_v44 = vpop.trf.xlu0 }
0x1960   : > { %v5299_v45 = vcombine.low %v5203_v41, %v5267_v44  ;;  %v5300_v46 = vcombine.high %v5203_v41, %v5267_v44 }
0x1962   : > { %v5307_v47 = vrot.slane %v5299_v45, %v11455_v32  ;;  %v5314_v49 = vrot.slane %v5300_v46, %v11455_v32 }
0x1964   : > { %v5315_v51 = vcombine.low %v5291_v25, %v5307_v47  ;;  %v5316_v52 = vcombine.high %v5291_v25, %v5307_v47  ;;  %v5331_v53 = vcombine.low %v5298_v30, %v5314_v49  ;;  %v5332_v54 = vcombine.high %v5298_v30, %v5314_v49  ;;  %v9737_v49 = vld [vmem:[%s12389_s1 + $0x1] ss:$0 sm:$0xff]  ;;  %s12409_s1 = sld [smem:[#allocation43_spill]] }
0x1966   : > { %v5323_v55 = vrot.slane %v5315_v51, %v11458_v38  ;;  %v5330_v56 = vrot.slane %v5316_v52, %v11458_v38  ;;  %v5339_v57 = vrot.slane %v5331_v53, %v11458_v38  ;;  %v5346_v60 = vrot.slane %v5332_v54, %v11458_v38  ;;  %v9738_v51 = vld [vmem:[%s12390_s28 + $0x1] ss:$0 sm:$0xff]  ;;  %s12417_s28 = sld [smem:[#allocation37_spill]] }
0x1968   : > { %v5351_v63 = vcombine.low %v5323_v55, %v5330_v56  ;;  %v9761_v0 = vcombine.high %v5323_v55, %v5330_v56  ;;  %v5367_v1 = vcombine.low %v5339_v57, %v5346_v60  ;;  %v9762_v3 = vcombine.high %v5339_v57, %v5346_v60 }
0x196a   : > { %v5358_v6 = vrot.slane %v5351_v63, %v11455_v32  ;;  %v5366_v7 = vrot.slane %v9761_v0, %v11455_v32  ;;  %v5374_v8 = vrot.slane %v5367_v1, %v11455_v32  ;;  %v5382_v9 = vrot.slane %v9762_v3, %v11455_v32 }
0x196c   : > { %v5384_v10 = vcombine.high %v5358_v6, %v5366_v7  ;;  %v5400_v12 = vcombine.high %v5374_v8, %v5382_v9  ;;  %v5383_v13 = vcombine.low %v5358_v6, %v5366_v7  ;;  %v5399_v4 = vcombine.low %v5374_v8, %v5382_v9  ;;  %v10824_v6 = vld [vmem:[%s12407_s14] sm:$0xff]   ;;  %v10825_v7 = vld [vmem:[%s12407_s14 + $0x8] sm:$0xff]  }
0x196d   : > { %10429 = vmatpush3.bf16.msra.mxu0 %v10824_v6  ;;  %v10826_v8 = vld [vmem:[%s12408_s19] sm:$0xff]   ;;  %v10828_v9 = vld [vmem:[%s12408_s19 + $0x8] sm:$0xff]  }
0x196e   : > { %v5398_v5 = vrot.slane %v5384_v10, %v11458_v38  ;;  %v5414_v14 = vrot.slane %v5400_v12, %v11458_v38  ;;  %v5391_v15 = vrot.slane %v5383_v13, %v11458_v38  ;;  %v5407_v16 = vrot.slane %v5399_v4, %v11458_v38  ;;  %10430 = vmatprep.subr.bf16.mxu0 %v11044_v2 }
0x1970   : > { %v5417_v17 = vcombine.low %v5398_v5, %v5414_v14  ;;  %v5416_v18 = vcombine.high %v5391_v15, %v5407_v16  ;;  %v5415_v19 = vcombine.low %v5391_v15, %v5407_v16  ;;  %v5418_v20 = vcombine.high %v5398_v5, %v5414_v14  ;;  %v9767_v14 = vld [vmem:[%s12409_s1] ss:$0 sm:$0xff] }
0x1971   : > { %10431 = vmatpush3.bf16.msra.mxu0 %v10825_v7 }
0x1972   : > { %5424 = vrot.lane.b32.xlu0 %v5417_v17, %s12405_s11  ;;  %5420 = vrot.lane.b32.xlu1 %v5416_v18, %s12391_s16  ;;  %v9768_v18 = vld [vmem:[%s12410_s20] ss:$0 sm:$0xff] }
0x1973   : > { %10444 = vmatprep.subr.bf16.mxu0 %v11044_v2 }
0x1976   : > { %5428 = vrot.lane.b32.xlu1 %v5418_v20, %s12392_s18 }
0x199a   : > { %4325 = vadd.xlane.f32.xlu1 %v4324_v24 }
0x19e4   : > { %v5421_v26 = vpop.permute.xlu1 %5420  ;;  %v5425_v27 = vpop.permute.xlu0 %5424 }
0x19e5   : > { %v5431_v28 = vsel %vm1946_vm4, %v5415_v19, %v5421_v26  ;;  %v9739_v26 = vld [vmem:[%s12412_s23] ss:$0 sm:$0xff]  ;;  %s12415_s23 = sld [smem:[#allocation32_spill]] }
0x19e6   : > { %v5432_v31 = vsel %vm2719_vm5, %v5431_v28, %v5425_v27  ;;  %v9740_v28 = vld [vmem:[%s12413_s24] ss:$0 sm:$0xff]  ;;  %s12416_s24 = sld [smem:[#allocation36_spill]] }
0x19e8   : > { %v5429_v29 = vpop.permute.xlu1 %5428 }
0x19e9   : > { %v5433_v33 = vsel %vm2721_vm6, %v5432_v31, %v5429_v29 }
0x19ea   : > { %v5439_v34 = vpack.c.bf16 %v5433_v33, %v5433_v33 }
0x19ec   : > { %10425 = vmatmul.mubr.msk.bf16.vlgmr.msra.gmra.mrb[76].mxu1 %vm1682_vm2, %v5439_v34 }
0x19ed   : > { %10440 = vmatprep.mubr.msk.bf16.mxu1 %vm11045_vm0, %v11044_v2  ;;  %10437 = vmatpush3.bf16.msra.mxu1 %v10826_v8 }
0x19ee   : > { %10438 = vmatprep.subr.bf16.mxu1 %v11044_v2 }
0x19f1   : > { %10439 = vmatpush3.bf16.msra.mxu1 %v10828_v9 }
0x19f2   : > { %10452 = vmatprep.subr.bf16.mxu1 %v11044_v2 }
0x1a27   : > { %v4326_v58 = vpop.xlane.xlu1 %4325 }
0x1a28   : > { %v4327_v48 = vmul.f32 0.03125, %v4326_v58 }
0x1a2a   : > { %v4328_v35 = vsub.f32 %v4319_v23, %v4327_v48  ;;  %v10829_v23 = vld [vmem:[%s12411_s21 + $0x8] sm:$0xff]  }
0x1a2c   : > { %v4329_v36 = vmul.f32 %v4328_v35, %v4328_v35 }
0x1a2e   : > { %v4330_v11 = vsel %vm1682_vm2, %v4329_v36, 0.0  ;;  %v9773_v36 = vld [vmem:[%s12414_s25] ss:$0 sm:$0xff] }
0x1a2f   : > { %4331 = vadd.xlane.f32.xlu0 %v4330_v11 }
0x1abc   : > { %v4332_v37 = vpop.xlane.xlu0 %4331 }
0x1abd   : > { %v4333_v39 = vmul.f32 0.03125, %v4332_v37 }
0x1abf   : > { %v4334_v41 = vadd.f32 1e-05, %v4333_v39  ;;  %v5495_v42 = vpop.f32.mrb[76].mxu1 }
0x1ac0   : > { %v5496_v43 = vadd.f32 %v9763_v40, %v5495_v42  ;;  %v10426_v44 = vpop.f32.mrb[77].mxu1 }
0x1ac1   : > { %10916 = vrsqrt.f32 %v4334_v41  ;;  %v5498_v45 = vpop.f32.mrb[78].mxu1 }
0x1ac2   : > { %v5501_v46 = vadd.f32 %v5496_v43, %v11662_v62  ;;  %v10427_v25 = vpop.f32.mrb[79].mxu1 }
0x1ac3   : > { %v9769_v25 = vld [vmem:[%s12415_s23] ss:$0 sm:$0xff] }
0x1ac4   : > { %v5504_v30 = vsel %vm1682_vm2, %v5501_v46, 0.0 }
0x1ac5   : > { %5505 = vadd.xlane.f32.xlu0 %v5504_v30 }
0x1acb   : > { %v10917_v47 = vpop.eup %10916 }
0x1acc   : > { %v4336_v50 = vmul.f32 %v10917_v47, %v4328_v35 }
0x1ace   : > { %v4343_v52 = vmul.f32 %v9737_v49, %v4336_v50 }
0x1ad0   : > { %v4350_v53 = vadd.f32 %v9738_v51, %v4343_v52 }
0x1ad2   : > { %v4353_v54 = vsel %vm1682_vm2, %v4350_v53, 0.0 }
0x1ad3   : > { %4354 = vadd.xlane.f32.xlu1 %v4353_v54 }
0x1b52   : > { %v5506_v55 = vpop.xlane.xlu0 %5505 }
0x1b53   : > { %v5507_v56 = vmul.f32 0.03125, %v5506_v55 }
0x1b55   : > { %v5508_v57 = vsub.f32 %v5501_v46, %v5507_v56 }
0x1b57   : > { %v5509_v62 = vmul.f32 %v5508_v57, %v5508_v57 }
0x1b59   : > { %v5510_v60 = vsel %vm1682_vm2, %v5509_v62, 0.0 }
0x1b5a   : > { %5511 = vadd.xlane.f32.xlu0 %v5510_v60 }
0x1b60   : > { %v4355_v61 = vpop.xlane.xlu1 %4354 }
0x1b61   : > { %v4356_v63 = vmul.f32 0.03125, %v4355_v61 }
0x1b63   : > { %v4357_v0 = vsub.f32 %v4350_v53, %v4356_v63 }
0x1b65   : > { %v4358_v1 = vmul.f32 %v4357_v0, %v4357_v0 }
0x1b67   : > { %v4359_v3 = vsel %vm1682_vm2, %v4358_v1, 0.0 }
0x1b68   : > { %4360 = vadd.xlane.f32.xlu1 %v4359_v3 }
0x1be7   : > { %v5512_v10 = vpop.xlane.xlu0 %5511 }
0x1be8   : > { %v5513_v12 = vmul.f32 0.03125, %v5512_v10 }
0x1bea   : > { %v5514_v13 = vadd.f32 1e-05, %v5513_v12 }
0x1bec   : > { %10918 = vrsqrt.f32 %v5514_v13 }
0x1bf5   : > { %v4361_v4 = vpop.xlane.xlu1 %4360 }
0x1bf6   : > { %v10919_v5 = vpop.eup %10918  ;;  %v4362_v15 = vmul.f32 0.03125, %v4361_v4 }
0x1bf7   : > { %v5516_v16 = vmul.f32 %v10919_v5, %v5508_v57 }
0x1bf8   : > { %v4363_v17 = vadd.f32 1e-05, %v4362_v15 }
0x1bf9   : > { %v5523_v19 = vmul.f32 %v9767_v14, %v5516_v16 }
0x1bfa   : > { %10920 = vrsqrt.f32 %v4363_v17 }
0x1bfb   : > { %v11823_v20 = vadd.f32 %v9768_v18, %v5523_v19 }
0x1bfd   : > { %v5536_v22 = vpack.c.bf16 %v11823_v20, %v11823_v20 }
0x1bff   : > { %10433 = vmatmul.mubr.msk.bf16.vlgmr.msra.gmra.mrb[80].mxu0 %vm1682_vm2, %v5536_v22 }
0x1c00   : > { %10445 = vmatpush3.bf16.msra.mxu0 %v10827_v21  ;;  %10448 = vmatprep.mubr.msk.bf16.mxu0 %vm11045_vm0, %v11044_v2 }
0x1c01   : > { %10446 = vmatprep.subr.bf16.mxu0 %v11044_v2 }
0x1c04   : > { %v10921_v24 = vpop.eup %10920  ;;  %10447 = vmatpush3.bf16.msra.mxu0 %v10829_v23 }
0x1c05   : > { %v4365_v27 = vmul.f32 %v10921_v24, %v4357_v0  ;;  %10458 = vmatprep.subr.bf16.mxu0 %v11044_v2 }
0x1c07   : > { %v4372_v29 = vmul.f32 %v9739_v26, %v4365_v27 }
0x1c09   : > { %v4379_v31 = vadd.f32 %v9740_v28, %v4372_v29  ;;  %v9777_v29 = vld [vmem:[%s12416_s24] ss:$0 sm:$0xff] }
0x1c0b   : > { %v11836_v33 = vpack.c.bf16 %v4379_v31, %v4379_v31 }
0x1c0d   : > { %10441 = vmatmul.mubr.msk.bf16.vlgmr.msra.gmra.mrb[80].mxu1 %vm1682_vm2, %v11836_v33  ;;  %10449 = vmatmul.mubr.msk.bf16.vlgmr.msra.gmra.mrb[84].mxu0 %vm1682_vm2, %v11836_v33 }
0x1c0e   : > { %10454 = vmatprep.mubr.msk.bf16.mxu1 %vm11045_vm0, %v11044_v2  ;;  %10460 = vmatprep.mubr.msk.bf16.mxu0 %vm11045_vm0, %v11044_v2 }
0x1cd2   : > { %v5592_v34 = vpop.f32.mrb[80].mxu0 }
0x1cd3   : > { %v10434_v58 = vpop.f32.mrb[81].mxu0  ;;  %v5593_v30 = vadd.f32 %v9769_v25, %v5592_v34 }
0x1cd4   : > { %v5595_v48 = vpop.f32.mrb[82].mxu0 }
0x1cd5   : > { %v10435_v35 = vpop.f32.mrb[83].mxu0  ;;  %v5728_v47 = vpack.c.bf16 %v5593_v30, %v5593_v30 }
0x1ce0   : > { %v5659_v11 = vpop.f32.mrb[80].mxu1  ;;  %v11847_v37 = vpop.f32.mrb[84].mxu0 }
0x1ce1   : > { %v5660_v39 = vadd.f32 %v9773_v36, %v5659_v11  ;;  %v10442_v40 = vpop.f32.mrb[81].mxu1  ;;  %v10450_v41 = vpop.f32.mrb[85].mxu0  ;;  %v5723_v31 = vadd.f32 %v9777_v29, %v11847_v37 }
0x1ce2   : > { %v5662_v42 = vpop.f32.mrb[82].mxu1  ;;  %v5725_v43 = vpop.f32.mrb[86].mxu0 }
0x1ce3   : > { %v5736_v44 = vpack.c.bf16 %v5660_v39, %v5660_v39  ;;  %v10443_v45 = vpop.f32.mrb[83].mxu1  ;;  %v10451_v46 = vpop.f32.mrb[87].mxu0  ;;  %v5747_v34 = vpack.c.bf16 %v5723_v31, %v5723_v31 }
0x1ce5   : > { %5741 = vrot.lane.b32.xlu0 %v5736_v44, %s12399_s2  ;;  %5738 = vrot.lane.b32.xlu1 %v5736_v44, %s12400_s4 }
0x1ce9   : > { %5744 = vrot.lane.b32.xlu1 %v5736_v44, %s12401_s6 }
0x1ced   : > { %5730 = vrot.lane.b32.xlu1 %v5728_v47, %s12400_s4 }
0x1cf1   : > { %5734 = vrot.lane.b32.xlu1 %v5728_v47, %s12401_s6 }
0x1d03   : > { %5758 = vxpose.xlu0.c.b16.start.end [1/1] (short) (narrow) %v5736_v44, 16 }
0x1d0c   : > { %5732 = vrot.lane.b32.xlu0 %v5728_v47, %s12399_s2 }
0x1d57   : > { %v5742_v49 = vpop.permute.xlu0 %5741  ;;  %v5739_v50 = vpop.permute.xlu1 %5738 }
0x1d58   : > { %5790 = vxpose.xlu0.c.b16.start.end [1/1] (short) (narrow) %v5742_v49, 16  ;;  %5774 = vxpose.xlu1.c.b16.start.end [1/1] (short) (narrow) %v5739_v50, 16 }
0x1d5b   : > { %v5745_v51 = vpop.permute.xlu1 %5744 }
0x1d5c   : > { %5806 = vxpose.xlu0.c.b16.start.end [1/1] (short) (narrow) %v5745_v51, 16 }
0x1d5f   : > { %v5731_v54 = vpop.permute.xlu1 %5730 }
0x1d63   : > { %v5735_v55 = vpop.permute.xlu1 %5734 }
0x1d69   : > { %v5766_v52 = vpop.trf.xlu0 }
0x1d6a   : > { %v5826_v53 = vsel %vm1950_vm3, %v5766_v52, 0 }
0x1d6b   : > { %10453 = vmatpush3.bf16.msra.mxu1 %v5826_v53 }
0x1d6c   : > { %10464 = vmatprep.subr.bf16.mxu1 %v11044_v2 }
0x1d6e   : > { %10455 = vmatmul.mubr.msk.bf16.vlgmr.msra.gmra.mrb[84].mxu1 %vm1946_vm4, %v5728_v47 }
0x1d6f   : > { %10466 = vmatprep.mubr.msk.bf16.mxu1 %vm11045_vm0, %v11044_v2 }
0x1d7e   : > { %v5733_v56 = vpop.permute.xlu0 %5732 }
0x1dbe   : > { %v5798_v57 = vpop.trf.xlu0  ;;  %v5782_v62 = vpop.trf.xlu1 }
0x1dbf   : > { %v5918_v60 = vsel %vm1950_vm3, %v5798_v57, 0  ;;  %v5872_v61 = vsel %vm1950_vm3, %v5782_v62, 0 }
0x1dc0   : > { %10459 = vmatpush3.bf16.msra.mxu0 %v5872_v61  ;;  %10465 = vmatpush3.bf16.msra.mxu1 %v5918_v60 }
0x1dc1   : > { %10470 = vmatprep.subr.bf16.mxu0 %v11044_v2  ;;  %10476 = vmatprep.subr.bf16.mxu1 %v11044_v2 }
0x1dc2   : > { %v5814_v63 = vpop.trf.xlu0 }
0x1dc3   : > { %10461 = vmatmul.mubr.msk.bf16.vlgmr.msra.gmra.mrb[88].mxu0 %vm1946_vm4, %v5731_v54  ;;  %10467 = vmatmul.mubr.msk.bf16.vlgmr.msra.gmra.mrb[88].mxu1 %vm1946_vm4, %v5733_v56  ;;  %v5964_v0 = vsel %vm1950_vm3, %v5814_v63, 0 }
0x1dc4   : > { %10471 = vmatpush3.bf16.msra.mxu0 %v5964_v0  ;;  %10472 = vmatprep.mubr.msk.bf16.mxu0 %vm11045_vm0, %v11044_v2 }
0x1dc5   : > { %10478 = vmatprep.mubr.msk.bf16.mxu1 %vm11045_vm0, %v11044_v2  ;;  %10482 = vmatprep.subr.bf16.mxu0 %v11044_v2 }
0x1dcb   : > { %10473 = vmatmul.mubr.msk.bf16.vlgmr.msra.gmra.mrb[92].mxu0 %vm1946_vm4, %v5735_v55 }
0x1dcc   : > { %10484 = vmatprep.mubr.msk.bf16.mxu0 %vm11045_vm0, %v11044_v2 }
0x1e41   : > { %v5862_v1 = vpop.f32.mrb[84].mxu1 }
0x1e42   : > { %v6006_v3 = vmul.f32 0.35355338, %v5862_v1  ;;  %v10456_v6 = vpop.f32.mrb[85].mxu1 }
0x1e43   : > { %v5865_v7 = vpop.f32.mrb[86].mxu1 }
0x1e44   : > { %v10457_v8 = vpop.f32.mrb[87].mxu1  ;;  %v6010_v9 = vsel %vm1946_vm4, %v6006_v3, -inf }
0x1e45   : > { %6011 = vmax.xlane.f32.xlu1 %v6010_v9 }
0x1e96   : > { %v5908_v10 = vpop.f32.mrb[88].mxu0  ;;  %v5954_v12 = vpop.f32.mrb[88].mxu1 }
0x1e97   : > { %v6007_v13 = vmul.f32 0.35355338, %v5908_v10  ;;  %v6008_v4 = vmul.f32 0.35355338, %v5954_v12  ;;  %v10462_v5 = vpop.f32.mrb[89].mxu0  ;;  %v10468_v14 = vpop.f32.mrb[89].mxu1 }
0x1e98   : > { %v5911_v15 = vpop.f32.mrb[90].mxu0  ;;  %v5957_v16 = vpop.f32.mrb[90].mxu1 }
0x1e99   : > { %v10463_v17 = vpop.f32.mrb[91].mxu0  ;;  %v10469_v18 = vpop.f32.mrb[91].mxu1  ;;  %v6016_v19 = vsel %vm1946_vm4, %v6008_v4, -inf  ;;  %v6013_v21 = vsel %vm1946_vm4, %v6007_v13, -inf }
0x1e9a   : > { %6017 = vmax.xlane.f32.xlu1 %v6016_v19  ;;  %6014 = vmax.xlane.f32.xlu0 %v6013_v21 }
0x1e9e   : > { %v6000_v22 = vpop.f32.mrb[92].mxu0 }
0x1e9f   : > { %v6009_v23 = vmul.f32 0.35355338, %v6000_v22  ;;  %v10474_v24 = vpop.f32.mrb[93].mxu0 }
0x1ea0   : > { %v6003_v26 = vpop.f32.mrb[94].mxu0 }
0x1ea1   : > { %v10475_v27 = vpop.f32.mrb[95].mxu0  ;;  %v6019_v28 = vsel %vm1946_vm4, %v6009_v23, -inf }
0x1ea2   : > { %6020 = vmax.xlane.f32.xlu0 %v6019_v28 }
0x1eab   : > { %5749 = vrot.lane.b32.xlu1 %v5747_v34, %s12400_s4 }
0x1eaf   : > { %5755 = vrot.lane.b32.xlu1 %v5747_v34, %s12401_s6 }
0x1ed2   : > { %v6012_v58 = vpop.xlane.xlu1 %6011 }
0x1ed3   : > { %v6022_v48 = vsub.f32 %v6006_v3, %v6012_v58 }
0x1ed5   : > { %v6026_v35 = vmul.f32 1.442695, %v6022_v48 }
0x1ed7   : > { %10922 = vpow2.f32 %v6026_v35 }
0x1ee1   : > { %v10923_v36 = vpop.eup %10922 }
0x1ee2   : > { %v6034_v11 = vsel %vm1946_vm4, %v10923_v36, 0.0 }
0x1ee3   : > { %6035 = vadd.xlane.f32.xlu0 %v6034_v11 }
0x1f27   : > { %v6018_v39 = vpop.xlane.xlu1 %6017  ;;  %v6015_v40 = vpop.xlane.xlu0 %6014 }
0x1f28   : > { %v6024_v41 = vsub.f32 %v6008_v4, %v6018_v39  ;;  %v6023_v42 = vsub.f32 %v6007_v13, %v6015_v40 }
0x1f2a   : > { %v6030_v43 = vmul.f32 1.442695, %v6024_v41  ;;  %v6028_v44 = vmul.f32 1.442695, %v6023_v42 }
0x1f2b   : > { %v5750_v57 = vpop.permute.xlu1 %5749 }
0x1f2c   : > { %10924 = vpow2.f32 %v6030_v43 }
0x1f2d   : > { %10926 = vpow2.f32 %v6028_v44 }
0x1f2f   : > { %v6021_v30 = vpop.xlane.xlu0 %6020  ;;  %v5756_v62 = vpop.permute.xlu1 %5755 }
0x1f30   : > { %v6025_v47 = vsub.f32 %v6009_v23, %v6021_v30 }
0x1f32   : > { %v6032_v49 = vmul.f32 1.442695, %v6025_v47 }
0x1f34   : > { %10928 = vpow2.f32 %v6032_v49  ;;  %v10830_v49 = vld [vmem:[%s12417_s28] sm:$0xff]  }
0x1f36   : > { %v10925_v37 = vpop.eup %10924 }
0x1f37   : > { %v10927_v45 = vpop.eup %10926  ;;  %v6040_v46 = vsel %vm1946_vm4, %v10925_v37, 0.0 }
0x1f38   : > { %6041 = vadd.xlane.f32.xlu1 %v6040_v46  ;;  %v6037_v25 = vsel %vm1946_vm4, %v10927_v45, 0.0 }
0x1f39   : > { %6038 = vadd.xlane.f32.xlu0 %v6037_v25 }
0x1f3e   : > { %v10929_v50 = vpop.eup %10928 }
0x1f3f   : > { %v6043_v51 = vsel %vm1946_vm4, %v10929_v50, 0.0 }
0x1f4f   : > { %5752 = vrot.lane.b32.xlu0 %v5747_v34, %s12399_s2 }
0x1f65   : > { %6058 = vxpose.xlu1.c.b16.start.end [1/1] (short) (narrow) %v5747_v34, 16 }
0x1f6e   : > { %6044 = vadd.xlane.f32.xlu0 %v6043_v51 }
0x1f70   : > { %v6036_v52 = vpop.xlane.xlu0 %6035 }
0x1f71   : > { %10930 = vrcp.f32 %v6036_v52 }
0x1f7b   : > { %v10931_v53 = vpop.eup %10930 }
0x1f7c   : > { %v6050_v54 = vmul.f32 %v10931_v53, %v10923_v36 }
0x1f7e   : > { %v6054_v55 = vpack.c.bf16 %v6050_v54, %v6050_v54 }
0x1f80   : > { %v6126_v56 = vsel %vm1946_vm4, %v6054_v55, 0 }
0x1f81   : > { %10477 = vmatpush3.bf16.xpose.msra.mxu1 %v6126_v56 }
0x1f82   : > { %10488 = vmatprep.subr.bf16.mxu1 %v11044_v2 }
0x1f9b   : > { %6074 = vxpose.xlu0.c.b16.start.end [1/1] (short) (narrow) %v5750_v57, 16 }
0x1fc5   : > { %v6042_v60 = vpop.xlane.xlu1 %6041 }
0x1fc6   : > { %10932 = vrcp.f32 %v6042_v60  ;;  %v6039_v61 = vpop.xlane.xlu0 %6038 }
0x1fc7   : > { %10934 = vrcp.f32 %v6039_v61 }
0x1fca   : > { %v5753_v63 = vpop.permute.xlu0 %5752 }
0x1fcb   : > { %6090 = vxpose.xlu1.c.b16.start.end [1/1] (short) (narrow) %v5753_v63, 16  ;;  %v6066_v0 = vpop.trf.xlu1 }
0x1fcc   : > { %10479 = vmatmul.mubr.msk.bf16.vlgmr.msra.gmra.mrb[92].mxu1 %vm1946_vm4, %v6066_v0 }
0x1fcd   : > { %10490 = vmatprep.mubr.msk.bf16.mxu1 %vm11045_vm0, %v11044_v2 }
0x1fcf   : > { %6106 = vxpose.xlu1.c.b16.start.end [1/1] (short) (narrow) %v5756_v62, 16  ;;  %v10831_v62 = vld [vmem:[%s12417_s28 + $0x8] sm:$0xff]  }
0x1fd0   : > { %v10933_v1 = vpop.eup %10932 }
0x1fd1   : > { %v10935_v3 = vpop.eup %10934  ;;  %v6052_v6 = vmul.f32 %v10933_v1, %v10925_v37 }
0x1fd2   : > { %v6051_v7 = vmul.f32 %v10935_v3, %v10927_v45 }
0x1fd3   : > { %v6056_v8 = vpack.c.bf16 %v6052_v6, %v6052_v6 }
0x1fd4   : > { %v6055_v9 = vpack.c.bf16 %v6051_v7, %v6051_v7 }
0x1fd5   : > { %v6218_v10 = vsel %vm1946_vm4, %v6056_v8, 0 }
0x1fd6   : > { %v6172_v12 = vsel %vm1946_vm4, %v6055_v9, 0  ;;  %10489 = vmatpush3.bf16.xpose.msra.mxu1 %v6218_v10 }
0x1fd7   : > { %10483 = vmatpush3.bf16.xpose.msra.mxu0 %v6172_v12  ;;  %10500 = vmatprep.subr.bf16.mxu1 %v11044_v2 }
0x1fd8   : > { %10494 = vmatprep.subr.bf16.mxu0 %v11044_v2 }
0x1ffb   : > { %v6045_v13 = vpop.xlane.xlu0 %6044 }
0x1ffc   : > { %10936 = vrcp.f32 %v6045_v13 }
0x2001   : > { %v6082_v4 = vpop.trf.xlu0 }
0x2002   : > { %10485 = vmatmul.mubr.msk.bf16.vlgmr.msra.gmra.mrb[96].mxu0 %vm1946_vm4, %v6082_v4 }
0x2003   : > { %10496 = vmatprep.mubr.msk.bf16.mxu0 %vm11045_vm0, %v11044_v2 }
0x2006   : > { %v10937_v5 = vpop.eup %10936 }
0x2007   : > { %v6053_v14 = vmul.f32 %v10937_v5, %v10929_v50 }
0x2009   : > { %v6057_v15 = vpack.c.bf16 %v6053_v14, %v6053_v14 }
0x200b   : > { %v6264_v16 = vsel %vm1946_vm4, %v6057_v15, 0 }
0x200c   : > { %10495 = vmatpush3.bf16.xpose.msra.mxu0 %v6264_v16 }
0x200d   : > { %10508 = vmatprep.subr.bf16.mxu0 %v11044_v2 }
0x2031   : > { %v6098_v17 = vpop.trf.xlu1 }
0x2032   : > { %10491 = vmatmul.mubr.msk.bf16.vlgmr.msra.gmra.mrb[96].mxu1 %vm1946_vm4, %v6098_v17 }
0x2033   : > { %10504 = vmatprep.mubr.msk.bf16.mxu1 %vm11045_vm0, %v11044_v2  ;;  %10501 = vmatpush3.bf16.msra.mxu1 %v10830_v49 }
0x2034   : > { %10502 = vmatprep.subr.bf16.mxu1 %v11044_v2 }
0x2035   : > { %v6114_v18 = vpop.trf.xlu1 }
0x2036   : > { %10497 = vmatmul.mubr.msk.bf16.vlgmr.msra.gmra.mrb[100].mxu0 %vm1946_vm4, %v6114_v18 }
0x2037   : > { %10512 = vmatprep.mubr.msk.bf16.mxu0 %vm11045_vm0, %v11044_v2  ;;  %10503 = vmatpush3.bf16.msra.mxu1 %v10831_v62 }
0x2038   : > { %10516 = vmatprep.subr.bf16.mxu1 %v11044_v2 }
0x209f   : > { %v6162_v19 = vpop.f32.mrb[92].mxu1 }
0x20a0   : > { %v10480_v21 = vpop.f32.mrb[93].mxu1  ;;  %6306 = vxpose.xlu0.b32.start.end [1/1] (short) (narrow) %v6162_v19, 8 }
0x20a1   : > { %v6165_v22 = vpop.f32.mrb[94].mxu1 }
0x20a2   : > { %v10481_v23 = vpop.f32.mrb[95].mxu1 }
0x20d5   : > { %v6208_v24 = vpop.f32.mrb[96].mxu0 }
0x20d6   : > { %v10486_v26 = vpop.f32.mrb[97].mxu0  ;;  %6338 = vxpose.xlu1.b32.start.end [1/1] (short) (narrow) %v6208_v24, 8 }
0x20d7   : > { %v6211_v27 = vpop.f32.mrb[98].mxu0 }
0x20d8   : > { %v10487_v28 = vpop.f32.mrb[99].mxu0 }
0x20d9   : > { %v9791_v28 = vld [vmem:[%s12418_s29] ss:$0 sm:$0xff] }
0x2105   : > { %v6254_v29 = vpop.f32.mrb[96].mxu1 }
0x2106   : > { %6370 = vxpose.xlu0.b32.start.end [1/1] (short) (narrow) %v6254_v29, 8  ;;  %v10492_v31 = vpop.f32.mrb[97].mxu1 }
0x2107   : > { %v6257_v34 = vpop.f32.mrb[98].mxu1 }
0x2108   : > { %v10493_v58 = vpop.f32.mrb[99].mxu1 }
0x2109   : > { %v6300_v48 = vpop.f32.mrb[100].mxu0 }
0x210a   : > { %6402 = vxpose.xlu0.b32.start.end [1/1] (short) (narrow) %v6300_v48, 8  ;;  %v10498_v35 = vpop.f32.mrb[101].mxu0 }
0x210b   : > { %v6303_v36 = vpop.f32.mrb[102].mxu0 }
0x210c   : > { %v10499_v11 = vpop.f32.mrb[103].mxu0 }
0x2120   : > { %v6322_v39 = vpop.trf.xlu0 }
0x2156   : > { %v6354_v41 = vpop.trf.xlu1 }
0x2186   : > { %v6386_v40 = vpop.trf.xlu0 }
0x2187   : > { %v6434_v42 = vcombine.low %v6322_v39, %v6386_v40  ;;  %v6435_v43 = vcombine.high %v6322_v39, %v6386_v40 }
0x2189   : > { %v6442_v46 = vrot.slane %v6434_v42, %v11455_v32  ;;  %v6449_v25 = vrot.slane %v6435_v43, %v11455_v32  ;;  %v10832_v43 = vld [vmem:[%s12419_s30] sm:$0xff]  }
0x218a   : > { %v6418_v44 = vpop.trf.xlu0  ;;  %10509 = vmatpush3.bf16.msra.mxu0 %v10832_v43 }
0x218b   : > { %v6450_v37 = vcombine.low %v6354_v41, %v6418_v44  ;;  %v6451_v45 = vcombine.high %v6354_v41, %v6418_v44  ;;  %10510 = vmatprep.subr.bf16.mxu0 %v11044_v2  ;;  %v10833_v44 = vld [vmem:[%s12419_s30 + $0x8] sm:$0xff]  }
0x218d   : > { %v6458_v30 = vrot.slane %v6450_v37, %v11455_v32  ;;  %v6465_v47 = vrot.slane %v6451_v45, %v11455_v32  ;;  %v10835_v37 = vld [vmem:[%s12421_s12 + $0x8] sm:$0xff]  }
0x218e   : > { %10511 = vmatpush3.bf16.msra.mxu0 %v10833_v44 }
0x218f   : > { %v6466_v50 = vcombine.low %v6442_v46, %v6458_v30  ;;  %v6467_v51 = vcombine.high %v6442_v46, %v6458_v30  ;;  %v6482_v52 = vcombine.low %v6449_v25, %v6465_v47  ;;  %v6483_v53 = vcombine.high %v6449_v25, %v6465_v47  ;;  %10528 = vmatprep.subr.bf16.mxu0 %v11044_v2  ;;  %v9795_v47 = vld [vmem:[%s12422_s0] ss:$0 sm:$0xff] }
0x2191   : > { %v6474_v54 = vrot.slane %v6466_v50, %v11458_v38  ;;  %v6481_v55 = vrot.slane %v6467_v51, %v11458_v38  ;;  %v6490_v56 = vrot.slane %v6482_v52, %v11458_v38  ;;  %v6497_v57 = vrot.slane %v6483_v53, %v11458_v38  ;;  %v9796_v50 = vld [vmem:[%s12423_s27] ss:$0 sm:$0xff] }
0x2193   : > { %v6502_v60 = vcombine.low %v6474_v54, %v6481_v55  ;;  %v9789_v61 = vcombine.high %v6474_v54, %v6481_v55  ;;  %v6518_v63 = vcombine.low %v6490_v56, %v6497_v57  ;;  %v9790_v0 = vcombine.high %v6490_v56, %v6497_v57  ;;  %v10836_v54 = vld [vmem:[%s12421_s12 + $0x10] sm:$0xff]   ;;  %v10837_v55 = vld [vmem:[%s12421_s12 + $0x18] sm:$0xff]   ;;  %v9797_v56 = vld [vmem:[%s12424_s17] ss:$0 sm:$0xff]  ;;  %s12428_s17 = sld [smem:[#allocation48_spill]] }
0x2195   : > { %v6509_v1 = vrot.slane %v6502_v60, %v11455_v32  ;;  %v6517_v3 = vrot.slane %v9789_v61, %v11455_v32  ;;  %v6525_v6 = vrot.slane %v6518_v63, %v11455_v32  ;;  %v6533_v7 = vrot.slane %v9790_v0, %v11455_v32 }
0x2197   : > { %v6535_v8 = vcombine.high %v6509_v1, %v6517_v3  ;;  %v6551_v9 = vcombine.high %v6525_v6, %v6533_v7  ;;  %v6534_v10 = vcombine.low %v6509_v1, %v6517_v3  ;;  %v6550_v12 = vcombine.low %v6525_v6, %v6533_v7 }
0x2199   : > { %v6549_v13 = vrot.slane %v6535_v8, %v11458_v38  ;;  %v6565_v4 = vrot.slane %v6551_v9, %v11458_v38  ;;  %v6542_v5 = vrot.slane %v6534_v10, %v11458_v38  ;;  %v6558_v14 = vrot.slane %v6550_v12, %v11458_v38 }
0x219b   : > { %v6568_v15 = vcombine.low %v6549_v13, %v6565_v4  ;;  %v6567_v16 = vcombine.high %v6542_v5, %v6558_v14  ;;  %v6566_v17 = vcombine.low %v6542_v5, %v6558_v14  ;;  %v6569_v18 = vcombine.high %v6549_v13, %v6565_v4 }
0x219d   : > { %6575 = vrot.lane.b32.xlu0 %v6568_v15, %s12405_s11  ;;  %6571 = vrot.lane.b32.xlu1 %v6567_v16, %s12391_s16 }
0x21a1   : > { %6579 = vrot.lane.b32.xlu1 %v6569_v18, %s12392_s18  ;;  %v10839_v18 = vld [vmem:[%s12398_s26 + $0x10] sm:$0xff]  }
0x220f   : > { %v6572_v19 = vpop.permute.xlu1 %6571  ;;  %v6576_v21 = vpop.permute.xlu0 %6575 }
0x2210   : > { %v6582_v22 = vsel %vm1946_vm4, %v6566_v17, %v6572_v19  ;;  %v10838_v17 = vld [vmem:[%s12394_s22 + $0x10] sm:$0xff]   ;;  %v10840_v19 = vld [vmem:[%s12394_s22 + $0x18] sm:$0xff]  }
0x2211   : > { %v6583_v24 = vsel %vm2719_vm5, %v6582_v22, %v6576_v21  ;;  %v10841_v21 = vld [vmem:[%s12398_s26 + $0x18] sm:$0xff]  }
0x2213   : > { %v6580_v23 = vpop.permute.xlu1 %6579 }
0x2214   : > { %v6584_v26 = vsel %vm2721_vm6, %v6583_v24, %v6580_v23 }
0x2215   : > { %v6590_v27 = vpack.c.bf16 %v6584_v26, %v6584_v26 }
0x2217   : > { %10505 = vmatmul.mubr.msk.bf16.vlgmr.msra.gmra.mrb[100].mxu1 %vm1682_vm2, %v6590_v27 }
0x2218   : > { %10524 = vmatprep.mubr.msk.bf16.mxu1 %vm11045_vm0, %v11044_v2 }
0x22ea   : > { %v6646_v29 = vpop.f32.mrb[100].mxu1 }
0x22eb   : > { %v6647_v31 = vadd.f32 %v9791_v28, %v6646_v29  ;;  %v10506_v34 = vpop.f32.mrb[101].mxu1  ;;  %v9808_v29 = vld [vmem:[%s12428_s17] ss:$0 sm:$0xff] }
0x22ec   : > { %v6649_v58 = vpop.f32.mrb[102].mxu1 }
0x22ed   : > { %v6652_v48 = vadd.f32 %v6647_v31, %v11823_v20  ;;  %v10507_v35 = vpop.f32.mrb[103].mxu1  ;;  %v10834_v20 = vld [vmem:[%s12420_s7] sm:$0xff]   ;;  %s12425_s7 = sld [smem:[#allocation42_spill]]  ;;  %v10842_v58 = vld [vmem:[%s12395_s5 + $0x10] sm:$0xff]  }
0x22ee   : > { %10517 = vmatpush3.bf16.msra.mxu1 %v10834_v20  ;;  %v10843_v35 = vld [vmem:[%s12395_s5 + $0x18] sm:$0xff]   ;;  %v9823_v20 = vld [vmem:[%s12396_s3 + $0x1] ss:$0 sm:$0xff] }
0x22ef   : > { %v6655_v36 = vsel %vm1682_vm2, %v6652_v48, 0.0  ;;  %10518 = vmatprep.subr.bf16.mxu1 %v11044_v2 }
0x22f0   : > { %6656 = vadd.xlane.f32.xlu1 %v6655_v36 }
0x22f2   : > { %10519 = vmatpush3.bf16.msra.mxu1 %v10835_v37  ;;  %v9814_v37 = vld [vmem:[%s12397_s15 + $0x1] ss:$0 sm:$0xff] }
0x22f3   : > { %10520 = vmatprep.subr.bf16.mxu1 %v11044_v2  ;;  %v9801_v3 = vld [vmem:[%s12425_s7] ss:$0 sm:$0xff]  ;;  %s12426_s7 = sld [smem:[#allocation47_spill]] }
0x22f6   : > { %10521 = vmatpush3.bf16.msra.mxu1 %v10836_v54 }
0x22f7   : > { %10522 = vmatprep.subr.bf16.mxu1 %v11044_v2 }
0x22f9   : > { %s12427_s9 = smov %s12426_s7  ;;  %v9807_v27 = vld [vmem:[%s12426_s7] ss:$0 sm:$0xff]  ;;  %s12435_s7 = sld [smem:[#allocation57_spill]] }
0x22fa   : > { %10523 = vmatpush3.bf16.msra.mxu1 %v10837_v55 }
0x22fb   : > { %10544 = vmatprep.subr.bf16.mxu1 %v11044_v2 }
0x237d   : > { %v6657_v11 = vpop.xlane.xlu1 %6656 }
0x237e   : > { %v6658_v39 = vmul.f32 0.03125, %v6657_v11 }
0x2380   : > { %v6659_v40 = vsub.f32 %v6652_v48, %v6658_v39 }
0x2382   : > { %v6660_v41 = vmul.f32 %v6659_v40, %v6659_v40 }
0x2384   : > { %v6661_v42 = vsel %vm1682_vm2, %v6660_v41, 0.0 }
0x2385   : > { %6662 = vadd.xlane.f32.xlu0 %v6661_v42 }
0x2412   : > { %v6663_v45 = vpop.xlane.xlu0 %6662 }
0x2413   : > { %v6664_v46 = vmul.f32 0.03125, %v6663_v45 }
0x2415   : > { %v6665_v25 = vadd.f32 1e-05, %v6664_v46 }
0x2417   : > { %10938 = vrsqrt.f32 %v6665_v25 }
0x2421   : > { %v10939_v30 = vpop.eup %10938 }
0x2422   : > { %v6667_v49 = vmul.f32 %v10939_v30, %v6659_v40 }
0x2424   : > { %v6674_v51 = vmul.f32 %v9795_v47, %v6667_v49 }
0x2426   : > { %v6681_v52 = vadd.f32 %v9796_v50, %v6674_v51 }
0x2428   : > { %v6687_v53 = vpack.c.bf16 %v6681_v52, %v6681_v52 }
0x242a   : > { %10513 = vmatmul.mubr.msk.bf16.vlgmr.msra.gmra.mrb[104].mxu0 %vm1682_vm2, %v6687_v53 }
0x242b   : > { %10532 = vmatprep.mubr.msk.bf16.mxu0 %vm11045_vm0, %v11044_v2  ;;  %10529 = vmatpush3.bf16.msra.mxu0 %v10838_v17 }
0x242c   : > { %10530 = vmatprep.subr.bf16.mxu0 %v11044_v2 }
0x242f   : > { %10531 = vmatpush3.bf16.msra.mxu0 %v10840_v19 }
0x2430   : > { %10536 = vmatprep.subr.bf16.mxu0 %v11044_v2 }
0x24fd   : > { %v6743_v57 = vpop.f32.mrb[104].mxu0 }
0x24fe   : > { %v6744_v62 = vadd.f32 %v9797_v56, %v6743_v57  ;;  %v10514_v60 = vpop.f32.mrb[105].mxu0 }
0x24ff   : > { %v6746_v61 = vpop.f32.mrb[106].mxu0 }
0x2500   : > { %v6749_v63 = vmax.f32 %v6744_v62, 0.0  ;;  %v10515_v0 = vpop.f32.mrb[107].mxu0 }
0x2502   : > { %v6759_v1 = vpack.c.bf16 %v6749_v63, %v6749_v63 }
0x2504   : > { %10525 = vmatmul.mubr.msk.bf16.vlgmr.msra.gmra.mrb[104].mxu1 %vm2929_vm7, %v6759_v1 }
0x2505   : > { %10548 = vmatprep.mubr.msk.bf16.mxu1 %vm11045_vm0, %v11044_v2  ;;  %10545 = vmatpush3.bf16.msra.mxu1 %v10839_v18 }
0x2506   : > { %10546 = vmatprep.subr.bf16.mxu1 %v11044_v2 }
0x2509   : > { %10547 = vmatpush3.bf16.msra.mxu1 %v10841_v21 }
0x250a   : > { %10558 = vmatprep.subr.bf16.mxu1 %v11044_v2 }
0x25d7   : > { %v6827_v6 = vpop.f32.mrb[104].mxu1 }
0x25d8   : > { %v6828_v7 = vadd.f32 %v9801_v3, %v6827_v6  ;;  %v10526_v8 = vpop.f32.mrb[105].mxu1 }
0x25d9   : > { %v6830_v9 = vpop.f32.mrb[106].mxu1 }
0x25da   : > { %v6833_v10 = vadd.f32 %v6828_v7, %v6681_v52  ;;  %v10527_v12 = vpop.f32.mrb[107].mxu1 }
0x25dc   : > { %v6836_v13 = vsel %vm1682_vm2, %v6833_v10, 0.0 }
0x25dd   : > { %6837 = vadd.xlane.f32.xlu1 %v6836_v13 }
0x266a   : > { %v6838_v4 = vpop.xlane.xlu1 %6837 }
0x266b   : > { %v6839_v5 = vmul.f32 0.03125, %v6838_v4 }
0x266d   : > { %v6840_v14 = vsub.f32 %v6833_v10, %v6839_v5 }
0x266f   : > { %v6841_v15 = vmul.f32 %v6840_v14, %v6840_v14 }
0x2671   : > { %v6842_v16 = vsel %vm1682_vm2, %v6841_v15, 0.0 }
0x2672   : > { %6843 = vadd.xlane.f32.xlu0 %v6842_v16 }
0x26ff   : > { %v6844_v22 = vpop.xlane.xlu0 %6843 }
0x2700   : > { %v6845_v23 = vmul.f32 0.03125, %v6844_v22 }
0x2702   : > { %v6846_v24 = vadd.f32 1e-05, %v6845_v23 }
0x2704   : > { %10940 = vrsqrt.f32 %v6846_v24 }
0x270e   : > { %v10941_v26 = vpop.eup %10940 }
0x270f   : > { %v6848_v28 = vmul.f32 %v10941_v26, %v6840_v14 }
0x2711   : > { %v6855_v31 = vmul.f32 %v9807_v27, %v6848_v28 }
0x2713   : > { %v11976_v34 = vadd.f32 %v9808_v29, %v6855_v31 }
0x2715   : > { %v6870_v48 = vpack.c.bf16 %v11976_v34, %v11976_v34 }
0x2717   : > { %10533 = vmatmul.mubr.msk.bf16.vlgmr.msra.gmra.mrb[108].mxu0 %vm1682_vm2, %v6870_v48  ;;  %10549 = vmatmul.mubr.msk.bf16.vlgmr.msra.gmra.mrb[108].mxu1 %vm1682_vm2, %v6870_v48 }
0x2718   : > { %10537 = vmatpush3.bf16.msra.mxu0 %v10842_v58  ;;  %10540 = vmatprep.mubr.msk.bf16.mxu0 %vm11045_vm0, %v11044_v2 }
0x2719   : > { %10538 = vmatprep.subr.bf16.mxu0 %v11044_v2  ;;  %10560 = vmatprep.mubr.msk.bf16.mxu1 %vm11045_vm0, %v11044_v2 }
0x271c   : > { %10539 = vmatpush3.bf16.msra.mxu0 %v10843_v35 }
0x271d   : > { %10552 = vmatprep.subr.bf16.mxu0 %v11044_v2 }
0x271f   : > { %10541 = vmatmul.mubr.msk.bf16.vlgmr.msra.gmra.mrb[112].mxu0 %vm1682_vm2, %v6870_v48 }
0x2720   : > { %10554 = vmatprep.mubr.msk.bf16.mxu0 %vm11045_vm0, %v11044_v2 }
0x27ea   : > { %v6926_v36 = vpop.f32.mrb[108].mxu0  ;;  %v11993_v11 = vpop.f32.mrb[108].mxu1 }
0x27eb   : > { %v10534_v39 = vpop.f32.mrb[109].mxu0  ;;  %v10550_v40 = vpop.f32.mrb[109].mxu1  ;;  %v6927_v47 = vadd.f32 %v9814_v37, %v6926_v36 }
0x27ec   : > { %v6929_v41 = vpop.f32.mrb[110].mxu0  ;;  %v7059_v42 = vpop.f32.mrb[110].mxu1  ;;  %v9832_v40 = vld [vmem:[%s12403_s8 + $0x1] ss:$0 sm:$0xff] }
0x27ed   : > { %v10535_v43 = vpop.f32.mrb[111].mxu0  ;;  %v10551_v44 = vpop.f32.mrb[111].mxu1  ;;  %v7062_v51 = vpack.c.bf16 %v6927_v47, %v6927_v47  ;;  %v7057_v41 = vadd.f32 %v9832_v40, %v11993_v11 }
0x27ef   : > { %v7081_v42 = vpack.c.bf16 %v7057_v41, %v7057_v41 }
0x27f2   : > { %v6991_v45 = vpop.f32.mrb[112].mxu0 }
0x27f3   : > { %v6992_v46 = vadd.f32 %v9823_v20, %v6991_v45  ;;  %v10542_v25 = vpop.f32.mrb[113].mxu0 }
0x27f4   : > { %v6994_v30 = vpop.f32.mrb[114].mxu0 }
0x27f5   : > { %v7070_v49 = vpack.c.bf16 %v6992_v46, %v6992_v46  ;;  %v10543_v50 = vpop.f32.mrb[115].mxu0 }
0x27f7   : > { %7075 = vrot.lane.b32.xlu0 %v7070_v49, %s12399_s2  ;;  %7072 = vrot.lane.b32.xlu1 %v7070_v49, %s12400_s4 }
0x27fb   : > { %7066 = vrot.lane.b32.xlu0 %v7062_v51, %s12399_s2  ;;  %7078 = vrot.lane.b32.xlu1 %v7070_v49, %s12401_s6 }
0x27ff   : > { %7064 = vrot.lane.b32.xlu1 %v7062_v51, %s12400_s4 }
0x2803   : > { %7068 = vrot.lane.b32.xlu1 %v7062_v51, %s12401_s6 }
0x2819   : > { %7092 = vxpose.xlu0.c.b16.start.end [1/1] (short) (narrow) %v7070_v49, 16 }
0x2869   : > { %v7076_v52 = vpop.permute.xlu0 %7075  ;;  %v7073_v53 = vpop.permute.xlu1 %7072 }
0x286a   : > { %7124 = vxpose.xlu0.c.b16.start.end [1/1] (short) (narrow) %v7076_v52, 16  ;;  %7108 = vxpose.xlu1.c.b16.start.end [1/1] (short) (narrow) %v7073_v53, 16 }
0x286d   : > { %v7079_v54 = vpop.permute.xlu1 %7078  ;;  %v7067_v55 = vpop.permute.xlu0 %7066 }
0x286e   : > { %7140 = vxpose.xlu0.c.b16.start.end [1/1] (short) (narrow) %v7079_v54, 16 }
0x2871   : > { %v7065_v62 = vpop.permute.xlu1 %7064 }
0x2875   : > { %v7069_v60 = vpop.permute.xlu1 %7068 }
0x287f   : > { %v7100_v56 = vpop.trf.xlu0 }
0x2880   : > { %v7160_v57 = vsel %vm1950_vm3, %v7100_v56, 0 }
0x2881   : > { %10553 = vmatpush3.bf16.msra.mxu0 %v7160_v57 }
0x2882   : > { %10564 = vmatprep.subr.bf16.mxu0 %v11044_v2 }
0x2884   : > { %10555 = vmatmul.mubr.msk.bf16.vlgmr.msra.gmra.mrb[116].mxu0 %vm1946_vm4, %v7062_v51 }
0x2885   : > { %10566 = vmatprep.mubr.msk.bf16.mxu0 %vm11045_vm0, %v11044_v2 }
0x28d0   : > { %v7132_v61 = vpop.trf.xlu0  ;;  %v7116_v63 = vpop.trf.xlu1 }
0x28d1   : > { %v7252_v0 = vsel %vm1950_vm3, %v7132_v61, 0  ;;  %v7206_v1 = vsel %vm1950_vm3, %v7116_v63, 0 }
0x28d2   : > { %10559 = vmatpush3.bf16.msra.mxu1 %v7206_v1  ;;  %10565 = vmatpush3.bf16.msra.mxu0 %v7252_v0 }
0x28d3   : > { %10570 = vmatprep.subr.bf16.mxu1 %v11044_v2  ;;  %10576 = vmatprep.subr.bf16.mxu0 %v11044_v2 }
0x28d4   : > { %v7148_v3 = vpop.trf.xlu0 }
0x28d5   : > { %10561 = vmatmul.mubr.msk.bf16.vlgmr.msra.gmra.mrb[112].mxu1 %vm1946_vm4, %v7065_v62  ;;  %10567 = vmatmul.mubr.msk.bf16.vlgmr.msra.gmra.mrb[120].mxu0 %vm1946_vm4, %v7067_v55  ;;  %v7298_v6 = vsel %vm1950_vm3, %v7148_v3, 0 }
0x28d6   : > { %10571 = vmatpush3.bf16.msra.mxu1 %v7298_v6  ;;  %10572 = vmatprep.mubr.msk.bf16.mxu1 %vm11045_vm0, %v11044_v2 }
0x28d7   : > { %10578 = vmatprep.mubr.msk.bf16.mxu0 %vm11045_vm0, %v11044_v2  ;;  %10582 = vmatprep.subr.bf16.mxu1 %v11044_v2 }
0x28dd   : > { %10573 = vmatmul.mubr.msk.bf16.vlgmr.msra.gmra.mrb[116].mxu1 %vm1946_vm4, %v7069_v60 }
0x28de   : > { %10584 = vmatprep.mubr.msk.bf16.mxu1 %vm11045_vm0, %v11044_v2 }
0x2957   : > { %v7196_v7 = vpop.f32.mrb[116].mxu0 }
0x2958   : > { %v7340_v8 = vmul.f32 0.35355338, %v7196_v7  ;;  %v10556_v9 = vpop.f32.mrb[117].mxu0 }
0x2959   : > { %v7199_v10 = vpop.f32.mrb[118].mxu0 }
0x295a   : > { %v7344_v12 = vadd.f32 %v7340_v8, %v11733_v59  ;;  %v10557_v13 = vpop.f32.mrb[119].mxu0 }
0x295c   : > { %v7348_v4 = vsel %vm1946_vm4, %v7344_v12, -inf }
0x295d   : > { %7349 = vmax.xlane.f32.xlu1 %v7348_v4 }
0x29a8   : > { %v7242_v5 = vpop.f32.mrb[112].mxu1  ;;  %v7288_v14 = vpop.f32.mrb[120].mxu0 }
0x29a9   : > { %v7341_v15 = vmul.f32 0.35355338, %v7242_v5  ;;  %v7342_v16 = vmul.f32 0.35355338, %v7288_v14  ;;  %v10562_v17 = vpop.f32.mrb[113].mxu1  ;;  %v10568_v18 = vpop.f32.mrb[121].mxu0 }
0x29aa   : > { %v7245_v19 = vpop.f32.mrb[114].mxu1  ;;  %v7291_v21 = vpop.f32.mrb[122].mxu0 }
0x29ab   : > { %v7345_v22 = vadd.f32 %v7341_v15, %v11733_v59  ;;  %v7346_v23 = vadd.f32 %v7342_v16, %v11733_v59  ;;  %v10563_v24 = vpop.f32.mrb[115].mxu1  ;;  %v10569_v26 = vpop.f32.mrb[123].mxu0 }
0x29ad   : > { %v7351_v27 = vsel %vm1946_vm4, %v7345_v22, -inf  ;;  %v7354_v28 = vsel %vm1946_vm4, %v7346_v23, -inf }
0x29ae   : > { %7352 = vmax.xlane.f32.xlu0 %v7351_v27  ;;  %7355 = vmax.xlane.f32.xlu1 %v7354_v28 }
0x29b0   : > { %v7334_v29 = vpop.f32.mrb[116].mxu1 }
0x29b1   : > { %v7343_v31 = vmul.f32 0.35355338, %v7334_v29  ;;  %v10574_v58 = vpop.f32.mrb[117].mxu1 }
0x29b2   : > { %v7337_v48 = vpop.f32.mrb[118].mxu1 }
0x29b3   : > { %v7347_v35 = vadd.f32 %v7343_v31, %v11733_v59  ;;  %v10575_v36 = vpop.f32.mrb[119].mxu1 }
0x29b5   : > { %v7357_v39 = vsel %vm1946_vm4, %v7347_v35, -inf }
0x29b6   : > { %7358 = vmax.xlane.f32.xlu0 %v7357_v39 }
0x29bf   : > { %7083 = vrot.lane.b32.xlu1 %v7081_v42, %s12400_s4 }
0x29c3   : > { %7089 = vrot.lane.b32.xlu1 %v7081_v42, %s12401_s6 }
0x29ea   : > { %v7350_v43 = vpop.xlane.xlu1 %7349 }
0x29eb   : > { %v7360_v44 = vsub.f32 %v7344_v12, %v7350_v43 }
0x29ed   : > { %v7364_v20 = vmul.f32 1.442695, %v7360_v44 }
0x29ef   : > { %10942 = vpow2.f32 %v7364_v20 }
0x29f9   : > { %v10943_v37 = vpop.eup %10942 }
0x29fa   : > { %v7372_v45 = vsel %vm1946_vm4, %v10943_v37, 0.0 }
0x29fb   : > { %7373 = vadd.xlane.f32.xlu0 %v7372_v45 }
0x2a3b   : > { %v7353_v59 = vpop.xlane.xlu0 %7352  ;;  %v7356_v46 = vpop.xlane.xlu1 %7355 }
0x2a3c   : > { %v7361_v25 = vsub.f32 %v7345_v22, %v7353_v59  ;;  %v7362_v30 = vsub.f32 %v7346_v23, %v7356_v46 }
0x2a3e   : > { %v7366_v47 = vmul.f32 1.442695, %v7361_v25  ;;  %v7368_v49 = vmul.f32 1.442695, %v7362_v30 }
0x2a3f   : > { %v7084_v1 = vpop.permute.xlu1 %7083 }
0x2a40   : > { %10944 = vpow2.f32 %v7366_v47 }
0x2a41   : > { %10946 = vpow2.f32 %v7368_v49 }
0x2a43   : > { %v7359_v53 = vpop.xlane.xlu0 %7358  ;;  %v7090_v3 = vpop.permute.xlu1 %7089 }
0x2a44   : > { %v7363_v54 = vsub.f32 %v7347_v35, %v7359_v53 }
0x2a46   : > { %v7370_v55 = vmul.f32 1.442695, %v7363_v54 }
0x2a48   : > { %10948 = vpow2.f32 %v7370_v55 }
0x2a4a   : > { %v10945_v11 = vpop.eup %10944 }
0x2a4b   : > { %v10947_v50 = vpop.eup %10946  ;;  %v7375_v51 = vsel %vm1946_vm4, %v10945_v11, 0.0 }
0x2a4c   : > { %7376 = vadd.xlane.f32.xlu0 %v7375_v51  ;;  %v7378_v52 = vsel %vm1946_vm4, %v10947_v50, 0.0 }
0x2a4d   : > { %7379 = vadd.xlane.f32.xlu1 %v7378_v52 }
0x2a52   : > { %v10949_v56 = vpop.eup %10948 }
0x2a53   : > { %v7381_v57 = vsel %vm1946_vm4, %v10949_v56, 0.0 }
0x2a62   : > { %7086 = vrot.lane.b32.xlu0 %v7081_v42, %s12399_s2 }
0x2a7a   : > { %7396 = vxpose.xlu1.c.b16.start.end [1/1] (short) (narrow) %v7081_v42, 16 }
0x2a81   : > { %7382 = vadd.xlane.f32.xlu0 %v7381_v57 }
0x2a88   : > { %v7374_v62 = vpop.xlane.xlu0 %7373 }
0x2a89   : > { %10950 = vrcp.f32 %v7374_v62  ;;  %v10844_v62 = vld [vmem:[%s12404_s10 + $0x10] sm:$0xff]  }
0x2a93   : > { %v10951_v60 = vpop.eup %10950 }
0x2a94   : > { %v7388_v61 = vmul.f32 %v10951_v60, %v10943_v37 }
0x2a96   : > { %v7392_v63 = vpack.c.bf16 %v7388_v61, %v7388_v61 }
0x2a98   : > { %v7464_v0 = vsel %vm1946_vm4, %v7392_v63, 0 }
0x2a99   : > { %10577 = vmatpush3.bf16.xpose.msra.mxu0 %v7464_v0 }
0x2a9a   : > { %10588 = vmatprep.subr.bf16.mxu0 %v11044_v2 }
0x2aae   : > { %7412 = vxpose.xlu0.c.b16.start.end [1/1] (short) (narrow) %v7084_v1, 16 }
0x2ad9   : > { %v7377_v6 = vpop.xlane.xlu0 %7376 }
0x2ada   : > { %10952 = vrcp.f32 %v7377_v6  ;;  %v7380_v7 = vpop.xlane.xlu1 %7379 }
0x2adb   : > { %10954 = vrcp.f32 %v7380_v7 }
0x2add   : > { %v7087_v8 = vpop.permute.xlu0 %7086 }
0x2ade   : > { %7428 = vxpose.xlu1.c.b16.start.end [1/1] (short) (narrow) %v7087_v8, 16  ;;  %v10845_v8 = vld [vmem:[%s12404_s10 + $0x18] sm:$0xff]  }
0x2ae0   : > { %v7404_v9 = vpop.trf.xlu1 }
0x2ae1   : > { %10579 = vmatmul.mubr.msk.bf16.vlgmr.msra.gmra.mrb[124].mxu0 %vm1946_vm4, %v7404_v9 }
0x2ae2   : > { %7444 = vxpose.xlu1.c.b16.start.end [1/1] (short) (narrow) %v7090_v3, 16  ;;  %10590 = vmatprep.mubr.msk.bf16.mxu0 %vm11045_vm0, %v11044_v2 }
0x2ae4   : > { %v10953_v10 = vpop.eup %10952 }
0x2ae5   : > { %v10955_v12 = vpop.eup %10954  ;;  %v7389_v13 = vmul.f32 %v10953_v10, %v10945_v11 }
0x2ae6   : > { %v7390_v4 = vmul.f32 %v10955_v12, %v10947_v50 }
0x2ae7   : > { %v7393_v5 = vpack.c.bf16 %v7389_v13, %v7389_v13 }
0x2ae8   : > { %v7394_v14 = vpack.c.bf16 %v7390_v4, %v7390_v4 }
0x2ae9   : > { %v7510_v15 = vsel %vm1946_vm4, %v7393_v5, 0 }
0x2aea   : > { %10583 = vmatpush3.bf16.xpose.msra.mxu1 %v7510_v15  ;;  %v7556_v16 = vsel %vm1946_vm4, %v7394_v14, 0 }
0x2aeb   : > { %10589 = vmatpush3.bf16.xpose.msra.mxu0 %v7556_v16  ;;  %10594 = vmatprep.subr.bf16.mxu1 %v11044_v2 }
0x2aec   : > { %10600 = vmatprep.subr.bf16.mxu0 %v11044_v2 }
0x2b0e   : > { %v7383_v17 = vpop.xlane.xlu0 %7382 }
0x2b0f   : > { %10956 = vrcp.f32 %v7383_v17 }
0x2b14   : > { %v7420_v18 = vpop.trf.xlu0 }
0x2b15   : > { %10585 = vmatmul.mubr.msk.bf16.vlgmr.msra.gmra.mrb[120].mxu1 %vm1946_vm4, %v7420_v18 }
0x2b16   : > { %10596 = vmatprep.mubr.msk.bf16.mxu1 %vm11045_vm0, %v11044_v2 }
0x2b19   : > { %v10957_v19 = vpop.eup %10956 }
0x2b1a   : > { %v7391_v21 = vmul.f32 %v10957_v19, %v10949_v56 }
0x2b1c   : > { %v7395_v22 = vpack.c.bf16 %v7391_v21, %v7391_v21 }
0x2b1e   : > { %v7602_v23 = vsel %vm1946_vm4, %v7395_v22, 0 }
0x2b1f   : > { %10595 = vmatpush3.bf16.xpose.msra.mxu1 %v7602_v23 }
0x2b20   : > { %10608 = vmatprep.subr.bf16.mxu1 %v11044_v2 }
0x2b44   : > { %v7436_v24 = vpop.trf.xlu1 }
0x2b45   : > { %10591 = vmatmul.mubr.msk.bf16.vlgmr.msra.gmra.mrb[128].mxu0 %vm1946_vm4, %v7436_v24 }
0x2b46   : > { %10604 = vmatprep.mubr.msk.bf16.mxu0 %vm11045_vm0, %v11044_v2  ;;  %10601 = vmatpush3.bf16.msra.mxu0 %v10844_v62 }
0x2b47   : > { %10602 = vmatprep.subr.bf16.mxu0 %v11044_v2 }
0x2b48   : > { %v7452_v26 = vpop.trf.xlu1 }
0x2b49   : > { %10597 = vmatmul.mubr.msk.bf16.vlgmr.msra.gmra.mrb[124].mxu1 %vm1946_vm4, %v7452_v26 }
0x2b4a   : > { %10612 = vmatprep.mubr.msk.bf16.mxu1 %vm11045_vm0, %v11044_v2  ;;  %10603 = vmatpush3.bf16.msra.mxu0 %v10845_v8 }
0x2b4b   : > { %10616 = vmatprep.subr.bf16.mxu0 %v11044_v2 }
0x2bb4   : > { %v7500_v27 = vpop.f32.mrb[124].mxu0 }
0x2bb5   : > { %v10580_v28 = vpop.f32.mrb[125].mxu0  ;;  %7644 = vxpose.xlu0.b32.start.end [1/1] (short) (narrow) %v7500_v27, 8 }
0x2bb6   : > { %v7503_v29 = vpop.f32.mrb[126].mxu0 }
0x2bb7   : > { %v10581_v31 = vpop.f32.mrb[127].mxu0 }
0x2be8   : > { %v7546_v58 = vpop.f32.mrb[120].mxu1 }
0x2be9   : > { %v10586_v48 = vpop.f32.mrb[121].mxu1  ;;  %7676 = vxpose.xlu1.b32.start.end [1/1] (short) (narrow) %v7546_v58, 8 }
0x2bea   : > { %v7549_v35 = vpop.f32.mrb[122].mxu1  ;;  %v10846_v48 = vld [vmem:[%s12408_s19 + $0x10] sm:$0xff]  }
0x2beb   : > { %v10587_v36 = vpop.f32.mrb[123].mxu1 }
0x2bec   : > { %v10847_v36 = vld [vmem:[%s12408_s19 + $0x18] sm:$0xff]  }
0x2c18   : > { %v7592_v39 = vpop.f32.mrb[128].mxu0 }
0x2c19   : > { %7708 = vxpose.xlu0.b32.start.end [1/1] (short) (narrow) %v7592_v39, 8  ;;  %v10592_v40 = vpop.f32.mrb[129].mxu0  ;;  %v9851_v39 = vld [vmem:[%s12406_s13 + $0x1] ss:$0 sm:$0xff] }
0x2c1a   : > { %v7595_v41 = vpop.f32.mrb[130].mxu0 }
0x2c1b   : > { %v10593_v42 = vpop.f32.mrb[131].mxu0 }
0x2c1c   : > { %v7638_v43 = vpop.f32.mrb[124].mxu1 }
0x2c1d   : > { %v10598_v44 = vpop.f32.mrb[125].mxu1  ;;  %7740 = vxpose.xlu0.b32.start.end [1/1] (short) (narrow) %v7638_v43, 8 }
0x2c1e   : > { %v7641_v20 = vpop.f32.mrb[126].mxu1 }
0x2c1f   : > { %v10599_v37 = vpop.f32.mrb[127].mxu1 }
0x2c35   : > { %v7660_v45 = vpop.trf.xlu0 }
0x2c69   : > { %v7692_v46 = vpop.trf.xlu1 }
0x2c99   : > { %v7724_v59 = vpop.trf.xlu0 }
0x2c9a   : > { %v7772_v25 = vcombine.low %v7660_v45, %v7724_v59  ;;  %v7773_v30 = vcombine.high %v7660_v45, %v7724_v59 }
0x2c9c   : > { %v7780_v50 = vrot.slane %v7772_v25, %v11455_v32  ;;  %v7787_v51 = vrot.slane %v7773_v30, %v11455_v32  ;;  %v9873_v30 = vld [vmem:[%s12414_s25 + $0x1] ss:$0 sm:$0xff] }
0x2c9d   : > { %v7756_v47 = vpop.trf.xlu0 }
0x2c9e   : > { %v7788_v49 = vcombine.low %v7692_v46, %v7756_v47  ;;  %v7789_v11 = vcombine.high %v7692_v46, %v7756_v47 }
0x2ca0   : > { %v7796_v52 = vrot.slane %v7788_v49, %v11455_v32  ;;  %v7803_v53 = vrot.slane %v7789_v11, %v11455_v32 }
0x2ca2   : > { %v7804_v54 = vcombine.low %v7780_v50, %v7796_v52  ;;  %v7805_v55 = vcombine.high %v7780_v50, %v7796_v52  ;;  %v7820_v56 = vcombine.low %v7787_v51, %v7803_v53  ;;  %v7821_v57 = vcombine.high %v7787_v51, %v7803_v53  ;;  %v10848_v53 = vld [vmem:[%s12407_s14 + $0x10] sm:$0xff]  }
0x2ca3   : > { %10609 = vmatpush3.bf16.msra.mxu1 %v10848_v53 }
0x2ca4   : > { %v7812_v60 = vrot.slane %v7804_v54, %v11458_v38  ;;  %v7819_v61 = vrot.slane %v7805_v55, %v11458_v38  ;;  %v7828_v63 = vrot.slane %v7820_v56, %v11458_v38  ;;  %v7835_v0 = vrot.slane %v7821_v57, %v11458_v38  ;;  %v10849_v54 = vld [vmem:[%s12407_s14 + $0x18] sm:$0xff]   ;;  %10610 = vmatprep.subr.bf16.mxu1 %v11044_v2 }
0x2ca6   : > { %v7840_v1 = vcombine.low %v7812_v60, %v7819_v61  ;;  %v9844_v3 = vcombine.high %v7812_v60, %v7819_v61  ;;  %v7856_v6 = vcombine.low %v7828_v63, %v7835_v0  ;;  %v9845_v7 = vcombine.high %v7828_v63, %v7835_v0  ;;  %v9857_v60 = vld [vmem:[%s12409_s1 + $0x1] ss:$0 sm:$0xff] }
0x2ca7   : > { %10611 = vmatpush3.bf16.msra.mxu1 %v10849_v54  ;;  %v9858_v63 = vld [vmem:[%s12410_s20 + $0x1] ss:$0 sm:$0xff] }
0x2ca8   : > { %v7847_v9 = vrot.slane %v7840_v1, %v11455_v32  ;;  %v7855_v10 = vrot.slane %v9844_v3, %v11455_v32  ;;  %v7863_v12 = vrot.slane %v7856_v6, %v11455_v32  ;;  %v7871_v13 = vrot.slane %v9845_v7, %v11455_v32  ;;  %10624 = vmatprep.subr.bf16.mxu1 %v11044_v2  ;;  %v10850_v3 = vld [vmem:[%s12411_s21 + $0x10] sm:$0xff]   ;;  %v10851_v7 = vld [vmem:[%s12411_s21 + $0x18] sm:$0xff]  }
0x2caa   : > { %v7873_v4 = vcombine.high %v7847_v9, %v7855_v10  ;;  %v7889_v5 = vcombine.high %v7863_v12, %v7871_v13  ;;  %v7872_v14 = vcombine.low %v7847_v9, %v7855_v10  ;;  %v7888_v15 = vcombine.low %v7863_v12, %v7871_v13  ;;  %v9864_v12 = vld [vmem:[%s12415_s23 + $0x1] ss:$0 sm:$0xff] }
0x2cac   : > { %v7887_v16 = vrot.slane %v7873_v4, %v11458_v38  ;;  %v7903_v17 = vrot.slane %v7889_v5, %v11458_v38  ;;  %v7880_v18 = vrot.slane %v7872_v14, %v11458_v38  ;;  %v7896_v19 = vrot.slane %v7888_v15, %v11458_v38 }
0x2cae   : > { %v7906_v21 = vcombine.low %v7887_v16, %v7903_v17  ;;  %v7905_v22 = vcombine.high %v7880_v18, %v7896_v19  ;;  %v7904_v23 = vcombine.low %v7880_v18, %v7896_v19  ;;  %v7907_v24 = vcombine.high %v7887_v16, %v7903_v17 }
0x2cb0   : > { %7913 = vrot.lane.b32.xlu0 %v7906_v21, %s12405_s11  ;;  %7909 = vrot.lane.b32.xlu1 %v7905_v22, %s12391_s16 }
0x2cb4   : > { %7917 = vrot.lane.b32.xlu1 %v7907_v24, %s12392_s18 }
0x2d22   : > { %v7910_v26 = vpop.permute.xlu1 %7909  ;;  %v7914_v27 = vpop.permute.xlu0 %7913 }
0x2d23   : > { %v7920_v28 = vsel %vm1946_vm4, %v7904_v23, %v7910_v26 }
0x2d24   : > { %v7921_v31 = vsel %vm2719_vm5, %v7920_v28, %v7914_v27 }
0x2d26   : > { %v7918_v29 = vpop.permute.xlu1 %7917 }
0x2d27   : > { %v7922_v58 = vsel %vm2721_vm6, %v7921_v31, %v7918_v29 }
0x2d28   : > { %v7930_v35 = vpack.c.bf16 %v7922_v58, %v7922_v58 }
0x2d2a   : > { %10605 = vmatmul.mubr.msk.bf16.vlgmr.msra.gmra.mrb[132].mxu0 %vm1682_vm2, %v7930_v35 }
0x2d2b   : > { %10617 = vmatpush3.bf16.msra.mxu0 %v10846_v48  ;;  %10620 = vmatprep.mubr.msk.bf16.mxu0 %vm11045_vm0, %v11044_v2 }
0x2d2c   : > { %10618 = vmatprep.subr.bf16.mxu0 %v11044_v2 }
0x2d2f   : > { %10619 = vmatpush3.bf16.msra.mxu0 %v10847_v36 }
0x2d30   : > { %10632 = vmatprep.subr.bf16.mxu0 %v11044_v2 }
0x2d32   : > { %10621 = vmatmul.mubr.msk.bf16.vlgmr.msra.gmra.mrb[136].mxu0 %vm1682_vm2, %v11836_v33 }
0x2d33   : > { %10634 = vmatprep.mubr.msk.bf16.mxu0 %vm11045_vm0, %v11044_v2 }
0x2dfd   : > { %v7986_v40 = vpop.f32.mrb[132].mxu0 }
0x2dfe   : > { %v7987_v41 = vadd.f32 %v9851_v39, %v7986_v40  ;;  %v10606_v42 = vpop.f32.mrb[133].mxu0 }
0x2dff   : > { %v7989_v43 = vpop.f32.mrb[134].mxu0 }
0x2e00   : > { %v7992_v44 = vadd.f32 %v7987_v41, %v11976_v34  ;;  %v10607_v20 = vpop.f32.mrb[135].mxu0 }
0x2e02   : > { %v7997_v37 = vsel %vm1682_vm2, %v7992_v44, 0.0 }
0x2e03   : > { %7998 = vadd.xlane.f32.xlu1 %v7997_v37 }
0x2e05   : > { %v8152_v45 = vpop.f32.mrb[136].mxu0 }
0x2e06   : > { %v10622_v59 = vpop.f32.mrb[137].mxu0  ;;  %v8153_v47 = vadd.f32 %v9873_v30, %v8152_v45 }
0x2e07   : > { %v8155_v46 = vpop.f32.mrb[138].mxu0 }
0x2e08   : > { %v10623_v25 = vpop.f32.mrb[139].mxu0  ;;  %v8231_v49 = vpack.c.bf16 %v8153_v47, %v8153_v47 }
0x2e14   : > { %8233 = vrot.lane.b32.xlu1 %v8231_v49, %s12400_s4 }
0x2e18   : > { %8239 = vrot.lane.b32.xlu1 %v8231_v49, %s12401_s6 }
0x2e90   : > { %v7999_v11 = vpop.xlane.xlu1 %7998 }
0x2e91   : > { %v8000_v50 = vmul.f32 0.03125, %v7999_v11 }
0x2e93   : > { %v8001_v34 = vsub.f32 %v7992_v44, %v8000_v50  ;;  %v9882_v50 = vld [vmem:[%s12416_s24 + $0x1] ss:$0 sm:$0xff] }
0x2e94   : > { %v8234_v21 = vpop.permute.xlu1 %8233 }
0x2e95   : > { %v8002_v51 = vmul.f32 %v8001_v34, %v8001_v34 }
0x2e97   : > { %v8003_v52 = vsel %vm1682_vm2, %v8002_v51, 0.0 }
0x2e98   : > { %8004 = vadd.xlane.f32.xlu0 %v8003_v52  ;;  %v8240_v22 = vpop.permute.xlu1 %8239 }
0x2eae   : > { %8236 = vrot.lane.b32.xlu0 %v8231_v49, %s12399_s2 }
0x2ecc   : > { %8253 = vxpose.xlu0.c.b16.start.end [1/1] (short) (narrow) %v8231_v49, 16 }
0x2f25   : > { %v8005_v55 = vpop.xlane.xlu0 %8004 }
0x2f26   : > { %v8006_v56 = vmul.f32 0.03125, %v8005_v55 }
0x2f28   : > { %v8007_v57 = vadd.f32 1e-05, %v8006_v56 }
0x2f29   : > { %v8237_v8 = vpop.permute.xlu0 %8236 }
0x2f2a   : > { %10958 = vrsqrt.f32 %v8007_v57 }
0x2f32   : > { %v8261_v9 = vpop.trf.xlu0 }
0x2f33   : > { %v8321_v10 = vsel %vm1950_vm3, %v8261_v9, 0 }
0x2f34   : > { %v10959_v62 = vpop.eup %10958  ;;  %10633 = vmatpush3.bf16.msra.mxu0 %v8321_v10 }
0x2f35   : > { %v8009_v61 = vmul.f32 %v10959_v62, %v8001_v34  ;;  %10644 = vmatprep.subr.bf16.mxu0 %v11044_v2 }
0x2f37   : > { %v8016_v0 = vmul.f32 %v9857_v60, %v8009_v61 }
0x2f39   : > { %v12111_v1 = vadd.f32 %v9858_v63, %v8016_v0 }
0x2f3b   : > { %v8031_v6 = vpack.c.bf16 %v12111_v1, %v12111_v1 }
0x2f3d   : > { %10613 = vmatmul.mubr.msk.bf16.vlgmr.msra.gmra.mrb[128].mxu1 %vm1682_vm2, %v8031_v6 }
0x2f3e   : > { %10625 = vmatpush3.bf16.msra.mxu1 %v10850_v3  ;;  %10628 = vmatprep.mubr.msk.bf16.mxu1 %vm11045_vm0, %v11044_v2 }
0x2f3f   : > { %10626 = vmatprep.subr.bf16.mxu1 %v11044_v2 }
0x2f42   : > { %10627 = vmatpush3.bf16.msra.mxu1 %v10851_v7 }
0x2f43   : > { %10638 = vmatprep.subr.bf16.mxu1 %v11044_v2 }
0x2f45   : > { %10629 = vmatmul.mubr.msk.bf16.vlgmr.msra.gmra.mrb[132].mxu1 %vm1682_vm2, %v11836_v33 }
0x2f46   : > { %10640 = vmatprep.mubr.msk.bf16.mxu1 %vm11045_vm0, %v11044_v2 }
0x3010   : > { %v8087_v13 = vpop.f32.mrb[128].mxu1 }
0x3011   : > { %v8088_v4 = vadd.f32 %v9864_v12, %v8087_v13  ;;  %v10614_v5 = vpop.f32.mrb[129].mxu1 }
0x3012   : > { %v8090_v14 = vpop.f32.mrb[130].mxu1 }
0x3013   : > { %v8223_v15 = vpack.c.bf16 %v8088_v4, %v8088_v4  ;;  %v10615_v16 = vpop.f32.mrb[131].mxu1 }
0x3015   : > { %8227 = vrot.lane.b32.xlu0 %v8223_v15, %s12399_s2  ;;  %10635 = vmatmul.mubr.msk.bf16.vlgmr.msra.gmra.mrb[140].mxu0 %vm1946_vm4, %v8223_v15 }
0x3016   : > { %8225 = vrot.lane.b32.xlu1 %v8223_v15, %s12400_s4  ;;  %10646 = vmatprep.mubr.msk.bf16.mxu0 %vm11045_vm0, %v11044_v2 }
0x3018   : > { %v8217_v33 = vpop.f32.mrb[132].mxu1 }
0x3019   : > { %v10630_v17 = vpop.f32.mrb[133].mxu1  ;;  %v8218_v53 = vadd.f32 %v9882_v50, %v8217_v33 }
0x301a   : > { %8229 = vrot.lane.b32.xlu1 %v8223_v15, %s12401_s6  ;;  %v8220_v18 = vpop.f32.mrb[134].mxu1 }
0x301b   : > { %v10631_v19 = vpop.f32.mrb[135].mxu1  ;;  %v8242_v55 = vpack.c.bf16 %v8218_v53, %v8218_v53 }
0x3033   : > { %8285 = vxpose.xlu0.c.b16.start.end [1/1] (short) (narrow) %v8237_v8, 16 }
0x3037   : > { %8301 = vxpose.xlu0.c.b16.start.end [1/1] (short) (narrow) %v8240_v22, 16 }
0x303d   : > { %8269 = vxpose.xlu1.c.b16.start.end [1/1] (short) (narrow) %v8234_v21, 16 }
0x3087   : > { %v8228_v23 = vpop.permute.xlu0 %8227 }
0x3088   : > { %v8226_v24 = vpop.permute.xlu1 %8225 }
0x308c   : > { %v8230_v28 = vpop.permute.xlu1 %8229 }
0x3099   : > { %v8293_v26 = vpop.trf.xlu0 }
0x309a   : > { %v8413_v27 = vsel %vm1950_vm3, %v8293_v26, 0 }
0x309b   : > { %10645 = vmatpush3.bf16.msra.mxu0 %v8413_v27 }
0x309c   : > { %10656 = vmatprep.subr.bf16.mxu0 %v11044_v2 }
0x309d   : > { %v8309_v31 = vpop.trf.xlu0 }
0x309e   : > { %10647 = vmatmul.mubr.msk.bf16.vlgmr.msra.gmra.mrb[144].mxu0 %vm1946_vm4, %v8228_v23  ;;  %v8459_v48 = vsel %vm1950_vm3, %v8309_v31, 0 }
0x309f   : > { %10658 = vmatprep.mubr.msk.bf16.mxu0 %vm11045_vm0, %v11044_v2 }
0x30a3   : > { %v8277_v29 = vpop.trf.xlu1 }
0x30a4   : > { %v8367_v58 = vsel %vm1950_vm3, %v8277_v29, 0 }
0x30a5   : > { %10639 = vmatpush3.bf16.msra.mxu1 %v8367_v58 }
0x30a6   : > { %10650 = vmatprep.subr.bf16.mxu1 %v11044_v2 }
0x30a8   : > { %10641 = vmatmul.mubr.msk.bf16.vlgmr.msra.gmra.mrb[136].mxu1 %vm1946_vm4, %v8226_v24 }
0x30a9   : > { %10651 = vmatpush3.bf16.msra.mxu1 %v8459_v48  ;;  %10652 = vmatprep.mubr.msk.bf16.mxu1 %vm11045_vm0, %v11044_v2 }
0x30aa   : > { %10662 = vmatprep.subr.bf16.mxu1 %v11044_v2 }
0x30b0   : > { %10653 = vmatmul.mubr.msk.bf16.vlgmr.msra.gmra.mrb[140].mxu1 %vm1946_vm4, %v8230_v28 }
0x30b1   : > { %10664 = vmatprep.mubr.msk.bf16.mxu1 %vm11045_vm0, %v11044_v2 }
0x30e8   : > { %v8357_v35 = vpop.f32.mrb[140].mxu0 }
0x30e9   : > { %v8501_v36 = vmul.f32 0.35355338, %v8357_v35  ;;  %v10636_v39 = vpop.f32.mrb[141].mxu0 }
0x30ea   : > { %v8360_v40 = vpop.f32.mrb[142].mxu0 }
0x30eb   : > { %v10637_v41 = vpop.f32.mrb[143].mxu0  ;;  %v8505_v42 = vsel %vm1946_vm4, %v8501_v36, -inf }
0x30ec   : > { %8506 = vmax.xlane.f32.xlu1 %v8505_v42 }
0x3171   : > { %v8449_v43 = vpop.f32.mrb[144].mxu0 }
0x3172   : > { %v8503_v44 = vmul.f32 0.35355338, %v8449_v43  ;;  %v10648_v20 = vpop.f32.mrb[145].mxu0 }
0x3173   : > { %v8452_v37 = vpop.f32.mrb[146].mxu0 }
0x3174   : > { %v10649_v45 = vpop.f32.mrb[147].mxu0  ;;  %v8511_v59 = vsel %vm1946_vm4, %v8503_v44, -inf }
0x3175   : > { %8512 = vmax.xlane.f32.xlu1 %v8511_v59 }
0x3179   : > { %v8507_v46 = vpop.xlane.xlu1 %8506 }
0x317a   : > { %v8517_v25 = vsub.f32 %v8501_v36, %v8507_v46 }
0x317b   : > { %v8403_v30 = vpop.f32.mrb[136].mxu1 }
0x317c   : > { %v8521_v47 = vmul.f32 1.442695, %v8517_v25  ;;  %v8502_v49 = vmul.f32 0.35355338, %v8403_v30  ;;  %v10642_v11 = vpop.f32.mrb[137].mxu1 }
0x317d   : > { %v8406_v34 = vpop.f32.mrb[138].mxu1 }
0x317e   : > { %10960 = vpow2.f32 %v8521_v47  ;;  %v10643_v51 = vpop.f32.mrb[139].mxu1  ;;  %v8508_v52 = vsel %vm1946_vm4, %v8502_v49, -inf }
0x317f   : > { %8509 = vmax.xlane.f32.xlu0 %v8508_v52 }
0x3183   : > { %v8495_v54 = vpop.f32.mrb[140].mxu1 }
0x3184   : > { %v8504_v56 = vmul.f32 0.35355338, %v8495_v54  ;;  %v10654_v57 = vpop.f32.mrb[141].mxu1 }
0x3185   : > { %v8498_v62 = vpop.f32.mrb[142].mxu1 }
0x3186   : > { %v10655_v60 = vpop.f32.mrb[143].mxu1  ;;  %v8514_v61 = vsel %vm1946_vm4, %v8504_v56, -inf  ;;  %8244 = vrot.lane.b32.xlu1 %v8242_v55, %s12400_s4  ;;  %s12430_s4 = sld [smem:[#allocation42_spill]] }
0x3187   : > { %8515 = vmax.xlane.f32.xlu0 %v8514_v61 }
0x3188   : > { %v10961_v63 = vpop.eup %10960 }
0x3189   : > { %v8529_v0 = vsel %vm1946_vm4, %v10961_v63, 0.0 }
0x318a   : > { %8250 = vrot.lane.b32.xlu1 %v8242_v55, %s12401_s6  ;;  %s12429_s6 = sld [smem:[#allocation40_spill]] }
0x318b   : > { %8530 = vadd.xlane.f32.xlu0 %v8529_v0 }
0x3202   : > { %v8513_v3 = vpop.xlane.xlu1 %8512 }
0x3203   : > { %v8519_v6 = vsub.f32 %v8503_v44, %v8513_v3 }
0x3205   : > { %v8525_v7 = vmul.f32 1.442695, %v8519_v6 }
0x3206   : > { %v8245_v24 = vpop.permute.xlu1 %8244 }
0x3207   : > { %10962 = vpow2.f32 %v8525_v7 }
0x320a   : > { %v8251_v26 = vpop.permute.xlu1 %8250 }
0x320c   : > { %v8510_v8 = vpop.xlane.xlu0 %8509 }
0x320d   : > { %v8518_v9 = vsub.f32 %v8502_v49, %v8510_v8 }
0x320f   : > { %v8523_v10 = vmul.f32 1.442695, %v8518_v9 }
0x3211   : > { %v10963_v12 = vpop.eup %10962  ;;  %10964 = vpow2.f32 %v8523_v10 }
0x3212   : > { %v8535_v13 = vsel %vm1946_vm4, %v10963_v12, 0.0 }
0x3213   : > { %8536 = vadd.xlane.f32.xlu1 %v8535_v13 }
0x3214   : > { %v8516_v4 = vpop.xlane.xlu0 %8515 }
0x3215   : > { %v8520_v19 = vsub.f32 %v8504_v56, %v8516_v4 }
0x3217   : > { %v8527_v21 = vmul.f32 1.442695, %v8520_v19 }
0x3218   : > { %v8531_v5 = vpop.xlane.xlu0 %8530 }
0x3219   : > { %10966 = vrcp.f32 %v8531_v5 }
0x321a   : > { %10968 = vpow2.f32 %v8527_v21 }
0x321b   : > { %v10965_v14 = vpop.eup %10964 }
0x321c   : > { %v8532_v15 = vsel %vm1946_vm4, %v10965_v14, 0.0 }
0x321d   : > { %8533 = vadd.xlane.f32.xlu0 %v8532_v15 }
0x3223   : > { %v10967_v16 = vpop.eup %10966 }
0x3224   : > { %v8545_v33 = vmul.f32 %v10967_v16, %v10961_v63  ;;  %v10969_v22 = vpop.eup %10968 }
0x3225   : > { %v8538_v23 = vsel %vm1946_vm4, %v10969_v22, 0.0 }
0x3226   : > { %v8549_v17 = vpack.c.bf16 %v8545_v33, %v8545_v33 }
0x3228   : > { %v8621_v18 = vsel %vm1946_vm4, %v8549_v17, 0  ;;  %v10852_v17 = vld [vmem:[%s12417_s28 + $0x10] sm:$0xff]  }
0x3229   : > { %10657 = vmatpush3.bf16.xpose.msra.mxu0 %v8621_v18 }
0x322a   : > { %10668 = vmatprep.subr.bf16.mxu0 %v11044_v2 }
0x3233   : > { %8247 = vrot.lane.b32.xlu0 %v8242_v55, %s12399_s2  ;;  %s12433_s2 = sld [smem:[#allocation52_spill]] }
0x3240   : > { %8553 = vxpose.xlu1.c.b16.start.end [1/1] (short) (narrow) %v8242_v55, 16 }
0x3252   : > { %8539 = vadd.xlane.f32.xlu0 %v8538_v23 }
0x327f   : > { %8569 = vxpose.xlu0.c.b16.start.end [1/1] (short) (narrow) %v8245_v24, 16 }
0x32a0   : > { %v8537_v27 = vpop.xlane.xlu1 %8536 }
0x32a1   : > { %10970 = vrcp.f32 %v8537_v27 }
0x32a6   : > { %v8561_v28 = vpop.trf.xlu1 }
0x32a7   : > { %10659 = vmatmul.mubr.msk.bf16.vlgmr.msra.gmra.mrb[148].mxu0 %vm1946_vm4, %v8561_v28  ;;  %v10853_v28 = vld [vmem:[%s12417_s28 + $0x18] sm:$0xff]  }
0x32a8   : > { %10670 = vmatprep.mubr.msk.bf16.mxu0 %vm11045_vm0, %v11044_v2 }
0x32aa   : > { %v8534_v29 = vpop.xlane.xlu0 %8533 }
0x32ab   : > { %v10971_v31 = vpop.eup %10970  ;;  %10972 = vrcp.f32 %v8534_v29 }
0x32ac   : > { %v8547_v58 = vmul.f32 %v10971_v31, %v10963_v12 }
0x32ae   : > { %v8248_v48 = vpop.permute.xlu0 %8247  ;;  %v8551_v35 = vpack.c.bf16 %v8547_v58, %v8547_v58 }
0x32af   : > { %8585 = vxpose.xlu1.c.b16.start.end [1/1] (short) (narrow) %v8248_v48, 16 }
0x32b0   : > { %v8713_v36 = vsel %vm1946_vm4, %v8551_v35, 0 }
0x32b1   : > { %10669 = vmatpush3.bf16.xpose.msra.mxu0 %v8713_v36 }
0x32b2   : > { %10680 = vmatprep.subr.bf16.mxu0 %v11044_v2 }
0x32b3   : > { %8601 = vxpose.xlu1.c.b16.start.end [1/1] (short) (narrow) %v8251_v26, 16 }
0x32b5   : > { %v10973_v39 = vpop.eup %10972 }
0x32b6   : > { %v8546_v40 = vmul.f32 %v10973_v39, %v10965_v14 }
0x32b8   : > { %v8550_v41 = vpack.c.bf16 %v8546_v40, %v8546_v40 }
0x32ba   : > { %v8667_v42 = vsel %vm1946_vm4, %v8550_v41, 0 }
0x32bb   : > { %10663 = vmatpush3.bf16.xpose.msra.mxu1 %v8667_v42 }
0x32bc   : > { %10674 = vmatprep.subr.bf16.mxu1 %v11044_v2 }
0x32df   : > { %v8540_v43 = vpop.xlane.xlu0 %8539 }
0x32e0   : > { %10974 = vrcp.f32 %v8540_v43 }
0x32e5   : > { %v8577_v44 = vpop.trf.xlu0 }
0x32e6   : > { %10665 = vmatmul.mubr.msk.bf16.vlgmr.msra.gmra.mrb[144].mxu1 %vm1946_vm4, %v8577_v44 }
0x32e7   : > { %10676 = vmatprep.mubr.msk.bf16.mxu1 %vm11045_vm0, %v11044_v2 }
0x32ea   : > { %v10975_v20 = vpop.eup %10974 }
0x32eb   : > { %v8548_v37 = vmul.f32 %v10975_v20, %v10969_v22 }
0x32ed   : > { %v8552_v45 = vpack.c.bf16 %v8548_v37, %v8548_v37 }
0x32ef   : > { %v8759_v59 = vsel %vm1946_vm4, %v8552_v45, 0 }
0x32f0   : > { %10675 = vmatpush3.bf16.xpose.msra.mxu1 %v8759_v59 }
0x32f1   : > { %10688 = vmatprep.subr.bf16.mxu1 %v11044_v2 }
0x3315   : > { %v8593_v46 = vpop.trf.xlu1 }
0x3316   : > { %10671 = vmatmul.mubr.msk.bf16.vlgmr.msra.gmra.mrb[152].mxu0 %vm1946_vm4, %v8593_v46 }
0x3317   : > { %10684 = vmatprep.mubr.msk.bf16.mxu0 %vm11045_vm0, %v11044_v2  ;;  %10681 = vmatpush3.bf16.msra.mxu0 %v10852_v17 }
0x3318   : > { %10682 = vmatprep.subr.bf16.mxu0 %v11044_v2 }
0x3319   : > { %v8609_v25 = vpop.trf.xlu1 }
0x331a   : > { %10677 = vmatmul.mubr.msk.bf16.vlgmr.msra.gmra.mrb[148].mxu1 %vm1946_vm4, %v8609_v25 }
0x331b   : > { %10692 = vmatprep.mubr.msk.bf16.mxu1 %vm11045_vm0, %v11044_v2  ;;  %10683 = vmatpush3.bf16.msra.mxu0 %v10853_v28 }
0x331c   : > { %10696 = vmatprep.subr.bf16.mxu0 %v11044_v2 }
0x337a   : > { %v8657_v30 = vpop.f32.mrb[148].mxu0 }
0x337b   : > { %v10660_v47 = vpop.f32.mrb[149].mxu0  ;;  %8801 = vxpose.xlu0.b32.start.end [1/1] (short) (narrow) %v8657_v30, 8 }
0x337c   : > { %v8660_v49 = vpop.f32.mrb[150].mxu0 }
0x337d   : > { %v10661_v11 = vpop.f32.mrb[151].mxu0 }
0x337e   : > { %v9901_v11 = vld [vmem:[%s12418_s29 + $0x1] ss:$0 sm:$0xff] }
0x33b9   : > { %v8703_v50 = vpop.f32.mrb[144].mxu1 }
0x33ba   : > { %v10666_v34 = vpop.f32.mrb[145].mxu1  ;;  %8833 = vxpose.xlu1.b32.start.end [1/1] (short) (narrow) %v8703_v50, 8 }
0x33bb   : > { %v8706_v51 = vpop.f32.mrb[146].mxu1 }
0x33bc   : > { %v10667_v52 = vpop.f32.mrb[147].mxu1 }
0x33e9   : > { %v8749_v53 = vpop.f32.mrb[152].mxu0 }
0x33ea   : > { %8865 = vxpose.xlu0.b32.start.end [1/1] (short) (narrow) %v8749_v53, 8  ;;  %v10672_v54 = vpop.f32.mrb[153].mxu0 }
0x33eb   : > { %v8752_v55 = vpop.f32.mrb[154].mxu0 }
0x33ec   : > { %v10673_v56 = vpop.f32.mrb[155].mxu0 }
0x33ed   : > { %v8795_v57 = vpop.f32.mrb[148].mxu1 }
0x33ee   : > { %8897 = vxpose.xlu0.b32.start.end [1/1] (short) (narrow) %v8795_v57, 8  ;;  %v10678_v62 = vpop.f32.mrb[149].mxu1 }
0x33ef   : > { %v8798_v60 = vpop.f32.mrb[150].mxu1 }
0x33f0   : > { %v10679_v61 = vpop.f32.mrb[151].mxu1 }
0x33fb   : > { %v8817_v63 = vpop.trf.xlu0 }
0x343a   : > { %v8849_v3 = vpop.trf.xlu1 }
0x346a   : > { %v8881_v0 = vpop.trf.xlu0 }
0x346b   : > { %v8929_v6 = vcombine.low %v8817_v63, %v8881_v0  ;;  %v8930_v7 = vcombine.high %v8817_v63, %v8881_v0  ;;  %v10854_v63 = vld [vmem:[%s12419_s30 + $0x10] sm:$0xff]   ;;  %v10855_v0 = vld [vmem:[%s12419_s30 + $0x18] sm:$0xff]  }
0x346c   : > { %10689 = vmatpush3.bf16.msra.mxu1 %v10854_v63 }
0x346d   : > { %v8937_v12 = vrot.slane %v8929_v6, %v11455_v32  ;;  %v8944_v13 = vrot.slane %v8930_v7, %v11455_v32  ;;  %10690 = vmatprep.subr.bf16.mxu1 %v11044_v2 }
0x346e   : > { %v8913_v8 = vpop.trf.xlu0 }
0x346f   : > { %v8945_v9 = vcombine.low %v8849_v3, %v8913_v8  ;;  %v8946_v10 = vcombine.high %v8849_v3, %v8913_v8  ;;  %v10857_v3 = vld [vmem:[%s12421_s12 + $0x28] sm:$0xff]  }
0x3470   : > { %10691 = vmatpush3.bf16.msra.mxu1 %v10855_v0 }
0x3471   : > { %v8953_v4 = vrot.slane %v8945_v9, %v11455_v32  ;;  %v8960_v5 = vrot.slane %v8946_v10, %v11455_v32  ;;  %10708 = vmatprep.subr.bf16.mxu1 %v11044_v2  ;;  %v9907_v10 = vld [vmem:[%s12422_s0 + $0x1] ss:$0 sm:$0xff] }
0x3473   : > { %v8961_v14 = vcombine.low %v8937_v12, %v8953_v4  ;;  %v8962_v15 = vcombine.high %v8937_v12, %v8953_v4  ;;  %v8977_v16 = vcombine.low %v8944_v13, %v8960_v5  ;;  %v8978_v33 = vcombine.high %v8944_v13, %v8960_v5  ;;  %v9908_v13 = vld [vmem:[%s12423_s27 + $0x1] ss:$0 sm:$0xff] }
0x3475   : > { %v8969_v18 = vrot.slane %v8961_v14, %v11458_v38  ;;  %v8976_v19 = vrot.slane %v8962_v15, %v11458_v38  ;;  %v8985_v21 = vrot.slane %v8977_v16, %v11458_v38  ;;  %v8992_v22 = vrot.slane %v8978_v33, %v11458_v38  ;;  %v10858_v15 = vld [vmem:[%s12421_s12 + $0x30] sm:$0xff]   ;;  %v10859_v16 = vld [vmem:[%s12421_s12 + $0x38] sm:$0xff]   ;;  %v9914_v33 = vld [vmem:[%s12429_s6 + $0x1] ss:$0 sm:$0xff]  ;;  %s12436_s6 = sld [smem:[#allocation55_spill]] }
0x3477   : > { %v8997_v23 = vcombine.low %v8969_v18, %v8976_v19  ;;  %v9894_v24 = vcombine.high %v8969_v18, %v8976_v19  ;;  %v9013_v26 = vcombine.low %v8985_v21, %v8992_v22  ;;  %v9895_v27 = vcombine.high %v8985_v21, %v8992_v22 }
0x3479   : > { %v9004_v29 = vrot.slane %v8997_v23, %v11455_v32  ;;  %v9012_v31 = vrot.slane %v9894_v24, %v11455_v32  ;;  %v9020_v58 = vrot.slane %v9013_v26, %v11455_v32  ;;  %v9028_v48 = vrot.slane %v9895_v27, %v11455_v32  ;;  %v9927_v26 = vld [vmem:[%s12430_s4 + $0x1] ss:$0 sm:$0xff] }
0x347b   : > { %v9030_v35 = vcombine.high %v9004_v29, %v9012_v31  ;;  %v9046_v36 = vcombine.high %v9020_v58, %v9028_v48  ;;  %v9029_v39 = vcombine.low %v9004_v29, %v9012_v31  ;;  %v9045_v40 = vcombine.low %v9020_v58, %v9028_v48  ;;  %s1628_s4 = scalar_lea.vmem %s12436_s6, %s12435_s7 }
0x347d   : > { %v9044_v41 = vrot.slane %v9030_v35, %v11458_v38  ;;  %v9060_v42 = vrot.slane %v9046_v36, %v11458_v38  ;;  %v9037_v43 = vrot.slane %v9029_v39, %v11458_v38  ;;  %v9053_v44 = vrot.slane %v9045_v40, %v11458_v38 }
0x347f   : > { %v9063_v20 = vcombine.low %v9044_v41, %v9060_v42  ;;  %v9062_v37 = vcombine.high %v9037_v43, %v9053_v44  ;;  %v9061_v45 = vcombine.low %v9037_v43, %v9053_v44  ;;  %v9064_v32 = vcombine.high %v9044_v41, %v9060_v42 }
0x3481   : > { %9070 = vrot.lane.b32.xlu0 %v9063_v20, %s12405_s11  ;;  %9066 = vrot.lane.b32.xlu1 %v9062_v37, %s12391_s16  ;;  %s12431_s16 = sld [smem:[#allocation53_spill]]  ;;  %s12434_s11 = sld [smem:[#allocation54_spill]] }
0x3485   : > { %9074 = vrot.lane.b32.xlu1 %v9064_v32, %s12392_s18  ;;  %s12432_s18 = sld [smem:[#allocation51_spill]] }
0x3487   : > { %v9939_v0 = vld [vmem:[%s12434_s11] ss:$0 sm:$0xff] }
0x34f3   : > { %v9067_v59 = vpop.permute.xlu1 %9066  ;;  %v9071_v46 = vpop.permute.xlu0 %9070 }
0x34f4   : > { %v9077_v25 = vsel %vm1946_vm4, %v9061_v45, %v9067_v59  ;;  %v9935_v45 = vld [vmem:[%s12427_s9 + $0x1] ss:$0 sm:$0xff] }
0x34f5   : > { %v9078_v47 = vsel %vm2719_vm5, %v9077_v25, %v9071_v46  ;;  %v9936_v59 = vld [vmem:[%s12428_s17 + $0x1] ss:$0 sm:$0xff] }
0x34f7   : > { %v9075_v30 = vpop.permute.xlu1 %9074 }
0x34f8   : > { %v9079_v38 = vsel %vm2721_vm6, %v9078_v47, %v9075_v30 }
0x34f9   : > { %v9087_v49 = vpack.c.bf16 %v9079_v38, %v9079_v38 }
0x34fb   : > { %10685 = vmatmul.mubr.msk.bf16.vlgmr.msra.gmra.mrb[156].mxu0 %vm1682_vm2, %v9087_v49 }
0x34fc   : > { %10704 = vmatprep.mubr.msk.bf16.mxu0 %vm11045_vm0, %v11044_v2 }
0x35ce   : > { %v9143_v50 = vpop.f32.mrb[156].mxu0 }
0x35cf   : > { %v9144_v34 = vadd.f32 %v9901_v11, %v9143_v50  ;;  %v10686_v51 = vpop.f32.mrb[157].mxu0 }
0x35d0   : > { %v9146_v52 = vpop.f32.mrb[158].mxu0  ;;  %v10861_v51 = vld [vmem:[%s12431_s16 + $0x8] sm:$0xff]  }
0x35d1   : > { %v9149_v53 = vadd.f32 %v9144_v34, %v12111_v1  ;;  %v10687_v54 = vpop.f32.mrb[159].mxu0  ;;  %v10856_v1 = vld [vmem:[%s12421_s12 + $0x20] sm:$0xff]  }
0x35d2   : > { %10697 = vmatpush3.bf16.msra.mxu0 %v10856_v1  ;;  %v10860_v34 = vld [vmem:[%s12431_s16] sm:$0xff]  }
0x35d3   : > { %v9154_v55 = vsel %vm1682_vm2, %v9149_v53, 0.0  ;;  %10698 = vmatprep.subr.bf16.mxu0 %v11044_v2 }
0x35d4   : > { %9155 = vadd.xlane.f32.xlu1 %v9154_v55 }
0x35d6   : > { %10699 = vmatpush3.bf16.msra.mxu0 %v10857_v3 }
0x35d7   : > { %10700 = vmatprep.subr.bf16.mxu0 %v11044_v2 }
0x35da   : > { %10701 = vmatpush3.bf16.msra.mxu0 %v10858_v15 }
0x35db   : > { %10702 = vmatprep.subr.bf16.mxu0 %v11044_v2 }
0x35de   : > { %10703 = vmatpush3.bf16.msra.mxu0 %v10859_v16 }
0x3661   : > { %v9156_v56 = vpop.xlane.xlu1 %9155 }
0x3662   : > { %v9157_v57 = vmul.f32 0.03125, %v9156_v56  ;;  %v9937_v56 = vld [vmem:[%s12432_s18] ss:$0 sm:$0xff] }
0x3664   : > { %v9158_v62 = vsub.f32 %v9149_v53, %v9157_v57 }
0x3666   : > { %v9159_v60 = vmul.f32 %v9158_v62, %v9158_v62 }
0x3668   : > { %v9160_v61 = vsel %vm1682_vm2, %v9159_v60, 0.0 }
0x3669   : > { %9161 = vadd.xlane.f32.xlu0 %v9160_v61 }
0x36f6   : > { %v9162_v6 = vpop.xlane.xlu0 %9161 }
0x36f7   : > { %v9163_v7 = vmul.f32 0.03125, %v9162_v6 }
0x36f9   : > { %v9164_v8 = vadd.f32 1e-05, %v9163_v7 }
0x36fb   : > { %10976 = vrsqrt.f32 %v9164_v8 }
0x3705   : > { %v10977_v9 = vpop.eup %10976 }
0x3706   : > { %v9166_v12 = vmul.f32 %v10977_v9, %v9158_v62  ;;  %v9938_v62 = vld [vmem:[%s12433_s2] ss:$0 sm:$0xff] }
0x3708   : > { %v9173_v4 = vmul.f32 %v9907_v10, %v9166_v12 }
0x370a   : > { %v9180_v5 = vadd.f32 %v9908_v13, %v9173_v4 }
0x370c   : > { %v9188_v14 = vpack.c.bf16 %v9180_v5, %v9180_v5 }
0x370e   : > { %10693 = vmatmul.mubr.msk.bf16.vlgmr.msra.gmra.mrb[152].mxu1 %vm1682_vm2, %v9188_v14 }
0x370f   : > { %10712 = vmatprep.mubr.msk.bf16.mxu1 %vm11045_vm0, %v11044_v2  ;;  %10709 = vmatpush3.bf16.msra.mxu1 %v10860_v34 }
0x3710   : > { %10710 = vmatprep.subr.bf16.mxu1 %v11044_v2 }
0x3713   : > { %10711 = vmatpush3.bf16.msra.mxu1 %v10861_v51 }
0x37e1   : > { %v9244_v17 = vpop.f32.mrb[152].mxu1 }
0x37e2   : > { %v9245_v18 = vadd.f32 %v9914_v33, %v9244_v17  ;;  %v10694_v19 = vpop.f32.mrb[153].mxu1 }
0x37e3   : > { %v9247_v21 = vpop.f32.mrb[154].mxu1 }
0x37e4   : > { %v9250_v22 = vmax.f32 %v9245_v18, 0.0  ;;  %v10695_v23 = vpop.f32.mrb[155].mxu1 }
0x37e6   : > { %v9262_v24 = vpack.c.bf16 %v9250_v22, %v9250_v22 }
0x37e8   : > { %10705 = vmatmul.mubr.msk.bf16.vlgmr.msra.gmra.mrb[160].mxu0 %vm2929_vm7, %v9262_v24 }
0x38bb   : > { %v9330_v27 = vpop.f32.mrb[160].mxu0 }
0x38bc   : > { %v9331_v28 = vadd.f32 %v9927_v26, %v9330_v27  ;;  %v10706_v29 = vpop.f32.mrb[161].mxu0 }
0x38bd   : > { %v9333_v31 = vpop.f32.mrb[162].mxu0 }
0x38be   : > { %v9336_v58 = vadd.f32 %v9331_v28, %v9180_v5  ;;  %v10707_v48 = vpop.f32.mrb[163].mxu0 }
0x38c0   : > { %v9341_v35 = vsel %vm1682_vm2, %v9336_v58, 0.0 }
0x38c1   : > { %9342 = vadd.xlane.f32.xlu1 %v9341_v35 }
0x394e   : > { %v9343_v36 = vpop.xlane.xlu1 %9342 }
0x394f   : > { %v9344_v39 = vmul.f32 0.03125, %v9343_v36 }
0x3951   : > { %v9345_v40 = vsub.f32 %v9336_v58, %v9344_v39 }
0x3953   : > { %v9346_v41 = vmul.f32 %v9345_v40, %v9345_v40 }
0x3955   : > { %v9347_v42 = vsel %vm1682_vm2, %v9346_v41, 0.0 }
0x3956   : > { %9348 = vadd.xlane.f32.xlu0 %v9347_v42 }
0x39e3   : > { %v9349_v43 = vpop.xlane.xlu0 %9348 }
0x39e4   : > { %v9350_v44 = vmul.f32 0.03125, %v9349_v43 }
0x39e6   : > { %v9351_v20 = vadd.f32 1e-05, %v9350_v44 }
0x39e8   : > { %10978 = vrsqrt.f32 %v9351_v20 }
0x39f2   : > { %v10979_v37 = vpop.eup %10978 }
0x39f3   : > { %v9353_v32 = vmul.f32 %v10979_v37, %v9345_v40 }
0x39f5   : > { %v9360_v46 = vmul.f32 %v9935_v45, %v9353_v32 }
0x39f7   : > { %v9367_v25 = vadd.f32 %v9936_v59, %v9360_v46 }
0x39f9   : > { %v9370_v30 = vsel %vm1682_vm2, %v9367_v25, 0.0 }
0x39fa   : > { %9371 = vadd.xlane.f32.xlu1 %v9370_v30 }
0x3a87   : > { %v9372_v47 = vpop.xlane.xlu1 %9371 }
0x3a88   : > { %v9373_v38 = vmul.f32 0.03125, %v9372_v47 }
0x3a8a   : > { %v9374_v49 = vsub.f32 %v9367_v25, %v9373_v38 }
0x3a8c   : > { %v9375_v11 = vmul.f32 %v9374_v49, %v9374_v49 }
0x3a8e   : > { %v9376_v50 = vsel %vm1682_vm2, %v9375_v11, 0.0 }
0x3a8f   : > { %9377 = vadd.xlane.f32.xlu0 %v9376_v50 }
0x3b1c   : > { %v9378_v52 = vpop.xlane.xlu0 %9377 }
0x3b1d   : > { %v9379_v53 = vmul.f32 0.03125, %v9378_v52 }
0x3b1f   : > { %v9380_v54 = vadd.f32 1e-05, %v9379_v53 }
0x3b21   : > { %10980 = vrsqrt.f32 %v9380_v54 }
0x3b2b   : > { %v10981_v55 = vpop.eup %10980 }
0x3b2c   : > { %v9382_v57 = vmul.f32 %v10981_v55, %v9374_v49 }
0x3b2e   : > { %v9389_v60 = vmul.f32 %v9937_v56, %v9382_v57 }
0x3b30   : > { %v9396_v61 = vadd.f32 %v9938_v62, %v9389_v60 }
0x3b32   : > { %v9402_v63 = vpack.c.bf16 %v9396_v61, %v9396_v61 }
0x3b34   : > { %10713 = vmatmul.mubr.msk.bf16.vlgmr.msra.gmra.mrb[156].mxu1 %vm1682_vm2, %v9402_v63 }
0x3c07   : > { %v9458_v1 = vpop.f32.mrb[156].mxu1 }
0x3c08   : > { %v9459_v3 = vadd.f32 %v9939_v0, %v9458_v1  ;;  %v10714_v6 = vpop.f32.mrb[157].mxu1 }
0x3c09   : > { %v9461_v2 = vpop.f32.mrb[158].mxu1 }
0x3c0a   : > { %9464 = vst [vmem:[%s1628_s4] sm:$0xff] %v9459_v3  ;;  %v10715_v7 = vpop.f32.mrb[159].mxu1 }
0x3c0b PF: > { %s12437_s0 = sld [smem:[#allocation56_spill]] }
0x3c11   : > { %s117_s7 = sadd.s32 1, %s12437_s0  }
0x3c12   : > { %p114_p4 = scmp.ge.s32.totalorder %s117_s7, 4  }
0x3c14   :  { %116 = sbr.rel (!%p114_p4) target bundleno = 127 (0x7f), region = 369 }

</bundles_post_ra>
